<compile_context>
chip_gen: v6e
topology: v6e:2x2x1
jax: 0.10.0
libtpu: 0.0.40
codegen_flags: <defaults>
</compile_context>

<pallas_src>
import functools

import jax
import jax.numpy as jnp
from jax.experimental import pallas as pl
from jax.experimental.pallas import tpu as pltpu

CIN_PAD = 8          # raw input channels zero-padded to one sublane tile
EPS = 1e-5           # torch.nn.BatchNorm2d default


# ----------------------------- in-kernel helpers ------------------------------

def _bn_relu(y, g, b, eps):
    """BatchNorm2d (training batch stats, biased var) + ReLU.  y: (C, N) f32."""
    inv_n = 1.0 / y.shape[1]
    s1 = jnp.sum(y, axis=1, keepdims=True)        # two independent reductions
    s2 = jnp.sum(y * y, axis=1, keepdims=True)    # (issue back-to-back on XLU)
    mu = s1 * inv_n
    var = jnp.maximum(s2 * inv_n - mu * mu, 0.0)
    return jnp.maximum((y - mu) * (jax.lax.rsqrt(var + eps) * g) + b, 0.0)


def _stack_taps_roll(st_ref, x, mask_ref, *, k, W):
    """Build the tap-stacked activation for a k x k 'same' conv (channel-major).

    x: (Cin, N) f32 with N = B*H*W on the lane axis.  For tap t, rows
    [t*Cin, (t+1)*Cin) of st_ref get mask[t] * shift(x, dy*W + dx): a static
    lane roll plus a 0/1 border mask zeroing out-of-image taps (the mask also
    kills any circular wrap across image/batch boundaries)."""
    cin, n = x.shape
    pad = k // 2
    for idx in range(k * k):
        dy = idx // k - pad
        dx = idx % k - pad
        s = dy * W + dx
        shifted = x if s == 0 else pltpu.roll(x, shift=(-s) % n, axis=1)
        st_ref[pl.ds(idx * cin, cin), :] = shifted * mask_ref[pl.ds(idx, 1), :]


def _stack_taps_shiftmat(st_ref, x, shift_ref, *, k):
    """Same, but shifts realized as (N, N) 0/1 selection matmuls.  Used for
    conv3, whose lane extent (< 128) makes lane rolls unattractive."""
    cin = x.shape[0]
    xb = x.astype(jnp.bfloat16)
    for idx in range(k * k):
        piece = jnp.dot(xb, shift_ref[idx], preferred_element_type=jnp.float32)
        st_ref[pl.ds(idx * cin, cin), :] = piece


def _conv(w_ref, st_ref):
    """ONE MXU matmul per conv: (Cout, k*k*Cin) @ (k*k*Cin, N), f32 accumulate."""
    return jnp.dot(w_ref[...], st_ref[...].astype(jnp.bfloat16),
                   preferred_element_type=jnp.float32)


def _maxpool2(act, sel_ref, *, W):
    """2x2 / stride-2 max pool, channel-major: two lane rolls + maxes gather
    each 2x2 window onto its even-(y, x) anchor, then one MXU matmul with the
    0/1 stride-2 selection matrix extracts the anchors."""
    n = act.shape[1]
    right = pltpu.roll(act, shift=n - 1, axis=1)      # right[i] = act[i+1]
    mh = jnp.maximum(act, right)
    down = pltpu.roll(mh, shift=n - W, axis=1)        # down[i]  = mh[i+W]
    m4 = jnp.maximum(mh, down)
    return jnp.dot(m4.astype(jnp.bfloat16), sel_ref[...],
                   preferred_element_type=jnp.float32)


# ---------------------------------- kernel ------------------------------------

def gp_lenet_kernel(x_ref, m1_ref, m2_ref, sh3_ref, sel1_ref, sel2_ref, gpm_ref,
                    w1_ref, g1_ref, b1_ref,
                    w2_ref, g2_ref, b2_ref,
                    w3_ref, g3_ref, b3_ref,
                    gp_ref,
                    st1_ref, st2_ref, st3_ref, *, W, eps):
    """One GP_LeNet branch per grid step (0 = audio, 1 = image); emits gp3."""
    # layer 1: 5x5 conv (tap-stacked, one matmul) + BN + ReLU + 2x2 maxpool
    _stack_taps_roll(st1_ref, x_ref[...], m1_ref, k=5, W=W)
    a1 = _bn_relu(_conv(w1_ref, st1_ref), g1_ref[...], b1_ref[...], eps)
    p1 = _maxpool2(a1, sel1_ref, W=W)                           # (C,  N/4)

    # layer 2: 3x3 conv + BN + ReLU + 2x2 maxpool
    _stack_taps_roll(st2_ref, p1, m2_ref, k=3, W=W // 2)
    a2 = _bn_relu(_conv(w2_ref, st2_ref), g2_ref[...], b2_ref[...], eps)
    p2 = _maxpool2(a2, sel2_ref, W=W // 2)                      # (2C, N/16)

    # layer 3: 3x3 conv + BN + ReLU (SimpleAVNet only needs gp3 of out3)
    _stack_taps_shiftmat(st3_ref, p2, sh3_ref, k=3)
    a3 = _bn_relu(_conv(w3_ref, st3_ref), g3_ref[...], b3_ref[...], eps)

    # global average pool, channel-major: (4C, N/16) @ (N/16, B) -> (4C, B)
    gp_ref[...] = jnp.dot(a3, gpm_ref[...], preferred_element_type=jnp.float32)


# ------------------------------ host-side glue --------------------------------

def to_channel_major(x_nchw, cpad):
    """(B, Cin, H, W) -> (cpad, B*H*W) channel-major, channels zero-padded."""
    B, Cin, H, W = x_nchw.shape
    xt = x_nchw.transpose(1, 0, 2, 3).reshape(Cin, B * H * W)
    return jnp.pad(xt, ((0, cpad - Cin), (0, 0)))


def _shared_spec(shape):
    if len(shape) == 2:
        return pl.BlockSpec(shape, lambda b: (0, 0))
    return pl.BlockSpec(shape, lambda b: (0, 0, 0))


def _branch_spec(shape):
    tail = tuple(shape[1:])
    zeros = (0,) * len(tail)
    return pl.BlockSpec((None,) + tail, lambda b: (b,) + zeros)


def simple_avnet_forward(audio_nchw, image_nchw, params, consts):
    B, _, H, W = audio_nchw.shape
    C = params["audio"]["g1"].shape[0]
    N1, N2, N3 = B * H * W, B * H * W // 4, B * H * W // 16

    # Invariants the rolls / masks / pool-anchor selection rely on.
    assert H % 4 == 0 and W % 4 == 0, "H, W must be divisible by 4"
    assert N1 % 128 == 0 and N2 % 128 == 0, "layer-1/2 lane axes must be 128-aligned"
    assert C % 8 == 0, "channel count must be sublane-aligned"

    x_all = jnp.stack([to_channel_major(audio_nchw, CIN_PAD),
                       to_channel_major(image_nchw, CIN_PAD)], axis=0)

    def stacked(name):
        return jnp.stack([params["audio"][name], params["image"][name]], axis=0)

    w1, g1, b1 = stacked("w1"), stacked("g1"), stacked("b1")
    w2, g2, b2 = stacked("w2"), stacked("g2"), stacked("b2")
    w3, g3, b3 = stacked("w3"), stacked("g3"), stacked("b3")

    in_specs = [
        _branch_spec(x_all.shape),
        _shared_spec(consts["m1"].shape),
        _shared_spec(consts["m2"].shape),
        _shared_spec(consts["sh3"].shape),
        _shared_spec(consts["sel1"].shape),
        _shared_spec(consts["sel2"].shape),
        _shared_spec(consts["gpm"].shape),
        _branch_spec(w1.shape), _branch_spec(g1.shape), _branch_spec(b1.shape),
        _branch_spec(w2.shape), _branch_spec(g2.shape), _branch_spec(b2.shape),
        _branch_spec(w3.shape), _branch_spec(g3.shape), _branch_spec(b3.shape),
    ]

    gp_all = pl.pallas_call(
        functools.partial(gp_lenet_kernel, W=W, eps=EPS),
        out_shape=jax.ShapeDtypeStruct((2, 4 * C, B), jnp.float32),
        grid=(2,),                                   # audio / image branches
        in_specs=in_specs,
        out_specs=_branch_spec((2, 4 * C, B)),
        scratch_shapes=[
            pltpu.VMEM((25 * CIN_PAD, N1), jnp.float32),   # conv1 stacked taps
            pltpu.VMEM((9 * C, N2), jnp.float32),          # conv2 stacked taps
            pltpu.VMEM((9 * 2 * C, N3), jnp.float32),      # conv3 stacked taps
        ],
        compiler_params=pltpu.CompilerParams(
            dimension_semantics=("parallel",),
            vmem_limit_bytes=32 * 1024 * 1024),
    )(x_all, consts["m1"], consts["m2"], consts["sh3"], consts["sel1"],
      consts["sel2"], consts["gpm"],
      w1, g1, b1, w2, g2, b2, w3, g3, b3)

    # concat(audio_gp3, image_gp3) -> final Linear.  ~1 KFLOP: done in XLA
    # (per review) so the branch grid axis stays fully parallel across cores.
    feat = jnp.concatenate([gp_all[0].T, gp_all[1].T], axis=1)     # (B, 8C)
    return feat @ params["cls_w"] + params["cls_b"]


# ------------------------- constant (layout) matrices --------------------------

def make_border_masks(B, H, W, k):
    """(k*k, B*H*W) f32 0/1 masks: 1 where (y+dy, x+dx) stays inside the image."""
    pad = k // 2
    N = B * H * W
    col = jnp.arange(N)
    y = (col % (H * W)) // W
    x = col % W
    rows = []
    for ky in range(k):
        for kx in range(k):
            dy, dx = ky - pad, kx - pad
            valid = ((y + dy >= 0) & (y + dy < H) & (x + dx >= 0) & (x + dx < W))
            rows.append(valid.astype(jnp.float32))
    return jnp.stack(rows, axis=0)


def make_shift_matrices(B, H, W, k):
    """(k*k, N, N) bf16 0/1 matrices: piece = x @ S[tap] applies the masked shift."""
    pad = k // 2
    N = B * H * W
    col = jnp.arange(N)
    b = col // (H * W)
    y = (col % (H * W)) // W
    x = col % W
    mats = []
    for ky in range(k):
        for kx in range(k):
            dy, dx = ky - pad, kx - pad
            valid = ((y + dy >= 0) & (y + dy < H) & (x + dx >= 0) & (x + dx < W))
            src = jnp.where(valid, b * (H * W) + (y + dy) * W + (x + dx), -1)
            mats.append((jnp.arange(N)[:, None] == src[None, :]).astype(jnp.bfloat16))
    return jnp.stack(mats, axis=0)


def make_pool_select(B, H, W):
    """(N, N//4) bf16 0/1 matrix selecting the even-(y, x) anchor of each window."""
    Hp, Wp = H // 2, W // 2
    N, Np = B * H * W, B * Hp * Wp
    dst = jnp.arange(Np)
    b = dst // (Hp * Wp)
    yp = (dst % (Hp * Wp)) // Wp
    xp = dst % Wp
    src = b * (H * W) + (2 * yp) * W + (2 * xp)
    return (jnp.arange(N)[:, None] == src[None, :]).astype(jnp.bfloat16)


def make_gp_matrix_t(B, H, W):
    """(N, B) f32 transposed global-average-pool weights (1/(H*W) per batch)."""
    N = B * H * W
    col = jnp.arange(N)
    return ((col // (H * W))[:, None] == jnp.arange(B)[None, :]
            ).astype(jnp.float32) / float(H * W)


def make_consts(B, H, W):
    return {
        "m1": make_border_masks(B, H, W, 5),
        "m2": make_border_masks(B, H // 2, W // 2, 3),
        "sh3": make_shift_matrices(B, H // 4, W // 4, 3),
        "sel1": make_pool_select(B, H, W),
        "sel2": make_pool_select(B, H // 2, W // 2),
        "gpm": make_gp_matrix_t(B, H // 4, W // 4),
    }


# ------------------------------- parameter init --------------------------------

def kaiming_uniform(key, shape, fan_in):
    bound = (6.0 / fan_in) ** 0.5
    return jax.random.uniform(key, shape, jnp.float32, -bound, bound)


def pack_conv_stacked(w, cin_pad=None):
    """(k, k, Cin, Cout) -> (Cout, k*k*cin_pad) bf16, tap-major contraction axis."""
    k, _, cin, cout = w.shape
    cin_pad = cin if cin_pad is None else cin_pad
    wt = jnp.transpose(w, (0, 1, 3, 2)).reshape(k * k, cout, cin)   # (tap, co, ci)
    wt = jnp.pad(wt, ((0, 0), (0, 0), (0, cin_pad - cin)))
    return jnp.transpose(wt, (1, 0, 2)).reshape(cout, k * k * cin_pad
                                                ).astype(jnp.bfloat16)


def init_branch_params(key, in_ch, C):
    assert in_ch <= CIN_PAD
    k1, k2, k3 = jax.random.split(key, 3)
    return {
        "w1": pack_conv_stacked(kaiming_uniform(k1, (5, 5, in_ch, C),
                                                5 * 5 * in_ch), CIN_PAD),
        "g1": jnp.ones((C, 1), jnp.float32),
        "b1": jnp.zeros((C, 1), jnp.float32),
        "w2": pack_conv_stacked(kaiming_uniform(k2, (3, 3, C, 2 * C), 3 * 3 * C)),
        "g2": jnp.ones((2 * C, 1), jnp.float32),
        "b2": jnp.zeros((2 * C, 1), jnp.float32),
        "w3": pack_conv_stacked(kaiming_uniform(k3, (3, 3, 2 * C, 4 * C),
                                                3 * 3 * 2 * C)),
        "g3": jnp.ones((4 * C, 1), jnp.float32),
        "b3": jnp.zeros((4 * C, 1), jnp.float32),
    }


# ------------------------------------ main -------------------------------------

if __name__ == "__main__":
    C, NUM_OUT = 8, 10              # args.channels, args.num_outputs
    AUDIO_CH, IMAGE_CH = 1, 3
    B, H, W = 2, 16, 16

    key = jax.random.PRNGKey(0)
    k_a, k_i, k_c, k_x1, k_x2 = jax.random.split(key, 5)
    params = {
        "audio": init_branch_params(k_a, AUDIO_CH, C),
        "image": init_branch_params(k_i, IMAGE_CH, C),
        "cls_w": kaiming_uniform(k_c, (2 * 4 * C, NUM_OUT), 2 * 4 * C),
        "cls_b": jnp.zeros((NUM_OUT,), jnp.float32),
    }
    consts = make_consts(B, H, W)

    # Reference PyTorch inputs are NCHW.
    audio = jax.random.normal(k_x1, (B, AUDIO_CH, H, W), jnp.float32)
    image = jax.random.normal(k_x2, (B, IMAGE_CH, H, W), jnp.float32)

    fwd = jax.jit(simple_avnet_forward)
    out = jax.block_until_ready(fwd(audio, image, params, consts))
    assert out.shape == (B, NUM_OUT) and out.dtype == jnp.float32
    assert bool(jnp.all(jnp.isfinite(out)))
    print("KERNEL_OK")
</pallas_src>

<mosaic_0001>
module attributes {stable_mosaic.version = 11 : i64} {
  func.func @gp_lenet_kernel(%arg0: i32, %arg1: memref<1x8x512xf32, #tpu.memory_space<vmem>>, %arg2: memref<25x512xf32, #tpu.memory_space<vmem>>, %arg3: memref<9x128xf32, #tpu.memory_space<vmem>>, %arg4: memref<9x32x32xbf16, #tpu.memory_space<vmem>>, %arg5: memref<512x128xbf16, #tpu.memory_space<vmem>>, %arg6: memref<128x32xbf16, #tpu.memory_space<vmem>>, %arg7: memref<32x2xf32, #tpu.memory_space<vmem>>, %arg8: memref<1x8x200xbf16, #tpu.memory_space<vmem>>, %arg9: memref<1x8x1xf32, #tpu.memory_space<vmem>>, %arg10: memref<1x8x1xf32, #tpu.memory_space<vmem>>, %arg11: memref<1x16x72xbf16, #tpu.memory_space<vmem>>, %arg12: memref<1x16x1xf32, #tpu.memory_space<vmem>>, %arg13: memref<1x16x1xf32, #tpu.memory_space<vmem>>, %arg14: memref<1x32x144xbf16, #tpu.memory_space<vmem>>, %arg15: memref<1x32x1xf32, #tpu.memory_space<vmem>>, %arg16: memref<1x32x1xf32, #tpu.memory_space<vmem>>, %arg17: memref<1x32x2xf32, #tpu.memory_space<vmem>>, %arg18: memref<200x512xf32, #tpu.memory_space<vmem>>, %arg19: memref<72x128xf32, #tpu.memory_space<vmem>>, %arg20: memref<144x32xf32, #tpu.memory_space<vmem>>) attributes {dimension_semantics = [#tpu.dimension_semantics<parallel>], iteration_bounds = array<i64: 2>, scalar_prefetch = 0 : i64, scratch_operands = 3 : i64, tpu.core_type = #tpu.core_type<tc>, window_params = [{transform_indices = @transform_0, window_bounds = array<i64: 1, 8, 512>}, {pipeline_mode = #tpu.pipeline_mode<synchronous>, transform_indices = @transform_1, window_bounds = array<i64: 25, 512>}, {pipeline_mode = #tpu.pipeline_mode<synchronous>, transform_indices = @transform_2, window_bounds = array<i64: 9, 128>}, {pipeline_mode = #tpu.pipeline_mode<synchronous>, transform_indices = @transform_3, window_bounds = array<i64: 9, 32, 32>}, {pipeline_mode = #tpu.pipeline_mode<synchronous>, transform_indices = @transform_4, window_bounds = array<i64: 512, 128>}, {pipeline_mode = #tpu.pipeline_mode<synchronous>, transform_indices = @transform_5, window_bounds = array<i64: 128, 32>}, {pipeline_mode = #tpu.pipeline_mode<synchronous>, transform_indices = @transform_6, window_bounds = array<i64: 32, 2>}, {transform_indices = @transform_7, window_bounds = array<i64: 1, 8, 200>}, {transform_indices = @transform_8, window_bounds = array<i64: 1, 8, 1>}, {transform_indices = @transform_9, window_bounds = array<i64: 1, 8, 1>}, {transform_indices = @transform_10, window_bounds = array<i64: 1, 16, 72>}, {transform_indices = @transform_11, window_bounds = array<i64: 1, 16, 1>}, {transform_indices = @transform_12, window_bounds = array<i64: 1, 16, 1>}, {transform_indices = @transform_13, window_bounds = array<i64: 1, 32, 144>}, {transform_indices = @transform_14, window_bounds = array<i64: 1, 32, 1>}, {transform_indices = @transform_15, window_bounds = array<i64: 1, 32, 1>}, {transform_indices = @transform_16, window_bounds = array<i64: 1, 32, 2>}]} {
    %c0 = arith.constant 0 : index
    %c0_0 = arith.constant 0 : index
    %c0_1 = arith.constant 0 : index
    %0 = vector.load %arg1[%c0, %c0_0, %c0_1] : memref<1x8x512xf32, #tpu.memory_space<vmem>>, vector<1x8x512xf32>
    %1 = vector.shape_cast %0 : vector<1x8x512xf32> to vector<8x512xf32>
    %c34_i32 = arith.constant 34 : i32
    %2 = tpu.dynamic_rotate %1 by %c34_i32 dim 1 : vector<8x512xf32>, i32 -> vector<8x512xf32>
    %c0_2 = arith.constant 0 : index
    %c0_3 = arith.constant 0 : index
    %3 = vector.load %arg2[%c0_2, %c0_3] : memref<25x512xf32, #tpu.memory_space<vmem>>, vector<1x512xf32>
    %4 = vector.broadcast %3 : vector<1x512xf32> to vector<8x512xf32>
    %5 = arith.mulf %2, %4 : vector<8x512xf32>
    %c0_4 = arith.constant 0 : index
    %c0_5 = arith.constant 0 : index
    %6 = vector.load %arg18[%c0_4, %c0_5] : memref<200x512xf32, #tpu.memory_space<vmem>>, vector<8x512xf32>
    tpu.vector_store %arg18[%c0_4, %c0_5], %5 {strides = array<i32>} : memref<200x512xf32, #tpu.memory_space<vmem>>, vector<8x512xf32>,
    %c33_i32 = arith.constant 33 : i32
    %7 = tpu.dynamic_rotate %1 by %c33_i32 dim 1 : vector<8x512xf32>, i32 -> vector<8x512xf32>
    %c1 = arith.constant 1 : index
    %c0_6 = arith.constant 0 : index
    %8 = vector.load %arg2[%c1, %c0_6] : memref<25x512xf32, #tpu.memory_space<vmem>>, vector<1x512xf32>
    %9 = vector.broadcast %8 : vector<1x512xf32> to vector<8x512xf32>
    %10 = arith.mulf %7, %9 : vector<8x512xf32>
    %c8 = arith.constant 8 : index
    %c0_7 = arith.constant 0 : index
    %11 = vector.load %arg18[%c8, %c0_7] : memref<200x512xf32, #tpu.memory_space<vmem>>, vector<8x512xf32>
    tpu.vector_store %arg18[%c8, %c0_7], %10 {strides = array<i32>} : memref<200x512xf32, #tpu.memory_space<vmem>>, vector<8x512xf32>,
    %c32_i32 = arith.constant 32 : i32
    %12 = tpu.dynamic_rotate %1 by %c32_i32 dim 1 : vector<8x512xf32>, i32 -> vector<8x512xf32>
    %c2 = arith.constant 2 : index
    %c0_8 = arith.constant 0 : index
    %13 = vector.load %arg2[%c2, %c0_8] : memref<25x512xf32, #tpu.memory_space<vmem>>, vector<1x512xf32>
    %14 = vector.broadcast %13 : vector<1x512xf32> to vector<8x512xf32>
    %15 = arith.mulf %12, %14 : vector<8x512xf32>
    %c16 = arith.constant 16 : index
    %c0_9 = arith.constant 0 : index
    %16 = vector.load %arg18[%c16, %c0_9] : memref<200x512xf32, #tpu.memory_space<vmem>>, vector<8x512xf32>
    tpu.vector_store %arg18[%c16, %c0_9], %15 {strides = array<i32>} : memref<200x512xf32, #tpu.memory_space<vmem>>, vector<8x512xf32>,
    %c31_i32 = arith.constant 31 : i32
    %17 = tpu.dynamic_rotate %1 by %c31_i32 dim 1 : vector<8x512xf32>, i32 -> vector<8x512xf32>
    %c3 = arith.constant 3 : index
    %c0_10 = arith.constant 0 : index
    %18 = vector.load %arg2[%c3, %c0_10] : memref<25x512xf32, #tpu.memory_space<vmem>>, vector<1x512xf32>
    %19 = vector.broadcast %18 : vector<1x512xf32> to vector<8x512xf32>
    %20 = arith.mulf %17, %19 : vector<8x512xf32>
    %c24 = arith.constant 24 : index
    %c0_11 = arith.constant 0 : index
    %21 = vector.load %arg18[%c24, %c0_11] : memref<200x512xf32, #tpu.memory_space<vmem>>, vector<8x512xf32>
    tpu.vector_store %arg18[%c24, %c0_11], %20 {strides = array<i32>} : memref<200x512xf32, #tpu.memory_space<vmem>>, vector<8x512xf32>,
    %c30_i32 = arith.constant 30 : i32
    %22 = tpu.dynamic_rotate %1 by %c30_i32 dim 1 : vector<8x512xf32>, i32 -> vector<8x512xf32>
    %c4 = arith.constant 4 : index
    %c0_12 = arith.constant 0 : index
    %23 = vector.load %arg2[%c4, %c0_12] : memref<25x512xf32, #tpu.memory_space<vmem>>, vector<1x512xf32>
    %24 = vector.broadcast %23 : vector<1x512xf32> to vector<8x512xf32>
    %25 = arith.mulf %22, %24 : vector<8x512xf32>
    %c32 = arith.constant 32 : index
    %c0_13 = arith.constant 0 : index
    %26 = vector.load %arg18[%c32, %c0_13] : memref<200x512xf32, #tpu.memory_space<vmem>>, vector<8x512xf32>
    tpu.vector_store %arg18[%c32, %c0_13], %25 {strides = array<i32>} : memref<200x512xf32, #tpu.memory_space<vmem>>, vector<8x512xf32>,
    %c18_i32 = arith.constant 18 : i32
    %27 = tpu.dynamic_rotate %1 by %c18_i32 dim 1 : vector<8x512xf32>, i32 -> vector<8x512xf32>
    %c5 = arith.constant 5 : index
    %c0_14 = arith.constant 0 : index
    %28 = vector.load %arg2[%c5, %c0_14] : memref<25x512xf32, #tpu.memory_space<vmem>>, vector<1x512xf32>
    %29 = vector.broadcast %28 : vector<1x512xf32> to vector<8x512xf32>
    %30 = arith.mulf %27, %29 : vector<8x512xf32>
    %c40 = arith.constant 40 : index
    %c0_15 = arith.constant 0 : index
    %31 = vector.load %arg18[%c40, %c0_15] : memref<200x512xf32, #tpu.memory_space<vmem>>, vector<8x512xf32>
    tpu.vector_store %arg18[%c40, %c0_15], %30 {strides = array<i32>} : memref<200x512xf32, #tpu.memory_space<vmem>>, vector<8x512xf32>,
    %c17_i32 = arith.constant 17 : i32
    %32 = tpu.dynamic_rotate %1 by %c17_i32 dim 1 : vector<8x512xf32>, i32 -> vector<8x512xf32>
    %c6 = arith.constant 6 : index
    %c0_16 = arith.constant 0 : index
    %33 = vector.load %arg2[%c6, %c0_16] : memref<25x512xf32, #tpu.memory_space<vmem>>, vector<1x512xf32>
    %34 = vector.broadcast %33 : vector<1x512xf32> to vector<8x512xf32>
    %35 = arith.mulf %32, %34 : vector<8x512xf32>
    %c48 = arith.constant 48 : index
    %c0_17 = arith.constant 0 : index
    %36 = vector.load %arg18[%c48, %c0_17] : memref<200x512xf32, #tpu.memory_space<vmem>>, vector<8x512xf32>
    tpu.vector_store %arg18[%c48, %c0_17], %35 {strides = array<i32>} : memref<200x512xf32, #tpu.memory_space<vmem>>, vector<8x512xf32>,
    %c16_i32 = arith.constant 16 : i32
    %37 = tpu.dynamic_rotate %1 by %c16_i32 dim 1 : vector<8x512xf32>, i32 -> vector<8x512xf32>
    %c7 = arith.constant 7 : index
    %c0_18 = arith.constant 0 : index
    %38 = vector.load %arg2[%c7, %c0_18] : memref<25x512xf32, #tpu.memory_space<vmem>>, vector<1x512xf32>
    %39 = vector.broadcast %38 : vector<1x512xf32> to vector<8x512xf32>
    %40 = arith.mulf %37, %39 : vector<8x512xf32>
    %c56 = arith.constant 56 : index
    %c0_19 = arith.constant 0 : index
    %41 = vector.load %arg18[%c56, %c0_19] : memref<200x512xf32, #tpu.memory_space<vmem>>, vector<8x512xf32>
    tpu.vector_store %arg18[%c56, %c0_19], %40 {strides = array<i32>} : memref<200x512xf32, #tpu.memory_space<vmem>>, vector<8x512xf32>,
    %c15_i32 = arith.constant 15 : i32
    %42 = tpu.dynamic_rotate %1 by %c15_i32 dim 1 : vector<8x512xf32>, i32 -> vector<8x512xf32>
    %c8_20 = arith.constant 8 : index
    %c0_21 = arith.constant 0 : index
    %43 = vector.load %arg2[%c8_20, %c0_21] : memref<25x512xf32, #tpu.memory_space<vmem>>, vector<1x512xf32>
    %44 = vector.broadcast %43 : vector<1x512xf32> to vector<8x512xf32>
    %45 = arith.mulf %42, %44 : vector<8x512xf32>
    %c64 = arith.constant 64 : index
    %c0_22 = arith.constant 0 : index
    %46 = vector.load %arg18[%c64, %c0_22] : memref<200x512xf32, #tpu.memory_space<vmem>>, vector<8x512xf32>
    tpu.vector_store %arg18[%c64, %c0_22], %45 {strides = array<i32>} : memref<200x512xf32, #tpu.memory_space<vmem>>, vector<8x512xf32>,
    %c14_i32 = arith.constant 14 : i32
    %47 = tpu.dynamic_rotate %1 by %c14_i32 dim 1 : vector<8x512xf32>, i32 -> vector<8x512xf32>
    %c9 = arith.constant 9 : index
    %c0_23 = arith.constant 0 : index
    %48 = vector.load %arg2[%c9, %c0_23] : memref<25x512xf32, #tpu.memory_space<vmem>>, vector<1x512xf32>
    %49 = vector.broadcast %48 : vector<1x512xf32> to vector<8x512xf32>
    %50 = arith.mulf %47, %49 : vector<8x512xf32>
    %c72 = arith.constant 72 : index
    %c0_24 = arith.constant 0 : index
    %51 = vector.load %arg18[%c72, %c0_24] : memref<200x512xf32, #tpu.memory_space<vmem>>, vector<8x512xf32>
    tpu.vector_store %arg18[%c72, %c0_24], %50 {strides = array<i32>} : memref<200x512xf32, #tpu.memory_space<vmem>>, vector<8x512xf32>,
    %c2_i32 = arith.constant 2 : i32
    %52 = tpu.dynamic_rotate %1 by %c2_i32 dim 1 : vector<8x512xf32>, i32 -> vector<8x512xf32>
    %c10 = arith.constant 10 : index
    %c0_25 = arith.constant 0 : index
    %53 = vector.load %arg2[%c10, %c0_25] : memref<25x512xf32, #tpu.memory_space<vmem>>, vector<1x512xf32>
    %54 = vector.broadcast %53 : vector<1x512xf32> to vector<8x512xf32>
    %55 = arith.mulf %52, %54 : vector<8x512xf32>
    %c80 = arith.constant 80 : index
    %c0_26 = arith.constant 0 : index
    %56 = vector.load %arg18[%c80, %c0_26] : memref<200x512xf32, #tpu.memory_space<vmem>>, vector<8x512xf32>
    tpu.vector_store %arg18[%c80, %c0_26], %55 {strides = array<i32>} : memref<200x512xf32, #tpu.memory_space<vmem>>, vector<8x512xf32>,
    %c1_i32 = arith.constant 1 : i32
    %57 = tpu.dynamic_rotate %1 by %c1_i32 dim 1 : vector<8x512xf32>, i32 -> vector<8x512xf32>
    %c11 = arith.constant 11 : index
    %c0_27 = arith.constant 0 : index
    %58 = vector.load %arg2[%c11, %c0_27] : memref<25x512xf32, #tpu.memory_space<vmem>>, vector<1x512xf32>
    %59 = vector.broadcast %58 : vector<1x512xf32> to vector<8x512xf32>
    %60 = arith.mulf %57, %59 : vector<8x512xf32>
    %c88 = arith.constant 88 : index
    %c0_28 = arith.constant 0 : index
    %61 = vector.load %arg18[%c88, %c0_28] : memref<200x512xf32, #tpu.memory_space<vmem>>, vector<8x512xf32>
    tpu.vector_store %arg18[%c88, %c0_28], %60 {strides = array<i32>} : memref<200x512xf32, #tpu.memory_space<vmem>>, vector<8x512xf32>,
    %c12 = arith.constant 12 : index
    %c0_29 = arith.constant 0 : index
    %62 = vector.load %arg2[%c12, %c0_29] : memref<25x512xf32, #tpu.memory_space<vmem>>, vector<1x512xf32>
    %63 = vector.broadcast %62 : vector<1x512xf32> to vector<8x512xf32>
    %64 = arith.mulf %1, %63 : vector<8x512xf32>
    %c96 = arith.constant 96 : index
    %c0_30 = arith.constant 0 : index
    %65 = vector.load %arg18[%c96, %c0_30] : memref<200x512xf32, #tpu.memory_space<vmem>>, vector<8x512xf32>
    tpu.vector_store %arg18[%c96, %c0_30], %64 {strides = array<i32>} : memref<200x512xf32, #tpu.memory_space<vmem>>, vector<8x512xf32>,
    %c511_i32 = arith.constant 511 : i32
    %66 = tpu.dynamic_rotate %1 by %c511_i32 dim 1 : vector<8x512xf32>, i32 -> vector<8x512xf32>
    %c13 = arith.constant 13 : index
    %c0_31 = arith.constant 0 : index
    %67 = vector.load %arg2[%c13, %c0_31] : memref<25x512xf32, #tpu.memory_space<vmem>>, vector<1x512xf32>
    %68 = vector.broadcast %67 : vector<1x512xf32> to vector<8x512xf32>
    %69 = arith.mulf %66, %68 : vector<8x512xf32>
    %c104 = arith.constant 104 : index
    %c0_32 = arith.constant 0 : index
    %70 = vector.load %arg18[%c104, %c0_32] : memref<200x512xf32, #tpu.memory_space<vmem>>, vector<8x512xf32>
    tpu.vector_store %arg18[%c104, %c0_32], %69 {strides = array<i32>} : memref<200x512xf32, #tpu.memory_space<vmem>>, vector<8x512xf32>,
    %c510_i32 = arith.constant 510 : i32
    %71 = tpu.dynamic_rotate %1 by %c510_i32 dim 1 : vector<8x512xf32>, i32 -> vector<8x512xf32>
    %c14 = arith.constant 14 : index
    %c0_33 = arith.constant 0 : index
    %72 = vector.load %arg2[%c14, %c0_33] : memref<25x512xf32, #tpu.memory_space<vmem>>, vector<1x512xf32>
    %73 = vector.broadcast %72 : vector<1x512xf32> to vector<8x512xf32>
    %74 = arith.mulf %71, %73 : vector<8x512xf32>
    %c112 = arith.constant 112 : index
    %c0_34 = arith.constant 0 : index
    %75 = vector.load %arg18[%c112, %c0_34] : memref<200x512xf32, #tpu.memory_space<vmem>>, vector<8x512xf32>
    tpu.vector_store %arg18[%c112, %c0_34], %74 {strides = array<i32>} : memref<200x512xf32, #tpu.memory_space<vmem>>, vector<8x512xf32>,
    %c498_i32 = arith.constant 498 : i32
    %76 = tpu.dynamic_rotate %1 by %c498_i32 dim 1 : vector<8x512xf32>, i32 -> vector<8x512xf32>
    %c15 = arith.constant 15 : index
    %c0_35 = arith.constant 0 : index
    %77 = vector.load %arg2[%c15, %c0_35] : memref<25x512xf32, #tpu.memory_space<vmem>>, vector<1x512xf32>
    %78 = vector.broadcast %77 : vector<1x512xf32> to vector<8x512xf32>
    %79 = arith.mulf %76, %78 : vector<8x512xf32>
    %c120 = arith.constant 120 : index
    %c0_36 = arith.constant 0 : index
    %80 = vector.load %arg18[%c120, %c0_36] : memref<200x512xf32, #tpu.memory_space<vmem>>, vector<8x512xf32>
    tpu.vector_store %arg18[%c120, %c0_36], %79 {strides = array<i32>} : memref<200x512xf32, #tpu.memory_space<vmem>>, vector<8x512xf32>,
    %c497_i32 = arith.constant 497 : i32
    %81 = tpu.dynamic_rotate %1 by %c497_i32 dim 1 : vector<8x512xf32>, i32 -> vector<8x512xf32>
    %c16_37 = arith.constant 16 : index
    %c0_38 = arith.constant 0 : index
    %82 = vector.load %arg2[%c16_37, %c0_38] : memref<25x512xf32, #tpu.memory_space<vmem>>, vector<1x512xf32>
    %83 = vector.broadcast %82 : vector<1x512xf32> to vector<8x512xf32>
    %84 = arith.mulf %81, %83 : vector<8x512xf32>
    %c128 = arith.constant 128 : index
    %c0_39 = arith.constant 0 : index
    %85 = vector.load %arg18[%c128, %c0_39] : memref<200x512xf32, #tpu.memory_space<vmem>>, vector<8x512xf32>
    tpu.vector_store %arg18[%c128, %c0_39], %84 {strides = array<i32>} : memref<200x512xf32, #tpu.memory_space<vmem>>, vector<8x512xf32>,
    %c496_i32 = arith.constant 496 : i32
    %86 = tpu.dynamic_rotate %1 by %c496_i32 dim 1 : vector<8x512xf32>, i32 -> vector<8x512xf32>
    %c17 = arith.constant 17 : index
    %c0_40 = arith.constant 0 : index
    %87 = vector.load %arg2[%c17, %c0_40] : memref<25x512xf32, #tpu.memory_space<vmem>>, vector<1x512xf32>
    %88 = vector.broadcast %87 : vector<1x512xf32> to vector<8x512xf32>
    %89 = arith.mulf %86, %88 : vector<8x512xf32>
    %c136 = arith.constant 136 : index
    %c0_41 = arith.constant 0 : index
    %90 = vector.load %arg18[%c136, %c0_41] : memref<200x512xf32, #tpu.memory_space<vmem>>, vector<8x512xf32>
    tpu.vector_store %arg18[%c136, %c0_41], %89 {strides = array<i32>} : memref<200x512xf32, #tpu.memory_space<vmem>>, vector<8x512xf32>,
    %c495_i32 = arith.constant 495 : i32
    %91 = tpu.dynamic_rotate %1 by %c495_i32 dim 1 : vector<8x512xf32>, i32 -> vector<8x512xf32>
    %c18 = arith.constant 18 : index
    %c0_42 = arith.constant 0 : index
    %92 = vector.load %arg2[%c18, %c0_42] : memref<25x512xf32, #tpu.memory_space<vmem>>, vector<1x512xf32>
    %93 = vector.broadcast %92 : vector<1x512xf32> to vector<8x512xf32>
    %94 = arith.mulf %91, %93 : vector<8x512xf32>
    %c144 = arith.constant 144 : index
    %c0_43 = arith.constant 0 : index
    %95 = vector.load %arg18[%c144, %c0_43] : memref<200x512xf32, #tpu.memory_space<vmem>>, vector<8x512xf32>
    tpu.vector_store %arg18[%c144, %c0_43], %94 {strides = array<i32>} : memref<200x512xf32, #tpu.memory_space<vmem>>, vector<8x512xf32>,
    %c494_i32 = arith.constant 494 : i32
    %96 = tpu.dynamic_rotate %1 by %c494_i32 dim 1 : vector<8x512xf32>, i32 -> vector<8x512xf32>
    %c19 = arith.constant 19 : index
    %c0_44 = arith.constant 0 : index
    %97 = vector.load %arg2[%c19, %c0_44] : memref<25x512xf32, #tpu.memory_space<vmem>>, vector<1x512xf32>
    %98 = vector.broadcast %97 : vector<1x512xf32> to vector<8x512xf32>
    %99 = arith.mulf %96, %98 : vector<8x512xf32>
    %c152 = arith.constant 152 : index
    %c0_45 = arith.constant 0 : index
    %100 = vector.load %arg18[%c152, %c0_45] : memref<200x512xf32, #tpu.memory_space<vmem>>, vector<8x512xf32>
    tpu.vector_store %arg18[%c152, %c0_45], %99 {strides = array<i32>} : memref<200x512xf32, #tpu.memory_space<vmem>>, vector<8x512xf32>,
    %c482_i32 = arith.constant 482 : i32
    %101 = tpu.dynamic_rotate %1 by %c482_i32 dim 1 : vector<8x512xf32>, i32 -> vector<8x512xf32>
    %c20 = arith.constant 20 : index
    %c0_46 = arith.constant 0 : index
    %102 = vector.load %arg2[%c20, %c0_46] : memref<25x512xf32, #tpu.memory_space<vmem>>, vector<1x512xf32>
    %103 = vector.broadcast %102 : vector<1x512xf32> to vector<8x512xf32>
    %104 = arith.mulf %101, %103 : vector<8x512xf32>
    %c160 = arith.constant 160 : index
    %c0_47 = arith.constant 0 : index
    %105 = vector.load %arg18[%c160, %c0_47] : memref<200x512xf32, #tpu.memory_space<vmem>>, vector<8x512xf32>
    tpu.vector_store %arg18[%c160, %c0_47], %104 {strides = array<i32>} : memref<200x512xf32, #tpu.memory_space<vmem>>, vector<8x512xf32>,
    %c481_i32 = arith.constant 481 : i32
    %106 = tpu.dynamic_rotate %1 by %c481_i32 dim 1 : vector<8x512xf32>, i32 -> vector<8x512xf32>
    %c21 = arith.constant 21 : index
    %c0_48 = arith.constant 0 : index
    %107 = vector.load %arg2[%c21, %c0_48] : memref<25x512xf32, #tpu.memory_space<vmem>>, vector<1x512xf32>
    %108 = vector.broadcast %107 : vector<1x512xf32> to vector<8x512xf32>
    %109 = arith.mulf %106, %108 : vector<8x512xf32>
    %c168 = arith.constant 168 : index
    %c0_49 = arith.constant 0 : index
    %110 = vector.load %arg18[%c168, %c0_49] : memref<200x512xf32, #tpu.memory_space<vmem>>, vector<8x512xf32>
    tpu.vector_store %arg18[%c168, %c0_49], %109 {strides = array<i32>} : memref<200x512xf32, #tpu.memory_space<vmem>>, vector<8x512xf32>,
    %c480_i32 = arith.constant 480 : i32
    %111 = tpu.dynamic_rotate %1 by %c480_i32 dim 1 : vector<8x512xf32>, i32 -> vector<8x512xf32>
    %c22 = arith.constant 22 : index
    %c0_50 = arith.constant 0 : index
    %112 = vector.load %arg2[%c22, %c0_50] : memref<25x512xf32, #tpu.memory_space<vmem>>, vector<1x512xf32>
    %113 = vector.broadcast %112 : vector<1x512xf32> to vector<8x512xf32>
    %114 = arith.mulf %111, %113 : vector<8x512xf32>
    %c176 = arith.constant 176 : index
    %c0_51 = arith.constant 0 : index
    %115 = vector.load %arg18[%c176, %c0_51] : memref<200x512xf32, #tpu.memory_space<vmem>>, vector<8x512xf32>
    tpu.vector_store %arg18[%c176, %c0_51], %114 {strides = array<i32>} : memref<200x512xf32, #tpu.memory_space<vmem>>, vector<8x512xf32>,
    %c479_i32 = arith.constant 479 : i32
    %116 = tpu.dynamic_rotate %1 by %c479_i32 dim 1 : vector<8x512xf32>, i32 -> vector<8x512xf32>
    %c23 = arith.constant 23 : index
    %c0_52 = arith.constant 0 : index
    %117 = vector.load %arg2[%c23, %c0_52] : memref<25x512xf32, #tpu.memory_space<vmem>>, vector<1x512xf32>
    %118 = vector.broadcast %117 : vector<1x512xf32> to vector<8x512xf32>
    %119 = arith.mulf %116, %118 : vector<8x512xf32>
    %c184 = arith.constant 184 : index
    %c0_53 = arith.constant 0 : index
    %120 = vector.load %arg18[%c184, %c0_53] : memref<200x512xf32, #tpu.memory_space<vmem>>, vector<8x512xf32>
    tpu.vector_store %arg18[%c184, %c0_53], %119 {strides = array<i32>} : memref<200x512xf32, #tpu.memory_space<vmem>>, vector<8x512xf32>,
    %c478_i32 = arith.constant 478 : i32
    %121 = tpu.dynamic_rotate %1 by %c478_i32 dim 1 : vector<8x512xf32>, i32 -> vector<8x512xf32>
    %c24_54 = arith.constant 24 : index
    %c0_55 = arith.constant 0 : index
    %122 = vector.load %arg2[%c24_54, %c0_55] : memref<25x512xf32, #tpu.memory_space<vmem>>, vector<1x512xf32>
    %123 = vector.broadcast %122 : vector<1x512xf32> to vector<8x512xf32>
    %124 = arith.mulf %121, %123 : vector<8x512xf32>
    %c192 = arith.constant 192 : index
    %c0_56 = arith.constant 0 : index
    %125 = vector.load %arg18[%c192, %c0_56] : memref<200x512xf32, #tpu.memory_space<vmem>>, vector<8x512xf32>
    tpu.vector_store %arg18[%c192, %c0_56], %124 {strides = array<i32>} : memref<200x512xf32, #tpu.memory_space<vmem>>, vector<8x512xf32>,
    %c0_57 = arith.constant 0 : index
    %c0_58 = arith.constant 0 : index
    %c0_59 = arith.constant 0 : index
    %126 = vector.load %arg8[%c0_57, %c0_58, %c0_59] : memref<1x8x200xbf16, #tpu.memory_space<vmem>>, vector<1x8x200xbf16>
    %127 = vector.shape_cast %126 : vector<1x8x200xbf16> to vector<8x200xbf16>
    %c0_60 = arith.constant 0 : index
    %c0_61 = arith.constant 0 : index
    %128 = vector.load %arg18[%c0_60, %c0_61] : memref<200x512xf32, #tpu.memory_space<vmem>>, vector<200x512xf32>
    %129 = arith.truncf %128 : vector<200x512xf32> to vector<200x512xbf16>
    %cst = arith.constant dense<0.000000e+00> : vector<8x512xf32>
    %130 = tpu.matmul %127, %129, %cst {dimension_numbers = #tpu.dot_dimension_numbers<[1], [0], [0], [1], [0, 0, 1, 1], [], []>} : vector<8x200xbf16>, vector<200x512xbf16>, vector<8x512xf32> -> vector<8x512xf32>
    %c0_62 = arith.constant 0 : index
    %c0_63 = arith.constant 0 : index
    %c0_64 = arith.constant 0 : index
    %131 = vector.load %arg9[%c0_62, %c0_63, %c0_64] : memref<1x8x1xf32, #tpu.memory_space<vmem>>, vector<1x8x1xf32>
    %132 = vector.shape_cast %131 : vector<1x8x1xf32> to vector<8x1xf32>
    %c0_65 = arith.constant 0 : index
    %c0_66 = arith.constant 0 : index
    %c0_67 = arith.constant 0 : index
    %133 = vector.load %arg10[%c0_65, %c0_66, %c0_67] : memref<1x8x1xf32, #tpu.memory_space<vmem>>, vector<1x8x1xf32>
    %134 = vector.shape_cast %133 : vector<1x8x1xf32> to vector<8x1xf32>
    %cst_68 = arith.constant dense<0.000000e+00> : vector<8xf32>
    %135 = vector.multi_reduction <add>, %130, %cst_68 [1] : vector<8x512xf32> to vector<8xf32>
    %136 = vector.shape_cast %135 : vector<8xf32> to vector<8x1xf32>
    %137 = arith.mulf %130, %130 : vector<8x512xf32>
    %cst_69 = arith.constant dense<0.000000e+00> : vector<8xf32>
    %138 = vector.multi_reduction <add>, %137, %cst_69 [1] : vector<8x512xf32> to vector<8xf32>
    %139 = vector.shape_cast %138 : vector<8xf32> to vector<8x1xf32>
    %cst_70 = arith.constant 0.001953125 : f32
    %140 = vector.broadcast %cst_70 : f32 to vector<8x1xf32>
    %141 = arith.mulf %136, %140 : vector<8x1xf32>
    %cst_71 = arith.constant 0.001953125 : f32
    %142 = vector.broadcast %cst_71 : f32 to vector<8x1xf32>
    %143 = arith.mulf %139, %142 : vector<8x1xf32>
    %144 = arith.mulf %141, %141 : vector<8x1xf32>
    %145 = arith.subf %143, %144 : vector<8x1xf32>
    %cst_72 = arith.constant 0.000000e+00 : f32
    %146 = vector.broadcast %cst_72 : f32 to vector<8x1xf32>
    %147 = arith.maximumf %145, %146 : vector<8x1xf32>
    %148 = vector.broadcast %141 : vector<8x1xf32> to vector<8x512xf32>
    %149 = arith.subf %130, %148 : vector<8x512xf32>
    %cst_73 = arith.constant 9.99999974E-6 : f32
    %150 = vector.broadcast %cst_73 : f32 to vector<8x1xf32>
    %151 = arith.addf %147, %150 : vector<8x1xf32>
    %152 = math.rsqrt %151 : vector<8x1xf32>
    %153 = arith.mulf %152, %132 : vector<8x1xf32>
    %154 = vector.broadcast %153 : vector<8x1xf32> to vector<8x512xf32>
    %155 = arith.mulf %149, %154 : vector<8x512xf32>
    %156 = vector.broadcast %134 : vector<8x1xf32> to vector<8x512xf32>
    %157 = arith.addf %155, %156 : vector<8x512xf32>
    %cst_74 = arith.constant 0.000000e+00 : f32
    %158 = vector.broadcast %cst_74 : f32 to vector<8x512xf32>
    %159 = arith.maximumf %157, %158 : vector<8x512xf32>
    %c511_i32_75 = arith.constant 511 : i32
    %160 = tpu.dynamic_rotate %159 by %c511_i32_75 dim 1 : vector<8x512xf32>, i32 -> vector<8x512xf32>
    %161 = arith.maximumf %159, %160 : vector<8x512xf32>
    %c496_i32_76 = arith.constant 496 : i32
    %162 = tpu.dynamic_rotate %161 by %c496_i32_76 dim 1 : vector<8x512xf32>, i32 -> vector<8x512xf32>
    %163 = arith.maximumf %161, %162 : vector<8x512xf32>
    %164 = arith.truncf %163 : vector<8x512xf32> to vector<8x512xbf16>
    %c0_77 = arith.constant 0 : index
    %c0_78 = arith.constant 0 : index
    %165 = vector.load %arg5[%c0_77, %c0_78] : memref<512x128xbf16, #tpu.memory_space<vmem>>, vector<512x128xbf16>
    %cst_79 = arith.constant dense<0.000000e+00> : vector<8x128xf32>
    %166 = tpu.matmul %164, %165, %cst_79 {dimension_numbers = #tpu.dot_dimension_numbers<[1], [0], [0], [1], [0, 0, 1, 1], [], []>} : vector<8x512xbf16>, vector<512x128xbf16>, vector<8x128xf32> -> vector<8x128xf32>
    %c9_i32 = arith.constant 9 : i32
    %167 = tpu.dynamic_rotate %166 by %c9_i32 dim 1 : vector<8x128xf32>, i32 -> vector<8x128xf32>
    %c0_80 = arith.constant 0 : index
    %c0_81 = arith.constant 0 : index
    %168 = vector.load %arg3[%c0_80, %c0_81] : memref<9x128xf32, #tpu.memory_space<vmem>>, vector<1x128xf32>
    %169 = vector.broadcast %168 : vector<1x128xf32> to vector<8x128xf32>
    %170 = arith.mulf %167, %169 : vector<8x128xf32>
    %c0_82 = arith.constant 0 : index
    %c0_83 = arith.constant 0 : index
    %171 = vector.load %arg19[%c0_82, %c0_83] : memref<72x128xf32, #tpu.memory_space<vmem>>, vector<8x128xf32>
    tpu.vector_store %arg19[%c0_82, %c0_83], %170 {strides = array<i32>} : memref<72x128xf32, #tpu.memory_space<vmem>>, vector<8x128xf32>,
    %c8_i32 = arith.constant 8 : i32
    %172 = tpu.dynamic_rotate %166 by %c8_i32 dim 1 : vector<8x128xf32>, i32 -> vector<8x128xf32>
    %c1_84 = arith.constant 1 : index
    %c0_85 = arith.constant 0 : index
    %173 = vector.load %arg3[%c1_84, %c0_85] : memref<9x128xf32, #tpu.memory_space<vmem>>, vector<1x128xf32>
    %174 = vector.broadcast %173 : vector<1x128xf32> to vector<8x128xf32>
    %175 = arith.mulf %172, %174 : vector<8x128xf32>
    %c8_86 = arith.constant 8 : index
    %c0_87 = arith.constant 0 : index
    %176 = vector.load %arg19[%c8_86, %c0_87] : memref<72x128xf32, #tpu.memory_space<vmem>>, vector<8x128xf32>
    tpu.vector_store %arg19[%c8_86, %c0_87], %175 {strides = array<i32>} : memref<72x128xf32, #tpu.memory_space<vmem>>, vector<8x128xf32>,
    %c7_i32 = arith.constant 7 : i32
    %177 = tpu.dynamic_rotate %166 by %c7_i32 dim 1 : vector<8x128xf32>, i32 -> vector<8x128xf32>
    %c2_88 = arith.constant 2 : index
    %c0_89 = arith.constant 0 : index
    %178 = vector.load %arg3[%c2_88, %c0_89] : memref<9x128xf32, #tpu.memory_space<vmem>>, vector<1x128xf32>
    %179 = vector.broadcast %178 : vector<1x128xf32> to vector<8x128xf32>
    %180 = arith.mulf %177, %179 : vector<8x128xf32>
    %c16_90 = arith.constant 16 : index
    %c0_91 = arith.constant 0 : index
    %181 = vector.load %arg19[%c16_90, %c0_91] : memref<72x128xf32, #tpu.memory_space<vmem>>, vector<8x128xf32>
    tpu.vector_store %arg19[%c16_90, %c0_91], %180 {strides = array<i32>} : memref<72x128xf32, #tpu.memory_space<vmem>>, vector<8x128xf32>,
    %c1_i32_92 = arith.constant 1 : i32
    %182 = tpu.dynamic_rotate %166 by %c1_i32_92 dim 1 : vector<8x128xf32>, i32 -> vector<8x128xf32>
    %c3_93 = arith.constant 3 : index
    %c0_94 = arith.constant 0 : index
    %183 = vector.load %arg3[%c3_93, %c0_94] : memref<9x128xf32, #tpu.memory_space<vmem>>, vector<1x128xf32>
    %184 = vector.broadcast %183 : vector<1x128xf32> to vector<8x128xf32>
    %185 = arith.mulf %182, %184 : vector<8x128xf32>
    %c24_95 = arith.constant 24 : index
    %c0_96 = arith.constant 0 : index
    %186 = vector.load %arg19[%c24_95, %c0_96] : memref<72x128xf32, #tpu.memory_space<vmem>>, vector<8x128xf32>
    tpu.vector_store %arg19[%c24_95, %c0_96], %185 {strides = array<i32>} : memref<72x128xf32, #tpu.memory_space<vmem>>, vector<8x128xf32>,
    %c4_97 = arith.constant 4 : index
    %c0_98 = arith.constant 0 : index
    %187 = vector.load %arg3[%c4_97, %c0_98] : memref<9x128xf32, #tpu.memory_space<vmem>>, vector<1x128xf32>
    %188 = vector.broadcast %187 : vector<1x128xf32> to vector<8x128xf32>
    %189 = arith.mulf %166, %188 : vector<8x128xf32>
    %c32_99 = arith.constant 32 : index
    %c0_100 = arith.constant 0 : index
    %190 = vector.load %arg19[%c32_99, %c0_100] : memref<72x128xf32, #tpu.memory_space<vmem>>, vector<8x128xf32>
    tpu.vector_store %arg19[%c32_99, %c0_100], %189 {strides = array<i32>} : memref<72x128xf32, #tpu.memory_space<vmem>>, vector<8x128xf32>,
    %c127_i32 = arith.constant 127 : i32
    %191 = tpu.dynamic_rotate %166 by %c127_i32 dim 1 : vector<8x128xf32>, i32 -> vector<8x128xf32>
    %c5_101 = arith.constant 5 : index
    %c0_102 = arith.constant 0 : index
    %192 = vector.load %arg3[%c5_101, %c0_102] : memref<9x128xf32, #tpu.memory_space<vmem>>, vector<1x128xf32>
    %193 = vector.broadcast %192 : vector<1x128xf32> to vector<8x128xf32>
    %194 = arith.mulf %191, %193 : vector<8x128xf32>
    %c40_103 = arith.constant 40 : index
    %c0_104 = arith.constant 0 : index
    %195 = vector.load %arg19[%c40_103, %c0_104] : memref<72x128xf32, #tpu.memory_space<vmem>>, vector<8x128xf32>
    tpu.vector_store %arg19[%c40_103, %c0_104], %194 {strides = array<i32>} : memref<72x128xf32, #tpu.memory_space<vmem>>, vector<8x128xf32>,
    %c121_i32 = arith.constant 121 : i32
    %196 = tpu.dynamic_rotate %166 by %c121_i32 dim 1 : vector<8x128xf32>, i32 -> vector<8x128xf32>
    %c6_105 = arith.constant 6 : index
    %c0_106 = arith.constant 0 : index
    %197 = vector.load %arg3[%c6_105, %c0_106] : memref<9x128xf32, #tpu.memory_space<vmem>>, vector<1x128xf32>
    %198 = vector.broadcast %197 : vector<1x128xf32> to vector<8x128xf32>
    %199 = arith.mulf %196, %198 : vector<8x128xf32>
    %c48_107 = arith.constant 48 : index
    %c0_108 = arith.constant 0 : index
    %200 = vector.load %arg19[%c48_107, %c0_108] : memref<72x128xf32, #tpu.memory_space<vmem>>, vector<8x128xf32>
    tpu.vector_store %arg19[%c48_107, %c0_108], %199 {strides = array<i32>} : memref<72x128xf32, #tpu.memory_space<vmem>>, vector<8x128xf32>,
    %c120_i32 = arith.constant 120 : i32
    %201 = tpu.dynamic_rotate %166 by %c120_i32 dim 1 : vector<8x128xf32>, i32 -> vector<8x128xf32>
    %c7_109 = arith.constant 7 : index
    %c0_110 = arith.constant 0 : index
    %202 = vector.load %arg3[%c7_109, %c0_110] : memref<9x128xf32, #tpu.memory_space<vmem>>, vector<1x128xf32>
    %203 = vector.broadcast %202 : vector<1x128xf32> to vector<8x128xf32>
    %204 = arith.mulf %201, %203 : vector<8x128xf32>
    %c56_111 = arith.constant 56 : index
    %c0_112 = arith.constant 0 : index
    %205 = vector.load %arg19[%c56_111, %c0_112] : memref<72x128xf32, #tpu.memory_space<vmem>>, vector<8x128xf32>
    tpu.vector_store %arg19[%c56_111, %c0_112], %204 {strides = array<i32>} : memref<72x128xf32, #tpu.memory_space<vmem>>, vector<8x128xf32>,
    %c119_i32 = arith.constant 119 : i32
    %206 = tpu.dynamic_rotate %166 by %c119_i32 dim 1 : vector<8x128xf32>, i32 -> vector<8x128xf32>
    %c8_113 = arith.constant 8 : index
    %c0_114 = arith.constant 0 : index
    %207 = vector.load %arg3[%c8_113, %c0_114] : memref<9x128xf32, #tpu.memory_space<vmem>>, vector<1x128xf32>
    %208 = vector.broadcast %207 : vector<1x128xf32> to vector<8x128xf32>
    %209 = arith.mulf %206, %208 : vector<8x128xf32>
    %c64_115 = arith.constant 64 : index
    %c0_116 = arith.constant 0 : index
    %210 = vector.load %arg19[%c64_115, %c0_116] : memref<72x128xf32, #tpu.memory_space<vmem>>, vector<8x128xf32>
    tpu.vector_store %arg19[%c64_115, %c0_116], %209 {strides = array<i32>} : memref<72x128xf32, #tpu.memory_space<vmem>>, vector<8x128xf32>,
    %c0_117 = arith.constant 0 : index
    %c0_118 = arith.constant 0 : index
    %c0_119 = arith.constant 0 : index
    %211 = vector.load %arg11[%c0_117, %c0_118, %c0_119] : memref<1x16x72xbf16, #tpu.memory_space<vmem>>, vector<1x16x72xbf16>
    %212 = vector.shape_cast %211 : vector<1x16x72xbf16> to vector<16x72xbf16>
    %c0_120 = arith.constant 0 : index
    %c0_121 = arith.constant 0 : index
    %213 = vector.load %arg19[%c0_120, %c0_121] : memref<72x128xf32, #tpu.memory_space<vmem>>, vector<72x128xf32>
    %214 = arith.truncf %213 : vector<72x128xf32> to vector<72x128xbf16>
    %cst_122 = arith.constant dense<0.000000e+00> : vector<16x128xf32>
    %215 = tpu.matmul %212, %214, %cst_122 {dimension_numbers = #tpu.dot_dimension_numbers<[1], [0], [0], [1], [0, 0, 1, 1], [], []>} : vector<16x72xbf16>, vector<72x128xbf16>, vector<16x128xf32> -> vector<16x128xf32>
    %c0_123 = arith.constant 0 : index
    %c0_124 = arith.constant 0 : index
    %c0_125 = arith.constant 0 : index
    %216 = vector.load %arg12[%c0_123, %c0_124, %c0_125] : memref<1x16x1xf32, #tpu.memory_space<vmem>>, vector<1x16x1xf32>
    %217 = vector.shape_cast %216 : vector<1x16x1xf32> to vector<16x1xf32>
    %c0_126 = arith.constant 0 : index
    %c0_127 = arith.constant 0 : index
    %c0_128 = arith.constant 0 : index
    %218 = vector.load %arg13[%c0_126, %c0_127, %c0_128] : memref<1x16x1xf32, #tpu.memory_space<vmem>>, vector<1x16x1xf32>
    %219 = vector.shape_cast %218 : vector<1x16x1xf32> to vector<16x1xf32>
    %cst_129 = arith.constant dense<0.000000e+00> : vector<16xf32>
    %220 = vector.multi_reduction <add>, %215, %cst_129 [1] : vector<16x128xf32> to vector<16xf32>
    %221 = vector.shape_cast %220 : vector<16xf32> to vector<16x1xf32>
    %222 = arith.mulf %215, %215 : vector<16x128xf32>
    %cst_130 = arith.constant dense<0.000000e+00> : vector<16xf32>
    %223 = vector.multi_reduction <add>, %222, %cst_130 [1] : vector<16x128xf32> to vector<16xf32>
    %224 = vector.shape_cast %223 : vector<16xf32> to vector<16x1xf32>
    %cst_131 = arith.constant 7.812500e-03 : f32
    %225 = vector.broadcast %cst_131 : f32 to vector<16x1xf32>
    %226 = arith.mulf %221, %225 : vector<16x1xf32>
    %cst_132 = arith.constant 7.812500e-03 : f32
    %227 = vector.broadcast %cst_132 : f32 to vector<16x1xf32>
    %228 = arith.mulf %224, %227 : vector<16x1xf32>
    %229 = arith.mulf %226, %226 : vector<16x1xf32>
    %230 = arith.subf %228, %229 : vector<16x1xf32>
    %cst_133 = arith.constant 0.000000e+00 : f32
    %231 = vector.broadcast %cst_133 : f32 to vector<16x1xf32>
    %232 = arith.maximumf %230, %231 : vector<16x1xf32>
    %233 = vector.broadcast %226 : vector<16x1xf32> to vector<16x128xf32>
    %234 = arith.subf %215, %233 : vector<16x128xf32>
    %cst_134 = arith.constant 9.99999974E-6 : f32
    %235 = vector.broadcast %cst_134 : f32 to vector<16x1xf32>
    %236 = arith.addf %232, %235 : vector<16x1xf32>
    %237 = math.rsqrt %236 : vector<16x1xf32>
    %238 = arith.mulf %237, %217 : vector<16x1xf32>
    %239 = vector.broadcast %238 : vector<16x1xf32> to vector<16x128xf32>
    %240 = arith.mulf %234, %239 : vector<16x128xf32>
    %241 = vector.broadcast %219 : vector<16x1xf32> to vector<16x128xf32>
    %242 = arith.addf %240, %241 : vector<16x128xf32>
    %cst_135 = arith.constant 0.000000e+00 : f32
    %243 = vector.broadcast %cst_135 : f32 to vector<16x128xf32>
    %244 = arith.maximumf %242, %243 : vector<16x128xf32>
    %c127_i32_136 = arith.constant 127 : i32
    %245 = tpu.dynamic_rotate %244 by %c127_i32_136 dim 1 : vector<16x128xf32>, i32 -> vector<16x128xf32>
    %246 = arith.maximumf %244, %245 : vector<16x128xf32>
    %c120_i32_137 = arith.constant 120 : i32
    %247 = tpu.dynamic_rotate %246 by %c120_i32_137 dim 1 : vector<16x128xf32>, i32 -> vector<16x128xf32>
    %248 = arith.maximumf %246, %247 : vector<16x128xf32>
    %249 = arith.truncf %248 : vector<16x128xf32> to vector<16x128xbf16>
    %c0_138 = arith.constant 0 : index
    %c0_139 = arith.constant 0 : index
    %250 = vector.load %arg6[%c0_138, %c0_139] : memref<128x32xbf16, #tpu.memory_space<vmem>>, vector<128x32xbf16>
    %cst_140 = arith.constant dense<0.000000e+00> : vector<16x32xf32>
    %251 = tpu.matmul %249, %250, %cst_140 {dimension_numbers = #tpu.dot_dimension_numbers<[1], [0], [0], [1], [0, 0, 1, 1], [], []>} : vector<16x128xbf16>, vector<128x32xbf16>, vector<16x32xf32> -> vector<16x32xf32>
    %252 = arith.truncf %251 : vector<16x32xf32> to vector<16x32xbf16>
    %c0_141 = arith.constant 0 : index
    %c0_142 = arith.constant 0 : index
    %c0_143 = arith.constant 0 : index
    %253 = vector.load %arg4[%c0_141, %c0_142, %c0_143] : memref<9x32x32xbf16, #tpu.memory_space<vmem>>, vector<1x32x32xbf16>
    %254 = vector.shape_cast %253 : vector<1x32x32xbf16> to vector<32x32xbf16>
    %cst_144 = arith.constant dense<0.000000e+00> : vector<16x32xf32>
    %255 = tpu.matmul %252, %254, %cst_144 {dimension_numbers = #tpu.dot_dimension_numbers<[1], [0], [0], [1], [0, 0, 1, 1], [], []>} : vector<16x32xbf16>, vector<32x32xbf16>, vector<16x32xf32> -> vector<16x32xf32>
    %c0_145 = arith.constant 0 : index
    %c0_146 = arith.constant 0 : index
    %256 = vector.load %arg20[%c0_145, %c0_146] : memref<144x32xf32, #tpu.memory_space<vmem>>, vector<16x32xf32>
    tpu.vector_store %arg20[%c0_145, %c0_146], %255 {strides = array<i32>} : memref<144x32xf32, #tpu.memory_space<vmem>>, vector<16x32xf32>,
    %c1_147 = arith.constant 1 : index
    %c0_148 = arith.constant 0 : index
    %c0_149 = arith.constant 0 : index
    %257 = vector.load %arg4[%c1_147, %c0_148, %c0_149] : memref<9x32x32xbf16, #tpu.memory_space<vmem>>, vector<1x32x32xbf16>
    %258 = vector.shape_cast %257 : vector<1x32x32xbf16> to vector<32x32xbf16>
    %cst_150 = arith.constant dense<0.000000e+00> : vector<16x32xf32>
    %259 = tpu.matmul %252, %258, %cst_150 {dimension_numbers = #tpu.dot_dimension_numbers<[1], [0], [0], [1], [0, 0, 1, 1], [], []>} : vector<16x32xbf16>, vector<32x32xbf16>, vector<16x32xf32> -> vector<16x32xf32>
    %c16_151 = arith.constant 16 : index
    %c0_152 = arith.constant 0 : index
    %260 = vector.load %arg20[%c16_151, %c0_152] : memref<144x32xf32, #tpu.memory_space<vmem>>, vector<16x32xf32>
    tpu.vector_store %arg20[%c16_151, %c0_152], %259 {strides = array<i32>} : memref<144x32xf32, #tpu.memory_space<vmem>>, vector<16x32xf32>,
    %c2_153 = arith.constant 2 : index
    %c0_154 = arith.constant 0 : index
    %c0_155 = arith.constant 0 : index
    %261 = vector.load %arg4[%c2_153, %c0_154, %c0_155] : memref<9x32x32xbf16, #tpu.memory_space<vmem>>, vector<1x32x32xbf16>
    %262 = vector.shape_cast %261 : vector<1x32x32xbf16> to vector<32x32xbf16>
    %cst_156 = arith.constant dense<0.000000e+00> : vector<16x32xf32>
    %263 = tpu.matmul %252, %262, %cst_156 {dimension_numbers = #tpu.dot_dimension_numbers<[1], [0], [0], [1], [0, 0, 1, 1], [], []>} : vector<16x32xbf16>, vector<32x32xbf16>, vector<16x32xf32> -> vector<16x32xf32>
    %c32_157 = arith.constant 32 : index
    %c0_158 = arith.constant 0 : index
    %264 = vector.load %arg20[%c32_157, %c0_158] : memref<144x32xf32, #tpu.memory_space<vmem>>, vector<16x32xf32>
    tpu.vector_store %arg20[%c32_157, %c0_158], %263 {strides = array<i32>} : memref<144x32xf32, #tpu.memory_space<vmem>>, vector<16x32xf32>,
    %c3_159 = arith.constant 3 : index
    %c0_160 = arith.constant 0 : index
    %c0_161 = arith.constant 0 : index
    %265 = vector.load %arg4[%c3_159, %c0_160, %c0_161] : memref<9x32x32xbf16, #tpu.memory_space<vmem>>, vector<1x32x32xbf16>
    %266 = vector.shape_cast %265 : vector<1x32x32xbf16> to vector<32x32xbf16>
    %cst_162 = arith.constant dense<0.000000e+00> : vector<16x32xf32>
    %267 = tpu.matmul %252, %266, %cst_162 {dimension_numbers = #tpu.dot_dimension_numbers<[1], [0], [0], [1], [0, 0, 1, 1], [], []>} : vector<16x32xbf16>, vector<32x32xbf16>, vector<16x32xf32> -> vector<16x32xf32>
    %c48_163 = arith.constant 48 : index
    %c0_164 = arith.constant 0 : index
    %268 = vector.load %arg20[%c48_163, %c0_164] : memref<144x32xf32, #tpu.memory_space<vmem>>, vector<16x32xf32>
    tpu.vector_store %arg20[%c48_163, %c0_164], %267 {strides = array<i32>} : memref<144x32xf32, #tpu.memory_space<vmem>>, vector<16x32xf32>,
    %c4_165 = arith.constant 4 : index
    %c0_166 = arith.constant 0 : index
    %c0_167 = arith.constant 0 : index
    %269 = vector.load %arg4[%c4_165, %c0_166, %c0_167] : memref<9x32x32xbf16, #tpu.memory_space<vmem>>, vector<1x32x32xbf16>
    %270 = vector.shape_cast %269 : vector<1x32x32xbf16> to vector<32x32xbf16>
    %cst_168 = arith.constant dense<0.000000e+00> : vector<16x32xf32>
    %271 = tpu.matmul %252, %270, %cst_168 {dimension_numbers = #tpu.dot_dimension_numbers<[1], [0], [0], [1], [0, 0, 1, 1], [], []>} : vector<16x32xbf16>, vector<32x32xbf16>, vector<16x32xf32> -> vector<16x32xf32>
    %c64_169 = arith.constant 64 : index
    %c0_170 = arith.constant 0 : index
    %272 = vector.load %arg20[%c64_169, %c0_170] : memref<144x32xf32, #tpu.memory_space<vmem>>, vector<16x32xf32>
    tpu.vector_store %arg20[%c64_169, %c0_170], %271 {strides = array<i32>} : memref<144x32xf32, #tpu.memory_space<vmem>>, vector<16x32xf32>,
    %c5_171 = arith.constant 5 : index
    %c0_172 = arith.constant 0 : index
    %c0_173 = arith.constant 0 : index
    %273 = vector.load %arg4[%c5_171, %c0_172, %c0_173] : memref<9x32x32xbf16, #tpu.memory_space<vmem>>, vector<1x32x32xbf16>
    %274 = vector.shape_cast %273 : vector<1x32x32xbf16> to vector<32x32xbf16>
    %cst_174 = arith.constant dense<0.000000e+00> : vector<16x32xf32>
    %275 = tpu.matmul %252, %274, %cst_174 {dimension_numbers = #tpu.dot_dimension_numbers<[1], [0], [0], [1], [0, 0, 1, 1], [], []>} : vector<16x32xbf16>, vector<32x32xbf16>, vector<16x32xf32> -> vector<16x32xf32>
    %c80_175 = arith.constant 80 : index
    %c0_176 = arith.constant 0 : index
    %276 = vector.load %arg20[%c80_175, %c0_176] : memref<144x32xf32, #tpu.memory_space<vmem>>, vector<16x32xf32>
    tpu.vector_store %arg20[%c80_175, %c0_176], %275 {strides = array<i32>} : memref<144x32xf32, #tpu.memory_space<vmem>>, vector<16x32xf32>,
    %c6_177 = arith.constant 6 : index
    %c0_178 = arith.constant 0 : index
    %c0_179 = arith.constant 0 : index
    %277 = vector.load %arg4[%c6_177, %c0_178, %c0_179] : memref<9x32x32xbf16, #tpu.memory_space<vmem>>, vector<1x32x32xbf16>
    %278 = vector.shape_cast %277 : vector<1x32x32xbf16> to vector<32x32xbf16>
    %cst_180 = arith.constant dense<0.000000e+00> : vector<16x32xf32>
    %279 = tpu.matmul %252, %278, %cst_180 {dimension_numbers = #tpu.dot_dimension_numbers<[1], [0], [0], [1], [0, 0, 1, 1], [], []>} : vector<16x32xbf16>, vector<32x32xbf16>, vector<16x32xf32> -> vector<16x32xf32>
    %c96_181 = arith.constant 96 : index
    %c0_182 = arith.constant 0 : index
    %280 = vector.load %arg20[%c96_181, %c0_182] : memref<144x32xf32, #tpu.memory_space<vmem>>, vector<16x32xf32>
    tpu.vector_store %arg20[%c96_181, %c0_182], %279 {strides = array<i32>} : memref<144x32xf32, #tpu.memory_space<vmem>>, vector<16x32xf32>,
    %c7_183 = arith.constant 7 : index
    %c0_184 = arith.constant 0 : index
    %c0_185 = arith.constant 0 : index
    %281 = vector.load %arg4[%c7_183, %c0_184, %c0_185] : memref<9x32x32xbf16, #tpu.memory_space<vmem>>, vector<1x32x32xbf16>
    %282 = vector.shape_cast %281 : vector<1x32x32xbf16> to vector<32x32xbf16>
    %cst_186 = arith.constant dense<0.000000e+00> : vector<16x32xf32>
    %283 = tpu.matmul %252, %282, %cst_186 {dimension_numbers = #tpu.dot_dimension_numbers<[1], [0], [0], [1], [0, 0, 1, 1], [], []>} : vector<16x32xbf16>, vector<32x32xbf16>, vector<16x32xf32> -> vector<16x32xf32>
    %c112_187 = arith.constant 112 : index
    %c0_188 = arith.constant 0 : index
    %284 = vector.load %arg20[%c112_187, %c0_188] : memref<144x32xf32, #tpu.memory_space<vmem>>, vector<16x32xf32>
    tpu.vector_store %arg20[%c112_187, %c0_188], %283 {strides = array<i32>} : memref<144x32xf32, #tpu.memory_space<vmem>>, vector<16x32xf32>,
    %c8_189 = arith.constant 8 : index
    %c0_190 = arith.constant 0 : index
    %c0_191 = arith.constant 0 : index
    %285 = vector.load %arg4[%c8_189, %c0_190, %c0_191] : memref<9x32x32xbf16, #tpu.memory_space<vmem>>, vector<1x32x32xbf16>
    %286 = vector.shape_cast %285 : vector<1x32x32xbf16> to vector<32x32xbf16>
    %cst_192 = arith.constant dense<0.000000e+00> : vector<16x32xf32>
    %287 = tpu.matmul %252, %286, %cst_192 {dimension_numbers = #tpu.dot_dimension_numbers<[1], [0], [0], [1], [0, 0, 1, 1], [], []>} : vector<16x32xbf16>, vector<32x32xbf16>, vector<16x32xf32> -> vector<16x32xf32>
    %c128_193 = arith.constant 128 : index
    %c0_194 = arith.constant 0 : index
    %288 = vector.load %arg20[%c128_193, %c0_194] : memref<144x32xf32, #tpu.memory_space<vmem>>, vector<16x32xf32>
    tpu.vector_store %arg20[%c128_193, %c0_194], %287 {strides = array<i32>} : memref<144x32xf32, #tpu.memory_space<vmem>>, vector<16x32xf32>,
    %c0_195 = arith.constant 0 : index
    %c0_196 = arith.constant 0 : index
    %c0_197 = arith.constant 0 : index
    %289 = vector.load %arg14[%c0_195, %c0_196, %c0_197] : memref<1x32x144xbf16, #tpu.memory_space<vmem>>, vector<1x32x144xbf16>
    %290 = vector.shape_cast %289 : vector<1x32x144xbf16> to vector<32x144xbf16>
    %c0_198 = arith.constant 0 : index
    %c0_199 = arith.constant 0 : index
    %291 = vector.load %arg20[%c0_198, %c0_199] : memref<144x32xf32, #tpu.memory_space<vmem>>, vector<144x32xf32>
    %292 = arith.truncf %291 : vector<144x32xf32> to vector<144x32xbf16>
    %cst_200 = arith.constant dense<0.000000e+00> : vector<32x32xf32>
    %293 = tpu.matmul %290, %292, %cst_200 {dimension_numbers = #tpu.dot_dimension_numbers<[1], [0], [0], [1], [0, 0, 1, 1], [], []>} : vector<32x144xbf16>, vector<144x32xbf16>, vector<32x32xf32> -> vector<32x32xf32>
    %c0_201 = arith.constant 0 : index
    %c0_202 = arith.constant 0 : index
    %c0_203 = arith.constant 0 : index
    %294 = vector.load %arg15[%c0_201, %c0_202, %c0_203] : memref<1x32x1xf32, #tpu.memory_space<vmem>>, vector<1x32x1xf32>
    %295 = vector.shape_cast %294 : vector<1x32x1xf32> to vector<32x1xf32>
    %c0_204 = arith.constant 0 : index
    %c0_205 = arith.constant 0 : index
    %c0_206 = arith.constant 0 : index
    %296 = vector.load %arg16[%c0_204, %c0_205, %c0_206] : memref<1x32x1xf32, #tpu.memory_space<vmem>>, vector<1x32x1xf32>
    %297 = vector.shape_cast %296 : vector<1x32x1xf32> to vector<32x1xf32>
    %cst_207 = arith.constant dense<0.000000e+00> : vector<32xf32>
    %298 = vector.multi_reduction <add>, %293, %cst_207 [1] : vector<32x32xf32> to vector<32xf32>
    %299 = vector.shape_cast %298 : vector<32xf32> to vector<32x1xf32>
    %300 = arith.mulf %293, %293 : vector<32x32xf32>
    %cst_208 = arith.constant dense<0.000000e+00> : vector<32xf32>
    %301 = vector.multi_reduction <add>, %300, %cst_208 [1] : vector<32x32xf32> to vector<32xf32>
    %302 = vector.shape_cast %301 : vector<32xf32> to vector<32x1xf32>
    %cst_209 = arith.constant 3.125000e-02 : f32
    %303 = vector.broadcast %cst_209 : f32 to vector<32x1xf32>
    %304 = arith.mulf %299, %303 : vector<32x1xf32>
    %cst_210 = arith.constant 3.125000e-02 : f32
    %305 = vector.broadcast %cst_210 : f32 to vector<32x1xf32>
    %306 = arith.mulf %302, %305 : vector<32x1xf32>
    %307 = arith.mulf %304, %304 : vector<32x1xf32>
    %308 = arith.subf %306, %307 : vector<32x1xf32>
    %cst_211 = arith.constant 0.000000e+00 : f32
    %309 = vector.broadcast %cst_211 : f32 to vector<32x1xf32>
    %310 = arith.maximumf %308, %309 : vector<32x1xf32>
    %311 = vector.broadcast %304 : vector<32x1xf32> to vector<32x32xf32>
    %312 = arith.subf %293, %311 : vector<32x32xf32>
    %cst_212 = arith.constant 9.99999974E-6 : f32
    %313 = vector.broadcast %cst_212 : f32 to vector<32x1xf32>
    %314 = arith.addf %310, %313 : vector<32x1xf32>
    %315 = math.rsqrt %314 : vector<32x1xf32>
    %316 = arith.mulf %315, %295 : vector<32x1xf32>
    %317 = vector.broadcast %316 : vector<32x1xf32> to vector<32x32xf32>
    %318 = arith.mulf %312, %317 : vector<32x32xf32>
    %319 = vector.broadcast %297 : vector<32x1xf32> to vector<32x32xf32>
    %320 = arith.addf %318, %319 : vector<32x32xf32>
    %cst_213 = arith.constant 0.000000e+00 : f32
    %321 = vector.broadcast %cst_213 : f32 to vector<32x32xf32>
    %322 = arith.maximumf %320, %321 : vector<32x32xf32>
    %c0_214 = arith.constant 0 : index
    %c0_215 = arith.constant 0 : index
    %323 = vector.load %arg7[%c0_214, %c0_215] : memref<32x2xf32, #tpu.memory_space<vmem>>, vector<32x2xf32>
    %cst_216 = arith.constant dense<0.000000e+00> : vector<32x2xf32>
    %324 = tpu.matmul %322, %323, %cst_216 {dimension_numbers = #tpu.dot_dimension_numbers<[1], [0], [0], [1], [0, 0, 1, 1], [], []>} : vector<32x32xf32>, vector<32x2xf32>, vector<32x2xf32> -> vector<32x2xf32>
    %c0_217 = arith.constant 0 : index
    %c0_218 = arith.constant 0 : index
    %c0_219 = arith.constant 0 : index
    %325 = vector.load %arg17[%c0_217, %c0_218, %c0_219] : memref<1x32x2xf32, #tpu.memory_space<vmem>>, vector<1x32x2xf32>
    %326 = vector.shape_cast %325 : vector<1x32x2xf32> to vector<32x2xf32>
    %327 = vector.shape_cast %324 : vector<32x2xf32> to vector<1x32x2xf32>
    tpu.vector_store %arg17[%c0_217, %c0_218, %c0_219], %327 {strides = array<i32>} : memref<1x32x2xf32, #tpu.memory_space<vmem>>, vector<1x32x2xf32>,
    return
  }
  func.func @transform_0(%arg0: i32) -> (i32, i32, i32) {
    %c0_i32 = arith.constant 0 : i32
    %c0_i32_0 = arith.constant 0 : i32
    %c0_i32_1 = arith.constant 0 : i32
    return %arg0, %c0_i32, %c0_i32_0 : i32, i32, i32
  }
  func.func @transform_1(%arg0: i32) -> (i32, i32) {
    %c0_i32 = arith.constant 0 : i32
    %c0_i32_0 = arith.constant 0 : i32
    %c0_i32_1 = arith.constant 0 : i32
    return %c0_i32, %c0_i32_0 : i32, i32
  }
  func.func @transform_2(%arg0: i32) -> (i32, i32) {
    %c0_i32 = arith.constant 0 : i32
    %c0_i32_0 = arith.constant 0 : i32
    %c0_i32_1 = arith.constant 0 : i32
    return %c0_i32, %c0_i32_0 : i32, i32
  }
  func.func @transform_3(%arg0: i32) -> (i32, i32, i32) {
    %c0_i32 = arith.constant 0 : i32
    %c0_i32_0 = arith.constant 0 : i32
    %c0_i32_1 = arith.constant 0 : i32
    %c0_i32_2 = arith.constant 0 : i32
    return %c0_i32, %c0_i32_0, %c0_i32_1 : i32, i32, i32
  }
  func.func @transform_4(%arg0: i32) -> (i32, i32) {
    %c0_i32 = arith.constant 0 : i32
    %c0_i32_0 = arith.constant 0 : i32
    %c0_i32_1 = arith.constant 0 : i32
    return %c0_i32, %c0_i32_0 : i32, i32
  }
  func.func @transform_5(%arg0: i32) -> (i32, i32) {
    %c0_i32 = arith.constant 0 : i32
    %c0_i32_0 = arith.constant 0 : i32
    %c0_i32_1 = arith.constant 0 : i32
    return %c0_i32, %c0_i32_0 : i32, i32
  }
  func.func @transform_6(%arg0: i32) -> (i32, i32) {
    %c0_i32 = arith.constant 0 : i32
    %c0_i32_0 = arith.constant 0 : i32
    %c0_i32_1 = arith.constant 0 : i32
    return %c0_i32, %c0_i32_0 : i32, i32
  }
  func.func @transform_7(%arg0: i32) -> (i32, i32, i32) {
    %c0_i32 = arith.constant 0 : i32
    %c0_i32_0 = arith.constant 0 : i32
    %c0_i32_1 = arith.constant 0 : i32
    return %arg0, %c0_i32, %c0_i32_0 : i32, i32, i32
  }
  func.func @transform_8(%arg0: i32) -> (i32, i32, i32) {
    %c0_i32 = arith.constant 0 : i32
    %c0_i32_0 = arith.constant 0 : i32
    %c0_i32_1 = arith.constant 0 : i32
    return %arg0, %c0_i32, %c0_i32_0 : i32, i32, i32
  }
  func.func @transform_9(%arg0: i32) -> (i32, i32, i32) {
    %c0_i32 = arith.constant 0 : i32
    %c0_i32_0 = arith.constant 0 : i32
    %c0_i32_1 = arith.constant 0 : i32
    return %arg0, %c0_i32, %c0_i32_0 : i32, i32, i32
  }
  func.func @transform_10(%arg0: i32) -> (i32, i32, i32) {
    %c0_i32 = arith.constant 0 : i32
    %c0_i32_0 = arith.constant 0 : i32
    %c0_i32_1 = arith.constant 0 : i32
    return %arg0, %c0_i32, %c0_i32_0 : i32, i32, i32
  }
  func.func @transform_11(%arg0: i32) -> (i32, i32, i32) {
    %c0_i32 = arith.constant 0 : i32
    %c0_i32_0 = arith.constant 0 : i32
    %c0_i32_1 = arith.constant 0 : i32
    return %arg0, %c0_i32, %c0_i32_0 : i32, i32, i32
  }
  func.func @transform_12(%arg0: i32) -> (i32, i32, i32) {
    %c0_i32 = arith.constant 0 : i32
    %c0_i32_0 = arith.constant 0 : i32
    %c0_i32_1 = arith.constant 0 : i32
    return %arg0, %c0_i32, %c0_i32_0 : i32, i32, i32
  }
  func.func @transform_13(%arg0: i32) -> (i32, i32, i32) {
    %c0_i32 = arith.constant 0 : i32
    %c0_i32_0 = arith.constant 0 : i32
    %c0_i32_1 = arith.constant 0 : i32
    return %arg0, %c0_i32, %c0_i32_0 : i32, i32, i32
  }
  func.func @transform_14(%arg0: i32) -> (i32, i32, i32) {
    %c0_i32 = arith.constant 0 : i32
    %c0_i32_0 = arith.constant 0 : i32
    %c0_i32_1 = arith.constant 0 : i32
    return %arg0, %c0_i32, %c0_i32_0 : i32, i32, i32
  }
  func.func @transform_15(%arg0: i32) -> (i32, i32, i32) {
    %c0_i32 = arith.constant 0 : i32
    %c0_i32_0 = arith.constant 0 : i32
    %c0_i32_1 = arith.constant 0 : i32
    return %arg0, %c0_i32, %c0_i32_0 : i32, i32, i32
  }
  func.func @transform_16(%arg0: i32) -> (i32, i32, i32) {
    %c0_i32 = arith.constant 0 : i32
    %c0_i32_0 = arith.constant 0 : i32
    %c0_i32_1 = arith.constant 0 : i32
    return %arg0, %c0_i32, %c0_i32_0 : i32, i32, i32
  }
}

</mosaic_0001>

<bundles_post_ra>
// kernel: simple_avnet_forward.1
= control target key start
LH: loop header
LB: loop body
LE: loop exit
PB: predicated region body
PF: predicated region fallthrough
CT: control target
= control target key end

     0   :  { %s4522_s21 = smov 0   ;;  %s5753_s0 = inlined_call_operand.vmem [shape: f32[2,8,512], index: 0, kind: input, shape index: {}]   ;;  %s5754_s1 = inlined_call_operand.vmem [shape: f32[25,512], index: 1, kind: input, shape index: {}]   ;;  %s5755_s2 = inlined_call_operand.vmem [shape: f32[9,128], index: 2, kind: input, shape index: {}]   ;;  %s5756_s3 = inlined_call_operand.vmem [shape: bf16[9,32,32], index: 3, kind: input, shape index: {}]   ;;  %s5757_s4 = inlined_call_operand.vmem [shape: bf16[512,128], index: 4, kind: input, shape index: {}]   ;;  %s5758_s5 = inlined_call_operand.vmem [shape: bf16[128,32], index: 5, kind: input, shape index: {}]   ;;  %s5759_s6 = inlined_call_operand.vmem [shape: f32[32,2], index: 6, kind: input, shape index: {}]   ;;  %s5760_s7 = inlined_call_operand.vmem [shape: bf16[2,8,200], index: 7, kind: input, shape index: {}]   ;;  %s5761_s8 = inlined_call_operand.vmem [shape: f32[2,8,1], index: 8, kind: input, shape index: {}]   ;;  %s5762_s9 = inlined_call_operand.vmem [shape: f32[2,8,1], index: 9, kind: input, shape index: {}]   ;;  %s5763_s10 = inlined_call_operand.vmem [shape: bf16[2,16,72], index: 10, kind: input, shape index: {}]   ;;  %s5764_s11 = inlined_call_operand.vmem [shape: f32[2,16,1], index: 11, kind: input, shape index: {}]   ;;  %s5765_s12 = inlined_call_operand.vmem [shape: f32[2,16,1], index: 12, kind: input, shape index: {}]   ;;  %s5766_s13 = inlined_call_operand.vmem [shape: bf16[2,32,144], index: 13, kind: input, shape index: {}]   ;;  %s5767_s14 = inlined_call_operand.vmem [shape: f32[2,32,1], index: 14, kind: input, shape index: {}]   ;;  %s5768_s15 = inlined_call_operand.vmem [shape: f32[2,32,1], index: 15, kind: input, shape index: {}]   ;;  %s5769_s16 = inlined_call_operand.vmem [shape: f32[2,32,2], index: 16, kind: output, shape index: {}]  }
   0x1   :  { %5775 = sst [smem:[#allocation5_spill]] %s5753_s0 }
   0x2   :  { %5776 = sst [smem:[#allocation6_spill]] %s5754_s1 }
   0x3 LB: > { %s3834_s22 = sadd.s32 4294967295, %s4402_s21   ;;  %p3838_p0 = scmp.ge.s32.totalorder %s4402_s21, 1  ;;  %s4402_s21 = sphi %s4522_s21, %s26_s21  }
   0x4   : > { %p550_p1 = scmp.lt.s32.totalorder %s4402_s21, 3 }
   0x6   : > { %p551_p2 = pnand %p3838_p0, %p550_p1 }
   0x7   : > { %p643_p3 = scmp.lt.s32.totalorder (!%p551_p2), %s3834_s22, 1  ;;  %s5777_s26 = sld [smem:[#allocation5_spill]] (!%p551_p2) }
   0x8   : > { %554 = sbr.rel (%p551_p2) target bundleno = 3328 (0xd00), region = 84  ;;  %s4404_s28 = smov (!%p551_p2), 114  }
   0x9   : > { %s4405_s29 = smov (!%p551_p2), 126   ;;  %s5773_s30 = smov (!%p551_p2), 127  }
   0xa   : > { %s4407_s0 = smov (!%p551_p2), 2   ;;  %s5770_s17 = smov (!%p551_p2), 1  }
   0xb   : > { %s4409_s18 = smov (!%p551_p2), 15   ;;  %s4410_s19 = smov (!%p551_p2), 14  }
   0xc   : > { %s4411_s20 = smov (!%p551_p2), 17   ;;  %s4412_s24 = smov (!%p551_p2), 16  }
   0xd   : > { %s5784_s22 = smov (!%p643_p3, %s3834_s22), 1  ;;  %s4413_s25 = smov 30   ;;  %v709_v4 = vlaneseq  ;;  %vm1948_vm9 = vcmask 588800  }
   0xe   : > { %s4533_s23 = sshll.u32 %s5784_s22, 5  ;;  %s5778_s1 = sld [smem:[#allocation6_spill]] }
   0xf   : > { %s647_s27 = scalar_lea.vmem %s5777_s26, %s4533_s23  ;;  %s4414_s26 = smov 18   ;;  %v719_v5 = vshrl.u32 %v709_v4, 7  ;;  %v4613_v6 = vand.u32 127, %v709_v4 }
  0x10   : > { %v4539_v0 = vld [vmem:[%s647_s27 + $0x8] sm:$0xff]  ;;  %v4543_v1 = vld [vmem:[%s647_s27 + $0x10] sm:$0xff]  ;;  %v4545_v2 = vld [vmem:[%s647_s27] sm:$0xff] }
  0x11   : > { %1351 = vrot.lane.b32.xlu1 %v4539_v0, %s4404_s28  ;;  %1307 = vrot.lane.b32.xlu0 %v4539_v0, %s4405_s29  ;;  %v4551_v3 = vld [vmem:[%s647_s27 + $0x18] sm:$0xff]  ;;  %s4415_s27 = smov 32   ;;  %v4615_v7 = vsub.s32 1, %v719_v5  ;;  %v4627_v12 = vsub.s32 0, %v719_v5  ;;  %vm1357_vm0 = vcmp.lt.s32.totalorder %v4613_v6, 114  ;;  %vm1313_vm1 = vcmp.lt.s32.totalorder %v4613_v6, 126 }
  0x12   : > { %v4665_v31 = vsub.s32 2, %v719_v5  ;;  %v4667_v32 = vsub.s32 3, %v719_v5  ;;  %vm1269_vm2 = vcmp.lt.s32.totalorder %v4613_v6, 127  ;;  %vm1150_vm3 = vcmp.lt.s32.totalorder %v4613_v6, 2 }
  0x13   : > { %vm1194_vm4 = vcmp.lt.s32.totalorder %v4613_v6, 1  ;;  %vm1062_vm5 = vcmp.lt.s32.totalorder %v4613_v6, 15  ;;  %vm1106_vm6 = vcmp.lt.s32.totalorder %v4613_v6, 14  ;;  %vm974_vm7 = vcmp.lt.s32.totalorder %v4613_v6, 17 }
  0x14   : > { %v4620_v8 = vld [vmem:[%s5778_s1 + $0x26] ss:$8 sm:$0xf]  ;;  %v4625_v9 = vld [vmem:[%s5778_s1 + $0x27] ss:$8 sm:$0xf] }
  0x15   : > { %1353 = vrot.lane.b32.xlu1 %v4543_v1, %s4404_s28  ;;  %1309 = vrot.lane.b32.xlu0 %v4543_v1, %s4405_s29  ;;  %v1328_v13 = vrot.slane %v4620_v8, %v4615_v7  ;;  %v1372_v14 = vrot.slane %v4625_v9, %v4615_v7  ;;  %v1324_v19 = vrot.slane %v4620_v8, %v4627_v12  ;;  %v4646_v20 = vld [vmem:[%s5778_s1 + $0x24] ss:$8 sm:$0xf]  ;;  %v4657_v24 = vld [vmem:[%s5778_s1 + $0x25] ss:$8 sm:$0xf] }
  0x16   : > { %v1368_v23 = vrot.slane %v4625_v9, %v4627_v12  ;;  %v1240_v28 = vrot.slane %v4646_v20, %v4615_v7  ;;  %v1284_v33 = vrot.slane %v4657_v24, %v4615_v7  ;;  %v1336_v41 = vrot.slane %v4620_v8, %v4667_v32 }
  0x17   : > { %v1380_v43 = vrot.slane %v4625_v9, %v4667_v32  ;;  %v1332_v44 = vrot.slane %v4620_v8, %v4665_v31  ;;  %v1376_v45 = vrot.slane %v4625_v9, %v4665_v31  ;;  %v1280_v49 = vrot.slane %v4657_v24, %v4627_v12  ;;  %v4718_v8 = vld [vmem:[%s5778_s1 + $0x22] ss:$8 sm:$0xf]  ;;  %v4725_v9 = vld [vmem:[%s5778_s1 + $0x23] ss:$8 sm:$0xf] }
  0x18   : > { %v1254_v39 = vmul.f32 %v1240_v28, %v4539_v0  ;;  %v1236_v50 = vrot.slane %v4646_v20, %v4627_v12  ;;  %vm1018_vm8 = vcmp.lt.s32.totalorder %v4613_v6, 16  ;;  %vm886_vm10 = vcmp.lt.s32.totalorder %v4613_v6, 30 }
  0x19   : > { %1349 = vrot.lane.b32.xlu1 %v4545_v2, %s4404_s28  ;;  %1305 = vrot.lane.b32.xlu0 %v4545_v2, %s4405_s29  ;;  %vm930_vm11 = vcmp.lt.s32.totalorder %v4613_v6, 18  ;;  %vm798_vm12 = vcmp.lt.s32.totalorder %v4613_v6, 32  ;;  %vm842_vm13 = vcmp.lt.s32.totalorder %v4613_v6, 31  ;;  %vm711_vm14 = vcmp.lt.s32.totalorder %v4613_v6, 34 }
  0x1a   : > { %v1253_v62 = vmul.f32 %v1236_v50, %v4545_v2  ;;  %vm754_vm15 = vcmp.lt.s32.totalorder %v4613_v6, 33 }
  0x1d   : > { %1265 = vrot.lane.b32.xlu1 %v4543_v1, %s5773_s30  ;;  %1263 = vrot.lane.b32.xlu0 %v4539_v0, %s5773_s30 }
  0x21   : > { %1355 = vrot.lane.b32.xlu1 %v4551_v3, %s4404_s28  ;;  %1311 = vrot.lane.b32.xlu0 %v4551_v3, %s4405_s29  ;;  %s4416_s28 = smov 31   ;;  %s4417_s29 = smov 34  }
  0x25   : > { %1142 = vrot.lane.b32.xlu1 %v4545_v2, %s4407_s0  ;;  %1261 = vrot.lane.b32.xlu0 %v4545_v2, %s5773_s30 }
  0x29   : > { %1186 = vrot.lane.b32.xlu1 %v4545_v2, %s5770_s17  ;;  %1144 = vrot.lane.b32.xlu0 %v4539_v0, %s4407_s0 }
  0x2d   : > { %1267 = vrot.lane.b32.xlu1 %v4551_v3, %s5773_s30  ;;  %1188 = vrot.lane.b32.xlu0 %v4539_v0, %s5770_s17 }
  0x31   : > { %1192 = vrot.lane.b32.xlu1 %v4551_v3, %s5770_s17  ;;  %1148 = vrot.lane.b32.xlu0 %v4551_v3, %s4407_s0 }
  0x35   : > { %1056 = vrot.lane.b32.xlu1 %v4539_v0, %s4409_s18  ;;  %1054 = vrot.lane.b32.xlu0 %v4545_v2, %s4409_s18 }
  0x39   : > { %1100 = vrot.lane.b32.xlu1 %v4539_v0, %s4410_s19  ;;  %1098 = vrot.lane.b32.xlu0 %v4545_v2, %s4410_s19 }
  0x3d   : > { %1190 = vrot.lane.b32.xlu1 %v4543_v1, %s5770_s17  ;;  %1146 = vrot.lane.b32.xlu0 %v4543_v1, %s4407_s0  ;;  %s4418_s0 = smov 33   ;;  %s4436_s17 = smov 8  }
  0x41   : > { %1104 = vrot.lane.b32.xlu1 %v4551_v3, %s4410_s19  ;;  %1060 = vrot.lane.b32.xlu0 %v4551_v3, %s4409_s18 }
  0x45   : > { %968 = vrot.lane.b32.xlu1 %v4539_v0, %s4411_s20  ;;  %966 = vrot.lane.b32.xlu0 %v4545_v2, %s4411_s20 }
  0x49   : > { %1012 = vrot.lane.b32.xlu1 %v4539_v0, %s4412_s24  ;;  %1010 = vrot.lane.b32.xlu0 %v4545_v2, %s4412_s24 }
  0x4d   : > { %1102 = vrot.lane.b32.xlu1 %v4543_v1, %s4410_s19  ;;  %1058 = vrot.lane.b32.xlu0 %v4543_v1, %s4409_s18  ;;  %s4421_s18 = smov 95  }
  0x51   : > { %1016 = vrot.lane.b32.xlu1 %v4551_v3, %s4412_s24  ;;  %972 = vrot.lane.b32.xlu0 %v4551_v3, %s4411_s20 }
  0x55   : > { %880 = vrot.lane.b32.xlu1 %v4539_v0, %s4413_s25  ;;  %878 = vrot.lane.b32.xlu0 %v4545_v2, %s4413_s25 }
  0x59   : > { %924 = vrot.lane.b32.xlu1 %v4539_v0, %s4414_s26  ;;  %922 = vrot.lane.b32.xlu0 %v4545_v2, %s4414_s26 }
  0x5d   : > { %1014 = vrot.lane.b32.xlu1 %v4543_v1, %s4412_s24  ;;  %970 = vrot.lane.b32.xlu0 %v4543_v1, %s4411_s20  ;;  %s5780_s20 = smov 112  }
  0x61   : > { %928 = vrot.lane.b32.xlu1 %v4551_v3, %s4414_s26  ;;  %884 = vrot.lane.b32.xlu0 %v4551_v3, %s4413_s25 }
  0x65   : > { %792 = vrot.lane.b32.xlu1 %v4539_v0, %s4415_s27  ;;  %790 = vrot.lane.b32.xlu0 %v4545_v2, %s4415_s27 }
  0x69   : > { %836 = vrot.lane.b32.xlu1 %v4539_v0, %s4416_s28  ;;  %834 = vrot.lane.b32.xlu0 %v4545_v2, %s4416_s28 }
  0x6d   : > { %926 = vrot.lane.b32.xlu1 %v4543_v1, %s4414_s26  ;;  %882 = vrot.lane.b32.xlu0 %v4543_v1, %s4413_s25  ;;  %s4422_s26 = smov 98   ;;  %s5771_s25 = smov 112  }
  0x71   : > { %840 = vrot.lane.b32.xlu1 %v4551_v3, %s4416_s28  ;;  %796 = vrot.lane.b32.xlu0 %v4551_v3, %s4415_s27 }
  0x75   : > { %703 = vrot.lane.b32.xlu1 %v4539_v0, %s4417_s29  ;;  %701 = vrot.lane.b32.xlu0 %v4545_v2, %s4417_s29 }
  0x79   : > { %748 = vrot.lane.b32.xlu1 %v4539_v0, %s4418_s0  ;;  %746 = vrot.lane.b32.xlu0 %v4545_v2, %s4418_s0 }
  0x7d   : > { %838 = vrot.lane.b32.xlu1 %v4543_v1, %s4416_s28  ;;  %794 = vrot.lane.b32.xlu0 %v4543_v1, %s4415_s27  ;;  %s4419_s27 = smov 94  }
  0x81   : > { %752 = vrot.lane.b32.xlu1 %v4551_v3, %s4418_s0  ;;  %707 = vrot.lane.b32.xlu0 %v4551_v3, %s4417_s29 }
  0x83   : > { %v1352_v10 = vpop.permute.xlu1 %1351  ;;  %v1308_v11 = vpop.permute.xlu0 %1307 }
  0x85   : > { %750 = vrot.lane.b32.xlu1 %v4543_v1, %s4418_s0  ;;  %705 = vrot.lane.b32.xlu0 %v4543_v1, %s4417_s29  ;;  %s4420_s0 = smov 96   ;;  %s4434_s29 = smov 9  }
  0x87   : > { %v1354_v15 = vpop.permute.xlu1 %1353  ;;  %v1310_v16 = vpop.permute.xlu0 %1309 }
  0x88   : > { %v1315_v17 = vsel %vm1313_vm1, %v1308_v11, %v1310_v16  ;;  %v1359_v18 = vsel %vm1357_vm0, %v1352_v10, %v1354_v15 }
  0x89   : > { %1747 = vrot.lane.b32.xlu1 %v4539_v0, %s4419_s27  ;;  %1745 = vrot.lane.b32.xlu0 %v4545_v2, %s4419_s27  ;;  %v1342_v21 = vmul.f32 %v1328_v13, %v1315_v17  ;;  %v1386_v22 = vmul.f32 %v1372_v14, %v1359_v18  ;;  %v1248_v14 = vrot.slane %v4646_v20, %v4667_v32 }
  0x8a   : > { %v1288_v17 = vrot.slane %v4657_v24, %v4665_v31  ;;  %v1292_v18 = vrot.slane %v4657_v24, %v4667_v32 }
  0x8b   : > { %v1350_v25 = vpop.permute.xlu1 %1349  ;;  %v1306_v26 = vpop.permute.xlu0 %1305  ;;  %v1919_v27 = vpack.c.bf16 %v1386_v22, %v1342_v21 }
  0x8c   : > { %v1360_v29 = vsel %vm1357_vm0, %v1350_v25, %v1352_v10  ;;  %v1316_v30 = vsel %vm1313_vm1, %v1306_v26, %v1308_v11 }
  0x8d   : > { %1965 = vmatprep.subr.bf16.mxu0 %v1919_v27  ;;  %1659 = vrot.lane.b32.xlu1 %v4539_v0, %s4420_s0  ;;  %v1341_v34 = vmul.f32 %v1324_v19, %v1316_v30  ;;  %v1385_v35 = vmul.f32 %v1368_v23, %v1360_v29  ;;  %v1209_v19 = vrot.slane %v4725_v9, %v4615_v7 }
  0x8e   : > { %1749 = vrot.lane.b32.xlu0 %v4543_v1, %s4419_s27  ;;  %v1205_v23 = vrot.slane %v4725_v9, %v4627_v12  ;;  %v1161_v29 = vrot.slane %v4718_v8, %v4627_v12 }
  0x8f   : > { %v4676_v36 = vpop.permute.xlu1 %1265  ;;  %v1264_v37 = vpop.permute.xlu0 %1263  ;;  %v1918_v38 = vpack.c.bf16 %v1385_v35, %v1341_v34 }
  0x90   : > { %v1271_v40 = vsel %vm1269_vm2, %v1264_v37, %v4676_v36 }
  0x91   : > { %v1298_v42 = vmul.f32 %v1284_v33, %v1271_v40  ;;  %1703 = vrot.lane.b32.xlu1 %v4539_v0, %s4421_s18  ;;  %1966 = vmatpush1.bf16.msra.mxu0 %v1918_v38 }
  0x92   : > { %1661 = vrot.lane.b32.xlu0 %v4543_v1, %s4420_s0 }
  0x93   : > { %v1356_v46 = vpop.permute.xlu1 %1355  ;;  %v1312_v47 = vpop.permute.xlu0 %1311  ;;  %v1915_v48 = vpack.c.bf16 %v1298_v42, %v1254_v39 }
  0x94   : > { %v1358_v51 = vsel %vm1357_vm0, %v1354_v15, %v1356_v46  ;;  %v1314_v52 = vsel %vm1313_vm1, %v1310_v16, %v1312_v47  ;;  %v1317_v53 = vsel %vm1313_vm1, %v1312_v47, %v1306_v26  ;;  %v1361_v54 = vsel %vm1357_vm0, %v1356_v46, %v1350_v25  ;;  %v4783_v46 = vld [vmem:[%s5778_s1 + $0x21] ss:$8 sm:$0xf] }
  0x95   : > { %1751 = vrot.lane.b32.xlu1 %v4551_v3, %s4419_s27  ;;  %1967 = vmatprep.subr.bf16.mxu0 %v1915_v48  ;;  %v1344_v55 = vmul.f32 %v1336_v41, %v1317_v53  ;;  %v1388_v56 = vmul.f32 %v1380_v43, %v1361_v54  ;;  %v1343_v57 = vmul.f32 %v1332_v44, %v1314_v52  ;;  %s4423_s27 = smov 97   ;;  %vm1753_vm0 = vcmp.lt.s32.totalorder %v4613_v6, 94 }
  0x96   : > { %1705 = vrot.lane.b32.xlu0 %v4543_v1, %s4421_s18  ;;  %v1387_v58 = vmul.f32 %v1376_v45, %v1358_v51  ;;  %v1244_v15 = vrot.slane %v4646_v20, %v4665_v31  ;;  %v1165_v16 = vrot.slane %v4718_v8, %v4615_v7  ;;  %v1256_v25 = vmul.f32 %v1248_v14, %v4551_v3  ;;  %v4778_v45 = vld [vmem:[%s5778_s1 + $0x20] ss:$8 sm:$0xf] }
  0x97   : > { %v1143_v59 = vpop.permute.xlu1 %1142  ;;  %v1262_v60 = vpop.permute.xlu0 %1261  ;;  %v1921_v61 = vpack.c.bf16 %v1388_v56, %v1344_v55  ;;  %v1077_v50 = vrot.slane %v4778_v45, %v4615_v7  ;;  %v1121_v51 = vrot.slane %v4783_v46, %v4615_v7  ;;  %v1213_v56 = vrot.slane %v4725_v9, %v4665_v31 }
  0x98   : > { %v1272_v63 = vsel %vm1269_vm2, %v1262_v60, %v1264_v37  ;;  %v1920_v4 = vpack.c.bf16 %v1387_v58, %v1343_v57  ;;  %v1255_v24 = vmul.f32 %v1244_v15, %v4543_v1  ;;  %v1217_v57 = vrot.slane %v4725_v9, %v4667_v32 }
  0x99   : > { %v1297_v5 = vmul.f32 %v1280_v49, %v1272_v63  ;;  %1701 = vrot.lane.b32.xlu1 %v4545_v2, %s4421_s18  ;;  %2006 = vmatprep.subr.bf16.mxu1 %v1921_v61  ;;  %v1173_v61 = vrot.slane %v4718_v8, %v4667_v32  ;;  %v1073_v9 = vrot.slane %v4778_v45, %v4627_v12  ;;  %vm1952_vm1 = vcmask 1043456  }
  0x9a   : > { %1657 = vrot.lane.b32.xlu0 %v4545_v2, %s4420_s0  ;;  %2007 = vmatpush1.bf16.msra.mxu1 %v1920_v4 }
  0x9b   : > { %v1187_v10 = vpop.permute.xlu1 %1186  ;;  %v4728_v11 = vpop.permute.xlu0 %1144  ;;  %v1914_v13 = vpack.c.bf16 %v1297_v5, %v1253_v62  ;;  %v1117_v5 = vrot.slane %v4783_v46, %v4627_v12 }
  0x9c   : > { %v1153_v20 = vsel %vm1150_vm3, %v1143_v59, %v4728_v11 }
  0x9d   : > { %1573 = vrot.lane.b32.xlu1 %v4543_v1, %s4422_s26  ;;  %1968 = vmatpush1.bf16.msra.mxu0 %v1914_v13  ;;  %v1179_v30 = vmul.f32 %v1165_v16, %v1153_v20 }
  0x9e   : > { %1571 = vrot.lane.b32.xlu0 %v4539_v0, %s4422_s26 }
  0x9f   : > { %v1268_v21 = vpop.permute.xlu1 %1267  ;;  %v1189_v22 = vpop.permute.xlu0 %1188 }
  0xa0   : > { %v1270_v26 = vsel %vm1269_vm2, %v4676_v36, %v1268_v21  ;;  %v1273_v27 = vsel %vm1269_vm2, %v1268_v21, %v1262_v60  ;;  %v1197_v28 = vsel %vm1194_vm4, %v1187_v10, %v1189_v22  ;;  %v1169_v60 = vrot.slane %v4718_v8, %v4665_v31 }
  0xa1   : > { %v1299_v33 = vmul.f32 %v1288_v17, %v1270_v26  ;;  %v1300_v34 = vmul.f32 %v1292_v18, %v1273_v27  ;;  %v1223_v35 = vmul.f32 %v1209_v19, %v1197_v28  ;;  %1617 = vrot.lane.b32.xlu1 %v4543_v1, %s4423_s27  ;;  %v4845_v26 = vld [vmem:[%s5778_s1 + $0x6] ss:$8 sm:$0xf]  ;;  %v4850_v27 = vld [vmem:[%s5778_s1 + $0x7] ss:$8 sm:$0xf] }
  0xa2   : > { %1615 = vrot.lane.b32.xlu0 %v4539_v0, %s4423_s27 }
  0xa3   : > { %v1193_v36 = vpop.permute.xlu1 %1192  ;;  %v1149_v37 = vpop.permute.xlu0 %1148  ;;  %v1911_v38 = vpack.c.bf16 %v1223_v35, %v1179_v30  ;;  %v1917_v39 = vpack.c.bf16 %v1300_v34, %v1256_v25  ;;  %v1916_v40 = vpack.c.bf16 %v1299_v33, %v1255_v24  ;;  %v989_v33 = vrot.slane %v4845_v26, %v4615_v7 }
  0xa4   : > { %v1198_v41 = vsel %vm1194_vm4, %v1193_v36, %v1187_v10  ;;  %v1154_v42 = vsel %vm1150_vm3, %v1149_v37, %v1143_v59  ;;  %v1033_v34 = vrot.slane %v4850_v27, %v4615_v7 }
  0xa5   : > { %v1222_v43 = vmul.f32 %v1205_v23, %v1198_v41  ;;  %v1178_v44 = vmul.f32 %v1161_v29, %v1154_v42  ;;  %1707 = vrot.lane.b32.xlu1 %v4551_v3, %s4421_s18  ;;  %1969 = vmatprep.subr.bf16.mxu0 %v1911_v38  ;;  %s4425_s18 = smov 110  }
  0xa6   : > { %1663 = vrot.lane.b32.xlu0 %v4551_v3, %s4420_s0  ;;  %2008 = vmatprep.subr.bf16.mxu1 %v1917_v39  ;;  %s4424_s0 = smov 111   ;;  %v1125_v39 = vrot.slane %v4783_v46, %v4665_v31 }
  0xa7   : > { %2009 = vmatpush1.bf16.msra.mxu1 %v1916_v40  ;;  %v4785_v47 = vpop.permute.xlu1 %1056  ;;  %v1055_v48 = vpop.permute.xlu0 %1054  ;;  %v1910_v49 = vpack.c.bf16 %v1222_v43, %v1178_v44  ;;  %v1129_v40 = vrot.slane %v4783_v46, %v4667_v32  ;;  %v1081_v43 = vrot.slane %v4778_v45, %v4665_v31  ;;  %v1085_v44 = vrot.slane %v4778_v45, %v4667_v32 }
  0xa8   : > { %v1065_v52 = vsel %vm1062_vm5, %v1055_v48, %v4785_v47  ;;  %v1029_v46 = vrot.slane %v4850_v27, %v4627_v12 }
  0xa9   : > { %1613 = vrot.lane.b32.xlu1 %v4545_v2, %s4423_s27  ;;  %1970 = vmatpush1.bf16.msra.mxu0 %v1910_v49  ;;  %v1091_v58 = vmul.f32 %v1077_v50, %v1065_v52 }
  0xaa   : > { %1569 = vrot.lane.b32.xlu0 %v4545_v2, %s4422_s26 }
  0xab   : > { %v4800_v53 = vpop.permute.xlu1 %1100  ;;  %v1099_v54 = vpop.permute.xlu0 %1098 }
  0xac   : > { %v1109_v55 = vsel %vm1106_vm6, %v1099_v54, %v4800_v53 }
  0xad   : > { %v1135_v59 = vmul.f32 %v1121_v51, %v1109_v55  ;;  %1485 = vrot.lane.b32.xlu1 %v4543_v1, %s4424_s0  ;;  %v985_v51 = vrot.slane %v4845_v26, %v4627_v12 }
  0xae   : > { %1483 = vrot.lane.b32.xlu0 %v4539_v0, %s4424_s0 }
  0xaf   : > { %v1191_v62 = vpop.permute.xlu1 %1190  ;;  %v1147_v63 = vpop.permute.xlu0 %1146  ;;  %v1907_v4 = vpack.c.bf16 %v1135_v59, %v1091_v58 }
  0xb0   : > { %v1195_v10 = vsel %vm1194_vm4, %v1191_v62, %v1193_v36  ;;  %v1196_v13 = vsel %vm1194_vm4, %v1189_v22, %v1191_v62  ;;  %v1151_v8 = vsel %vm1150_vm3, %v1147_v63, %v1149_v37  ;;  %v1152_v14 = vsel %vm1150_vm3, %v4728_v11, %v1147_v63 }
  0xb1   : > { %v1224_v15 = vmul.f32 %v1213_v56, %v1196_v13  ;;  %v1225_v16 = vmul.f32 %v1217_v57, %v1195_v10  ;;  %v1180_v17 = vmul.f32 %v1169_v60, %v1152_v14  ;;  %v1181_v18 = vmul.f32 %v1173_v61, %v1151_v8  ;;  %1529 = vrot.lane.b32.xlu1 %v4543_v1, %s4425_s18  ;;  %v4933_v10 = vld [vmem:[%s5778_s1 + $0x5] ss:$8 sm:$0xf] }
  0xb2   : > { %1527 = vrot.lane.b32.xlu0 %v4539_v0, %s4425_s18  ;;  %1971 = vmatprep.subr.bf16.mxu0 %v1907_v4  ;;  %vm1665_vm3 = vcmp.lt.s32.totalorder %v4613_v6, 96  ;;  %vm1709_vm4 = vcmp.lt.s32.totalorder %v4613_v6, 95 }
  0xb3   : > { %v1105_v19 = vpop.permute.xlu1 %1104  ;;  %v1061_v20 = vpop.permute.xlu0 %1060  ;;  %v1913_v21 = vpack.c.bf16 %v1225_v16, %v1181_v18  ;;  %v1912_v22 = vpack.c.bf16 %v1224_v15, %v1180_v17  ;;  %v945_v16 = vrot.slane %v4933_v10, %v4615_v7 }
  0xb4   : > { %v1110_v23 = vsel %vm1106_vm6, %v1105_v19, %v1099_v54  ;;  %v1066_v11 = vsel %vm1062_vm5, %v1061_v20, %v1055_v48 }
  0xb5   : > { %v1134_v25 = vmul.f32 %v1117_v5, %v1110_v23  ;;  %v1090_v24 = vmul.f32 %v1073_v9, %v1066_v11  ;;  %1619 = vrot.lane.b32.xlu1 %v4551_v3, %s4423_s27  ;;  %2010 = vmatprep.subr.bf16.mxu1 %v1913_v21  ;;  %s4889_s27 = sshll.u32 %s5784_s22, 3  ;;  %v4928_v9 = vld [vmem:[%s5778_s1 + $0x4] ss:$8 sm:$0xf]  ;;  %v1037_v21 = vrot.slane %v4850_v27, %v4665_v31 }
  0xb6   : > { %1575 = vrot.lane.b32.xlu0 %v4551_v3, %s4422_s26  ;;  %2011 = vmatpush1.bf16.msra.mxu1 %v1912_v22  ;;  %s4426_s26 = smov 113   ;;  %s652_s24 = scalar_lea.vmem %s5760_s7, %s4889_s27  ;;  %v901_v15 = vrot.slane %v4928_v9, %v4615_v7  ;;  %v1041_v22 = vrot.slane %v4850_v27, %v4667_v32  ;;  %v941_v27 = vrot.slane %v4933_v10, %v4627_v12 }
  0xb7   : > { %v4852_v28 = vpop.permute.xlu1 %968  ;;  %v967_v29 = vpop.permute.xlu0 %966  ;;  %v1906_v30 = vpack.c.bf16 %v1134_v25, %v1090_v24  ;;  %v993_v25 = vrot.slane %v4845_v26, %v4665_v31  ;;  %s660_s19 = scalar_lea.vmem %s5762_s9, %s4889_s27  ;;  %s656_s28 = scalar_lea.vmem %s5761_s8, %s4889_s27 }
  0xb8   : > { %v977_v35 = vsel %vm974_vm7, %v967_v29, %v4852_v28 }
  0xb9   : > { %1525 = vrot.lane.b32.xlu1 %v4545_v2, %s4425_s18  ;;  %1972 = vmatpush1.bf16.msra.mxu0 %v1906_v30  ;;  %v1003_v41 = vmul.f32 %v989_v33, %v977_v35  ;;  %v897_v33 = vrot.slane %v4928_v9, %v4627_v12 }
  0xba   : > { %1481 = vrot.lane.b32.xlu0 %v4545_v2, %s4424_s0 }
  0xbb   : > { %v4867_v36 = vpop.permute.xlu1 %1012  ;;  %v1011_v37 = vpop.permute.xlu0 %1010 }
  0xbc   : > { %v1021_v38 = vsel %vm1018_vm8, %v1011_v37, %v4867_v36 }
  0xbd   : > { %v1047_v42 = vmul.f32 %v1033_v34, %v1021_v38  ;;  %1397 = vrot.lane.b32.xlu1 %v4543_v1, %s4426_s26 }
  0xbe   : > { %1395 = vrot.lane.b32.xlu0 %v4539_v0, %s4426_s26 }
  0xbf   : > { %v1103_v48 = vpop.permute.xlu1 %1102  ;;  %v1059_v49 = vpop.permute.xlu0 %1058  ;;  %v1903_v50 = vpack.c.bf16 %v1047_v42, %v1003_v41 }
  0xc0   : > { %v1107_v52 = vsel %vm1106_vm6, %v1103_v48, %v1105_v19  ;;  %v1108_v45 = vsel %vm1106_vm6, %v4800_v53, %v1103_v48  ;;  %v1063_v54 = vsel %vm1062_vm5, %v1059_v49, %v1061_v20  ;;  %v1064_v55 = vsel %vm1062_vm5, %v4785_v47, %v1059_v49  ;;  %v4907_v53 = vld [vmem:[%s652_s24] sm:$0xff]  ;;  %s4430_s24 = smov 120  }
  0xc1   : > { %v1136_v56 = vmul.f32 %v1125_v39, %v1108_v45  ;;  %v1137_v57 = vmul.f32 %v1129_v40, %v1107_v52  ;;  %v1092_v58 = vmul.f32 %v1081_v43, %v1064_v55  ;;  %v1093_v59 = vmul.f32 %v1085_v44, %v1063_v54  ;;  %1441 = vrot.lane.b32.xlu1 %v4543_v1, %s5771_s25 }
  0xc2   : > { %1439 = vrot.lane.b32.xlu0 %v4539_v0, %s5771_s25  ;;  %1973 = vmatprep.subr.bf16.mxu0 %v1903_v50  ;;  %v3884_v63 = vcombine.high %v4907_v53, %v4907_v53  ;;  %vm1577_vm5 = vcmp.lt.s32.totalorder %v4613_v6, 98  ;;  %vm1621_vm6 = vcmp.lt.s32.totalorder %v4613_v6, 97 }
  0xc3   : > { %v1017_v47 = vpop.permute.xlu1 %1016  ;;  %v973_v60 = vpop.permute.xlu0 %972  ;;  %v1909_v61 = vpack.c.bf16 %v1137_v57, %v1093_v59  ;;  %v1908_v62 = vpack.c.bf16 %v1136_v56, %v1092_v58 }
  0xc4   : > { %v1022_v1 = vsel %vm1018_vm8, %v1017_v47, %v1011_v37  ;;  %v978_v4 = vsel %vm974_vm7, %v973_v60, %v967_v29  ;;  %3886 = vmatprep.mubr.msk.bf16.mxu0 %vm1948_vm9, %v3884_v63  ;;  %3888 = vmatprep.mubr.msk.bf16.mxu1 %vm1948_vm9, %v3884_v63  ;;  %v905_v63 = vrot.slane %v4928_v9, %v4665_v31 }
  0xc5   : > { %v1046_v0 = vmul.f32 %v1029_v46, %v1022_v1  ;;  %v1002_v5 = vmul.f32 %v985_v51, %v978_v4  ;;  %1531 = vrot.lane.b32.xlu1 %v4551_v3, %s4425_s18  ;;  %2012 = vmatprep.subr.bf16.mxu1 %v1909_v61  ;;  %v4992_v46 = vld [vmem:[%s5778_s1 + $0x3] ss:$8 sm:$0xf]  ;;  %v909_v1 = vrot.slane %v4928_v9, %v4667_v32  ;;  %s4432_s18 = smov 7  }
  0xc6   : > { %1487 = vrot.lane.b32.xlu0 %v4551_v3, %s4424_s0  ;;  %2013 = vmatpush1.bf16.msra.mxu1 %v1908_v62  ;;  %v857_v55 = vrot.slane %v4992_v46, %v4615_v7  ;;  %s5779_s0 = smov 127  }
  0xc7   : > { %v4935_v13 = vpop.permute.xlu1 %880  ;;  %v879_v8 = vpop.permute.xlu0 %878  ;;  %v1902_v14 = vpack.c.bf16 %v1046_v0, %v1002_v5 }
  0xc8   : > { %v889_v17 = vsel %vm886_vm10, %v879_v8, %v4935_v13 }
  0xc9   : > { %1437 = vrot.lane.b32.xlu1 %v4545_v2, %s5771_s25  ;;  %1974 = vmatpush1.bf16.msra.mxu0 %v1902_v14  ;;  %v915_v23 = vmul.f32 %v901_v15, %v889_v17 }
  0xca   : > { %1393 = vrot.lane.b32.xlu0 %v4545_v2, %s4426_s26  ;;  %v997_v2 = vrot.slane %v4845_v26, %v4667_v32 }
  0xcb   : > { %v925_v18 = vpop.permute.xlu1 %924  ;;  %v923_v19 = vpop.permute.xlu0 %922 }
  0xcc   : > { %v933_v20 = vsel %vm930_vm11, %v923_v19, %v925_v18 }
  0xcd   : > { %v959_v11 = vmul.f32 %v945_v16, %v933_v20  ;;  %1443 = vrot.lane.b32.xlu1 %v4551_v3, %s5771_s25  ;;  %s5782_s25 = scalar_lea.vmem %s5763_s10, %s4889_s27  ;;  %s4014_s27 = sshll.u32 %s5784_s22, 4 }
  0xce   : > { %1399 = vrot.lane.b32.xlu0 %v4551_v3, %s4426_s26  ;;  %s4433_s26 = smov 121  }
  0xcf   : > { %v1015_v24 = vpop.permute.xlu1 %1014  ;;  %v971_v29 = vpop.permute.xlu0 %970  ;;  %v1899_v30 = vpack.c.bf16 %v959_v11, %v915_v23 }
  0xd0   : > { %v1019_v34 = vsel %vm1018_vm8, %v1015_v24, %v1017_v47  ;;  %v1020_v35 = vsel %vm1018_vm8, %v4867_v36, %v1015_v24  ;;  %v975_v26 = vsel %vm974_vm7, %v971_v29, %v973_v60  ;;  %v976_v3 = vsel %vm974_vm7, %v4852_v28, %v971_v29  ;;  %v4987_v28 = vld [vmem:[%s5778_s1 + $0x2] ss:$8 sm:$0xf] }
  0xd1   : > { %v1048_v37 = vmul.f32 %v1037_v21, %v1020_v35  ;;  %v1049_v38 = vmul.f32 %v1041_v22, %v1019_v34  ;;  %v1004_v39 = vmul.f32 %v993_v25, %v976_v3  ;;  %v1005_v40 = vmul.f32 %v997_v2, %v975_v26  ;;  %1975 = vmatprep.subr.bf16.mxu0 %v1899_v30  ;;  %v3859_v30 = vld [vmem:[%s5778_s1 + $0x1] ss:$8 sm:$0xf] }
  0xd2   : > { %v813_v54 = vrot.slane %v4987_v28, %v4615_v7  ;;  %v949_v47 = vrot.slane %v4933_v10, %v4665_v31  ;;  %v953_v60 = vrot.slane %v4933_v10, %v4667_v32  ;;  %v809_v14 = vrot.slane %v4987_v28, %v4627_v12 }
  0xd3   : > { %v929_v41 = vpop.permute.xlu1 %928  ;;  %v885_v42 = vpop.permute.xlu0 %884  ;;  %v1905_v43 = vpack.c.bf16 %v1049_v38, %v1005_v40  ;;  %v1904_v44 = vpack.c.bf16 %v1048_v37, %v1004_v39  ;;  %v769_v26 = vrot.slane %v3859_v30, %v4615_v7  ;;  %v861_v40 = vrot.slane %v4992_v46, %v4665_v31 }
  0xd4   : > { %v934_v48 = vsel %vm930_vm11, %v929_v41, %v923_v19  ;;  %v890_v36 = vsel %vm886_vm10, %v885_v42, %v879_v8  ;;  %v853_v8 = vrot.slane %v4992_v46, %v4627_v12  ;;  %vm1489_vm7 = vcmp.lt.s32.totalorder %v4613_v6, 111 }
  0xd5   : > { %v958_v49 = vmul.f32 %v941_v27, %v934_v48  ;;  %v914_v50 = vmul.f32 %v897_v33, %v890_v36  ;;  %2014 = vmatprep.subr.bf16.mxu1 %v1905_v43  ;;  %v821_v48 = vrot.slane %v4987_v28, %v4667_v32  ;;  %vm1533_vm8 = vcmp.lt.s32.totalorder %v4613_v6, 110 }
  0xd6   : > { %2015 = vmatpush1.bf16.msra.mxu1 %v1904_v44  ;;  %v817_v44 = vrot.slane %v4987_v28, %v4665_v31 }
  0xd7   : > { %v4994_v51 = vpop.permute.xlu1 %792  ;;  %v791_v52 = vpop.permute.xlu0 %790  ;;  %v1898_v45 = vpack.c.bf16 %v958_v49, %v914_v50 }
  0xd8   : > { %v801_v56 = vsel %vm798_vm12, %v791_v52, %v4994_v51 }
  0xd9   : > { %1976 = vmatpush1.bf16.msra.mxu0 %v1898_v45  ;;  %v827_v61 = vmul.f32 %v813_v54, %v801_v56 }
  0xdb   : > { %v837_v57 = vpop.permute.xlu1 %836  ;;  %v835_v58 = vpop.permute.xlu0 %834 }
  0xdc   : > { %v845_v59 = vsel %vm842_vm13, %v835_v58, %v837_v57 }
  0xdd   : > { %v871_v62 = vmul.f32 %v857_v55, %v845_v59 }
  0xdf   : > { %v927_v4 = vpop.permute.xlu1 %926  ;;  %v883_v0 = vpop.permute.xlu0 %882  ;;  %v1895_v5 = vpack.c.bf16 %v871_v62, %v827_v61 }
  0xe0   : > { %v931_v10 = vsel %vm930_vm11, %v927_v4, %v929_v41  ;;  %v932_v15 = vsel %vm930_vm11, %v925_v18, %v927_v4  ;;  %v887_v16 = vsel %vm886_vm10, %v883_v0, %v885_v42  ;;  %v888_v9 = vsel %vm886_vm10, %v4935_v13, %v883_v0  ;;  %v716_v13 = vld [vmem:[%s5778_s1] ss:$8 sm:$0xf] }
  0xe1   : > { %v960_v17 = vmul.f32 %v949_v47, %v932_v15  ;;  %v961_v19 = vmul.f32 %v953_v60, %v931_v10  ;;  %v916_v20 = vmul.f32 %v905_v63, %v888_v9  ;;  %v917_v21 = vmul.f32 %v909_v1, %v887_v16  ;;  %1977 = vmatprep.subr.bf16.mxu0 %v1895_v5  ;;  %v3882_v9 = vld [vmem:[%s5778_s1 + $0x60] ss:$8 sm:$0xf] }
  0xe2   : > { %v725_v35 = vrot.slane %v716_v13, %v4615_v7  ;;  %v865_v41 = vrot.slane %v4992_v46, %v4667_v32  ;;  %v721_v45 = vrot.slane %v716_v13, %v4627_v12  ;;  %v773_v4 = vrot.slane %v3859_v30, %v4665_v31 }
  0xe3   : > { %v841_v22 = vpop.permute.xlu1 %840  ;;  %v797_v23 = vpop.permute.xlu0 %796  ;;  %v1901_v11 = vpack.c.bf16 %v961_v19, %v917_v21  ;;  %v1900_v25 = vpack.c.bf16 %v960_v17, %v916_v20  ;;  %v777_v0 = vrot.slane %v3859_v30, %v4667_v32  ;;  %vm1401_vm10 = vcmp.lt.s32.totalorder %v4613_v6, 113 }
  0xe4   : > { %v846_v2 = vsel %vm842_vm13, %v841_v22, %v835_v58  ;;  %v802_v18 = vsel %vm798_vm12, %v797_v23, %v791_v52  ;;  %v765_v52 = vrot.slane %v3859_v30, %v4627_v12  ;;  %vm1445_vm11 = vcmp.lt.s32.totalorder %v4613_v6, 112 }
  0xe5   : > { %v870_v24 = vmul.f32 %v853_v8, %v846_v2  ;;  %v826_v29 = vmul.f32 %v809_v14, %v802_v18  ;;  %2016 = vmatprep.subr.bf16.mxu1 %v1901_v11  ;;  %v729_v8 = vrot.slane %v716_v13, %v4665_v31  ;;  %v733_v14 = vrot.slane %v716_v13, %v4667_v32 }
  0xe6   : > { %2017 = vmatpush1.bf16.msra.mxu1 %v1900_v25  ;;  %v1764_v2 = vrot.slane %v3882_v9, %v4627_v12 }
  0xe7   : > { %v704_v27 = vpop.permute.xlu1 %703  ;;  %v702_v33 = vpop.permute.xlu0 %701  ;;  %v1894_v34 = vpack.c.bf16 %v870_v24, %v826_v29 }
  0xe8   : > { %v714_v3 = vsel %vm711_vm14, %v702_v33, %v704_v27 }
  0xe9   : > { %1978 = vmatpush1.bf16.msra.mxu0 %v1894_v34  ;;  %v739_v42 = vmul.f32 %v725_v35, %v714_v3  ;;  %v1768_v34 = vrot.slane %v3882_v9, %v4615_v7 }
  0xeb   : > { %v749_v37 = vpop.permute.xlu1 %748  ;;  %v747_v38 = vpop.permute.xlu0 %746 }
  0xec   : > { %v757_v39 = vsel %vm754_vm15, %v747_v38, %v749_v37 }
  0xed   : > { %v783_v43 = vmul.f32 %v769_v26, %v757_v39  ;;  %v5094_v39 = vld [vmem:[%s5778_s1 + $0x46] ss:$8 sm:$0xf] }
  0xef   : > { %v839_v36 = vpop.permute.xlu1 %838  ;;  %v795_v49 = vpop.permute.xlu0 %794  ;;  %v1891_v50 = vpack.c.bf16 %v783_v43, %v739_v42  ;;  %v1772_v43 = vrot.slane %v3882_v9, %v4665_v31 }
  0xf0   : > { %v843_v54 = vsel %vm842_vm13, %v839_v36, %v841_v22  ;;  %v844_v46 = vsel %vm842_vm13, %v837_v57, %v839_v36  ;;  %v799_v55 = vsel %vm798_vm12, %v795_v49, %v797_v23  ;;  %v800_v28 = vsel %vm798_vm12, %v4994_v51, %v795_v49 }
  0xf1   : > { %v872_v56 = vmul.f32 %v861_v40, %v844_v46  ;;  %v873_v58 = vmul.f32 %v865_v41, %v843_v54  ;;  %v828_v59 = vmul.f32 %v817_v44, %v800_v28  ;;  %v829_v47 = vmul.f32 %v821_v48, %v799_v55  ;;  %1979 = vmatprep.subr.bf16.mxu0 %v1891_v50  ;;  %v5099_v40 = vld [vmem:[%s5778_s1 + $0x47] ss:$8 sm:$0xf] }
  0xf2   : > { %v1776_v44 = vrot.slane %v3882_v9, %v4667_v32  ;;  %v1680_v48 = vrot.slane %v5094_v39, %v4615_v7  ;;  %v1724_v49 = vrot.slane %v5099_v40, %v4615_v7  ;;  %vm3385_vm12 = vcmask 130048  }
  0xf3   : > { %v753_v60 = vpop.permute.xlu1 %752  ;;  %v708_v61 = vpop.permute.xlu0 %707  ;;  %v1897_v62 = vpack.c.bf16 %v873_v58, %v829_v47  ;;  %v1896_v63 = vpack.c.bf16 %v872_v56, %v828_v59  ;;  %v1720_v58 = vrot.slane %v5099_v40, %v4627_v12  ;;  %vm3666_vm13 = vcmask 15360  }
  0xf4   : > { %v758_v1 = vsel %vm754_vm15, %v753_v60, %v747_v38  ;;  %v715_v57 = vsel %vm711_vm14, %v708_v61, %v702_v33 }
  0xf5   : > { %v782_v51 = vmul.f32 %v765_v52, %v758_v1  ;;  %v738_v5 = vmul.f32 %v721_v45, %v715_v57  ;;  %2018 = vmatprep.subr.bf16.mxu1 %v1897_v62 }
  0xf6   : > { %2019 = vmatpush1.bf16.msra.mxu1 %v1896_v63 }
  0xf7   : > { %v751_v10 = vpop.permute.xlu1 %750  ;;  %v706_v15 = vpop.permute.xlu0 %705  ;;  %v1890_v16 = vpack.c.bf16 %v782_v51, %v738_v5 }
  0xf8   : > { %v755_v17 = vsel %vm754_vm15, %v751_v10, %v753_v60  ;;  %v756_v19 = vsel %vm754_vm15, %v749_v37, %v751_v10  ;;  %v712_v20 = vsel %vm711_vm14, %v706_v15, %v708_v61  ;;  %v713_v21 = vsel %vm711_vm14, %v704_v27, %v706_v15  ;;  %v5137_v10 = vld [vmem:[%s5778_s1 + $0x44] ss:$8 sm:$0xf]  ;;  %v5142_v15 = vld [vmem:[%s5778_s1 + $0x45] ss:$8 sm:$0xf] }
  0xf9   : > { %v784_v22 = vmul.f32 %v773_v4, %v756_v19  ;;  %v785_v23 = vmul.f32 %v777_v0, %v755_v17  ;;  %v740_v11 = vmul.f32 %v729_v8, %v713_v21  ;;  %v741_v25 = vmul.f32 %v733_v14, %v712_v20  ;;  %1980 = vmatpush1.bf16.msra.mxu0 %v1890_v16 }
  0xfa   : > { %v1676_v60 = vrot.slane %v5094_v39, %v4627_v12  ;;  %v1592_v17 = vrot.slane %v5137_v10, %v4615_v7  ;;  %v1636_v19 = vrot.slane %v5142_v15, %v4615_v7 }
  0xfb   : > { %v1748_v18 = vpop.permute.xlu1 %1747  ;;  %v1746_v24 = vpop.permute.xlu0 %1745  ;;  %v1893_v29 = vpack.c.bf16 %v785_v23, %v741_v25  ;;  %v1892_v13 = vpack.c.bf16 %v784_v22, %v740_v11  ;;  %v1728_v11 = vrot.slane %v5099_v40, %v4665_v31  ;;  %v1732_v25 = vrot.slane %v5099_v40, %v4667_v32 }
  0xfc   : > { %v1756_v30 = vsel %vm1753_vm0, %v1746_v24, %v1748_v18 }
  0xfd   : > { %2020 = vmatprep.subr.bf16.mxu1 %v1893_v29  ;;  %v1781_v33 = vmul.f32 %v1764_v2, %v1756_v30  ;;  %v1688_v29 = vrot.slane %v5094_v39, %v4667_v32 }
  0xfe   : > { %2021 = vmatpush1.bf16.msra.mxu1 %v1892_v13 }
  0xff   : > { %v1660_v27 = vpop.permute.xlu1 %1659  ;;  %v1938_v3 = vpack.c.bf16 %v1781_v33, %v1781_v33 }
 0x100   : > { %v1750_v35 = vpop.permute.xlu0 %1749 }
 0x101   : > { %v1755_v26 = vsel %vm1753_vm0, %v1748_v18, %v1750_v35  ;;  %v1954_v36 = vsel %vm1952_vm1, %v1938_v3, 0 }
 0x102   : > { %v1782_v37 = vmul.f32 %v1768_v34, %v1755_v26 }
 0x103   : > { %v1704_v38 = vpop.permute.xlu1 %1703 }
 0x104   : > { %v1939_v41 = vpack.c.bf16 %v1782_v37, %v1782_v37  ;;  %v5102_v42 = vpop.permute.xlu0 %1661 }
 0x105   : > { %v1667_v50 = vsel %vm1665_vm3, %v1660_v27, %v5102_v42 }
 0x106   : > { %3885 = vmatprep.subr.msk.bf16.mxu0 %vm1952_vm1, %v1939_v41  ;;  %v1694_v59 = vmul.f32 %v1680_v48, %v1667_v50  ;;  %v1588_v41 = vrot.slane %v5137_v10, %v4627_v12 }
 0x107   : > { %1988 = vmatpush2.bf16.msra.mxu0 %v1954_v36  ;;  %v1752_v52 = vpop.permute.xlu1 %1751 }
 0x108   : > { %v1754_v45 = vsel %vm1753_vm0, %v1750_v35, %v1752_v52  ;;  %v1757_v54 = vsel %vm1753_vm0, %v1752_v52, %v1746_v24  ;;  %v1706_v46 = vpop.permute.xlu0 %1705  ;;  %v1684_v24 = vrot.slane %v5094_v39, %v4665_v31  ;;  %v1632_v35 = vrot.slane %v5142_v15, %v4627_v12 }
 0x109   : > { %v1783_v55 = vmul.f32 %v1772_v43, %v1754_v45  ;;  %v1784_v28 = vmul.f32 %v1776_v44, %v1757_v54  ;;  %v1711_v56 = vsel %vm1709_vm4, %v1704_v38, %v1706_v46  ;;  %v5185_v54 = vld [vmem:[%s5778_s1 + $0x42] ss:$8 sm:$0xf] }
 0x10a   : > { %v1738_v47 = vmul.f32 %v1724_v49, %v1711_v56  ;;  %v1504_v56 = vrot.slane %v5185_v54, %v4615_v7 }
 0x10b   : > { %v1940_v61 = vpack.c.bf16 %v1783_v55, %v1783_v55  ;;  %v1941_v62 = vpack.c.bf16 %v1784_v28, %v1784_v28  ;;  %v1702_v63 = vpop.permute.xlu1 %1701 }
 0x10c   : > { %v1712_v1 = vsel %vm1709_vm4, %v1702_v63, %v1704_v38  ;;  %v1658_v57 = vpop.permute.xlu0 %1657  ;;  %v1935_v4 = vpack.c.bf16 %v1738_v47, %v1694_v59 }
 0x10d   : > { %v1737_v0 = vmul.f32 %v1720_v58, %v1712_v1  ;;  %v1668_v51 = vsel %vm1665_vm3, %v1658_v57, %v1660_v27  ;;  %3887 = vmatprep.subr.msk.bf16.mxu1 %vm1952_vm1, %v1941_v62  ;;  %v1960_v5 = vsel %vm1952_vm1, %v1940_v61, 0  ;;  %v1640_v62 = vrot.slane %v5142_v15, %v4665_v31 }
 0x10e   : > { %v1693_v8 = vmul.f32 %v1676_v60, %v1668_v51  ;;  %1989 = vmatprep.subr.bf16.mxu0 %v1935_v4  ;;  %2029 = vmatpush2.bf16.msra.mxu1 %v1960_v5  ;;  %v1596_v4 = vrot.slane %v5137_v10, %v4665_v31 }
 0x10f   : > { %v5132_v14 = vpop.permute.xlu1 %1573 }
 0x110   : > { %v1572_v16 = vpop.permute.xlu0 %1571  ;;  %v1934_v9 = vpack.c.bf16 %v1737_v0, %v1693_v8  ;;  %v1600_v0 = vrot.slane %v5137_v10, %v4667_v32 }
 0x111   : > { %v1579_v20 = vsel %vm1577_vm5, %v1572_v16, %v5132_v14 }
 0x112   : > { %1990 = vmatpush2.bf16.msra.mxu0 %v1934_v9  ;;  %v1606_v2 = vmul.f32 %v1592_v17, %v1579_v20 }
 0x113   : > { %v1618_v21 = vpop.permute.xlu1 %1617 }
 0x114   : > { %v1616_v22 = vpop.permute.xlu0 %1615 }
 0x115   : > { %v1623_v23 = vsel %vm1621_vm6, %v1616_v22, %v1618_v21 }
 0x116   : > { %v1650_v18 = vmul.f32 %v1636_v19, %v1623_v23 }
 0x117   : > { %v1708_v13 = vpop.permute.xlu1 %1707 }
 0x118   : > { %v1710_v30 = vsel %vm1709_vm4, %v1706_v46, %v1708_v13  ;;  %v1713_v33 = vsel %vm1709_vm4, %v1708_v13, %v1702_v63  ;;  %v1664_v34 = vpop.permute.xlu0 %1663  ;;  %v1931_v27 = vpack.c.bf16 %v1650_v18, %v1606_v2  ;;  %v5190_v46 = vld [vmem:[%s5778_s1 + $0x43] ss:$8 sm:$0xf]  ;;  %v1644_v63 = vrot.slane %v5142_v15, %v4667_v32 }
 0x119   : > { %v1739_v26 = vmul.f32 %v1728_v11, %v1710_v30  ;;  %v1740_v3 = vmul.f32 %v1732_v25, %v1713_v33  ;;  %v1666_v37 = vsel %vm1665_vm3, %v5102_v42, %v1664_v34  ;;  %v1669_v38 = vsel %vm1665_vm3, %v1664_v34, %v1658_v57  ;;  %v3874_v33 = vld [vmem:[%s5778_s1 + $0x40] ss:$8 sm:$0xf]  ;;  %v3875_v34 = vld [vmem:[%s5778_s1 + $0x41] ss:$8 sm:$0xf] }
 0x11a   : > { %v1695_v39 = vmul.f32 %v1684_v24, %v1666_v37  ;;  %v1696_v40 = vmul.f32 %v1688_v29, %v1669_v38  ;;  %1991 = vmatprep.subr.bf16.mxu0 %v1931_v27  ;;  %v1548_v58 = vrot.slane %v5190_v46, %v4615_v7  ;;  %v1544_v15 = vrot.slane %v5190_v46, %v4627_v12 }
 0x11b   : > { %v1614_v43 = vpop.permute.xlu1 %1613 }
 0x11c   : > { %v1624_v44 = vsel %vm1621_vm6, %v1614_v43, %v1616_v22  ;;  %v1570_v48 = vpop.permute.xlu0 %1569  ;;  %v1937_v36 = vpack.c.bf16 %v1740_v3, %v1696_v40  ;;  %v1936_v49 = vpack.c.bf16 %v1739_v26, %v1695_v39  ;;  %v1416_v26 = vrot.slane %v3874_v33, %v4615_v7 }
 0x11d   : > { %v1649_v50 = vmul.f32 %v1632_v35, %v1624_v44  ;;  %v1580_v42 = vsel %vm1577_vm5, %v1570_v48, %v1572_v16  ;;  %v1460_v3 = vrot.slane %v3875_v34, %v4615_v7  ;;  %v1512_v7 = vrot.slane %v5185_v54, %v4667_v32 }
 0x11e   : > { %v1605_v52 = vmul.f32 %v1588_v41, %v1580_v42  ;;  %2030 = vmatprep.subr.bf16.mxu1 %v1937_v36  ;;  %v1552_v41 = vrot.slane %v5190_v46, %v4665_v31  ;;  %v1508_v36 = vrot.slane %v5185_v54, %v4665_v31 }
 0x11f   : > { %2031 = vmatpush2.bf16.msra.mxu1 %v1936_v49  ;;  %v5180_v45 = vpop.permute.xlu1 %1485 }
 0x120   : > { %v1484_v55 = vpop.permute.xlu0 %1483  ;;  %v1930_v28 = vpack.c.bf16 %v1649_v50, %v1605_v52 }
 0x121   : > { %v1491_v59 = vsel %vm1489_vm7, %v1484_v55, %v5180_v45 }
 0x122   : > { %1992 = vmatpush2.bf16.msra.mxu0 %v1930_v28  ;;  %v1518_v1 = vmul.f32 %v1504_v56, %v1491_v59  ;;  %v1456_v28 = vrot.slane %v3875_v34, %v4627_v12 }
 0x123   : > { %v1530_v47 = vpop.permute.xlu1 %1529 }
 0x124   : > { %v1528_v60 = vpop.permute.xlu0 %1527 }
 0x125   : > { %v1535_v61 = vsel %vm1533_vm8, %v1528_v60, %v1530_v47 }
 0x126   : > { %v1562_v57 = vmul.f32 %v1548_v58, %v1535_v61 }
 0x127   : > { %v1620_v51 = vpop.permute.xlu1 %1619 }
 0x128   : > { %v1622_v5 = vsel %vm1621_vm6, %v1618_v21, %v1620_v51  ;;  %v1625_v8 = vsel %vm1621_vm6, %v1620_v51, %v1614_v43  ;;  %v1576_v16 = vpop.permute.xlu0 %1575  ;;  %v1927_v9 = vpack.c.bf16 %v1562_v57, %v1518_v1  ;;  %v1500_v21 = vrot.slane %v5185_v54, %v4627_v12 }
 0x129   : > { %v1651_v17 = vmul.f32 %v1640_v62, %v1622_v5  ;;  %v1652_v19 = vmul.f32 %v1644_v63, %v1625_v8  ;;  %v1578_v20 = vsel %vm1577_vm5, %v5132_v14, %v1576_v16  ;;  %v1581_v10 = vsel %vm1577_vm5, %v1576_v16, %v1570_v48 }
 0x12a   : > { %v1607_v22 = vmul.f32 %v1596_v4, %v1578_v20  ;;  %v1608_v23 = vmul.f32 %v1600_v0, %v1581_v10  ;;  %1993 = vmatprep.subr.bf16.mxu0 %v1927_v9  ;;  %v1556_v43 = vrot.slane %v5190_v46, %v4667_v32  ;;  %v1468_v51 = vrot.slane %v3875_v34, %v4667_v32 }
 0x12b   : > { %v1526_v11 = vpop.permute.xlu1 %1525  ;;  %v1420_v8 = vrot.slane %v3874_v33, %v4665_v31  ;;  %v3883_v20 = vcombine.low %v4907_v53, %v4907_v53 }
 0x12c   : > { %v1536_v25 = vsel %vm1533_vm8, %v1526_v11, %v1528_v60  ;;  %v1482_v2 = vpop.permute.xlu0 %1481  ;;  %v1933_v18 = vpack.c.bf16 %v1652_v19, %v1608_v23  ;;  %v1932_v24 = vpack.c.bf16 %v1651_v17, %v1607_v22 }
 0x12d   : > { %v1561_v29 = vmul.f32 %v1544_v15, %v1536_v25  ;;  %v1492_v14 = vsel %vm1489_vm7, %v1482_v2, %v1484_v55 }
 0x12e   : > { %v1517_v13 = vmul.f32 %v1500_v21, %v1492_v14  ;;  %2032 = vmatprep.subr.bf16.mxu1 %v1933_v18 }
 0x12f   : > { %2033 = vmatpush2.bf16.msra.mxu1 %v1932_v24  ;;  %v1398_v30 = vpop.permute.xlu1 %1397 }
 0x130   : > { %v1396_v27 = vpop.permute.xlu0 %1395  ;;  %v1926_v35 = vpack.c.bf16 %v1561_v29, %v1517_v13 }
 0x131   : > { %v1403_v37 = vsel %vm1401_vm10, %v1396_v27, %v1398_v30 }
 0x132   : > { %1994 = vmatpush2.bf16.msra.mxu0 %v1926_v35  ;;  %v1430_v44 = vmul.f32 %v1416_v26, %v1403_v37 }
 0x133   : > { %v1442_v38 = vpop.permute.xlu1 %1441 }
 0x134   : > { %v1440_v39 = vpop.permute.xlu0 %1439 }
 0x135   : > { %v1447_v40 = vsel %vm1445_vm11, %v1440_v39, %v1442_v38 }
 0x136   : > { %v1474_v48 = vmul.f32 %v1460_v3, %v1447_v40 }
 0x137   : > { %v1532_v49 = vpop.permute.xlu1 %1531 }
 0x138   : > { %v1534_v50 = vsel %vm1533_vm8, %v1530_v47, %v1532_v49  ;;  %v1537_v42 = vsel %vm1533_vm8, %v1532_v49, %v1526_v11  ;;  %v1488_v52 = vpop.permute.xlu0 %1487  ;;  %v1923_v55 = vpack.c.bf16 %v1474_v48, %v1430_v44  ;;  %v1412_v47 = vrot.slane %v3874_v33, %v4627_v12 }
 0x139   : > { %v1563_v46 = vmul.f32 %v1552_v41, %v1534_v50  ;;  %v1564_v56 = vmul.f32 %v1556_v43, %v1537_v42  ;;  %v1490_v58 = vsel %vm1489_vm7, %v5180_v45, %v1488_v52  ;;  %v1493_v54 = vsel %vm1489_vm7, %v1488_v52, %v1482_v2  ;;  %v2048_v43 = vld [vmem:[%s660_s19] sm:$0xff]  ;;  %s5781_s19 = smov 1  }
 0x13a   : > { %v1519_v59 = vmul.f32 %v1508_v36, %v1490_v58  ;;  %v1520_v60 = vmul.f32 %v1512_v7, %v1493_v54  ;;  %1995 = vmatprep.subr.bf16.mxu0 %v1923_v55  ;;  %v1464_v45 = vrot.slane %v3875_v34, %v4665_v31  ;;  %v1424_v12 = vrot.slane %v3874_v33, %v4667_v32  ;;  %v2047_v55 = vld [vmem:[%s656_s28] sm:$0xff]  ;;  %s4431_s28 = smov 119  }
 0x13b   : > { %v1438_v61 = vpop.permute.xlu1 %1437  ;;  %v4428_v41 = vmov 0  }
 0x13c   : > { %v1448_v62 = vsel %vm1445_vm11, %v1438_v61, %v1440_v39  ;;  %v1394_v63 = vpop.permute.xlu0 %1393  ;;  %v1929_v1 = vpack.c.bf16 %v1564_v56, %v1520_v60  ;;  %v1928_v57 = vpack.c.bf16 %v1563_v46, %v1519_v59  ;;  %4283 = vset.pattern.permute.xlu0 %v4428_v41  ;;  %4284 = vset.pattern.permute.xlu1 %v4428_v41 }
 0x13d   : > { %v1473_v4 = vmul.f32 %v1456_v28, %v1448_v62  ;;  %v1404_v0 = vsel %vm1401_vm10, %v1394_v63, %v1396_v27 }
 0x13e   : > { %v1429_v5 = vmul.f32 %v1412_v47, %v1404_v0  ;;  %2034 = vmatprep.subr.bf16.mxu1 %v1929_v1 }
 0x13f   : > { %2035 = vmatpush2.bf16.msra.mxu1 %v1928_v57  ;;  %v1444_v16 = vpop.permute.xlu1 %1443 }
 0x140   : > { %v1446_v9 = vsel %vm1445_vm11, %v1442_v38, %v1444_v16  ;;  %v1449_v15 = vsel %vm1445_vm11, %v1444_v16, %v1438_v61  ;;  %v1400_v17 = vpop.permute.xlu0 %1399  ;;  %v1922_v19 = vpack.c.bf16 %v1473_v4, %v1429_v5 }
 0x141   : > { %v1475_v10 = vmul.f32 %v1464_v45, %v1446_v9  ;;  %v1476_v22 = vmul.f32 %v1468_v51, %v1449_v15  ;;  %v1402_v31 = vsel %vm1401_vm10, %v1398_v30, %v1400_v17  ;;  %v1405_v32 = vsel %vm1401_vm10, %v1400_v17, %v1394_v63  ;;  %v4317_v15 = vld [vmem:[%s5757_s4 + $0x78] sm:$0xff]  }
 0x142   : > { %v1431_v23 = vmul.f32 %v1420_v8, %v1402_v31  ;;  %v1432_v21 = vmul.f32 %v1424_v12, %v1405_v32  ;;  %1996 = vmatpush2.bf16.msra.mxu0 %v1922_v19  ;;  %v4318_v17 = vld [vmem:[%s5757_s4 + $0xf8] sm:$0xff]   ;;  %v4323_v31 = vld [vmem:[%s5757_s4 + $0x30] sm:$0xff]  }
 0x143   : > { %v4319_v19 = vld [vmem:[%s5757_s4 + $0x38] sm:$0xff]   ;;  %4020 = vmatprep.subr.bf16.mxu0 %v4317_v15  ;;  %v4324_v32 = vld [vmem:[%s5757_s4 + $0xb0] sm:$0xff]  }
 0x144   : > { %v1925_v11 = vpack.c.bf16 %v1476_v22, %v1432_v21  ;;  %v1924_v25 = vpack.c.bf16 %v1475_v10, %v1431_v23  ;;  %v4321_v10 = vld [vmem:[%s5757_s4 + $0x70] sm:$0xff]   ;;  %v4325_v23 = vld [vmem:[%s5757_s4 + $0x68] sm:$0xff]  }
 0x145   : > { %1998 = vmatmul.mubr.bf16.vlgmr.msra.gmra.mxu0 %v3883_v20  ;;  %v4322_v22 = vld [vmem:[%s5757_s4 + $0xf0] sm:$0xff]   ;;  %v4326_v21 = vld [vmem:[%s5757_s4 + $0xe8] sm:$0xff]  }
 0x146   : > { %2036 = vmatprep.subr.bf16.mxu1 %v1925_v11  ;;  %4021 = vmatpush3.bf16.msra.mxu0 %v4319_v19  ;;  %v4327_v11 = vld [vmem:[%s5757_s4 + $0x28] sm:$0xff]  }
 0x147   : > { %2037 = vmatpush2.bf16.msra.mxu1 %v1924_v25  ;;  %4022 = vmatprep.subr.bf16.mxu0 %v4321_v10  ;;  %v4328_v25 = vld [vmem:[%s5757_s4 + $0xa8] sm:$0xff]   ;;  %v4429_v10 = vmov 0.0  }
 0x148   : > { %4042 = vmatprep.subr.bf16.mxu1 %v4318_v17 }
 0x14a   : > { %2039 = vmatmul.mubr.bf16.vlgmr.msra.gmra.mxu1 %v3883_v20  ;;  %v4320_v20 = vld [vmem:[%s5757_s4 + $0xb8] sm:$0xff]   ;;  %4023 = vmatpush3.bf16.msra.mxu0 %v4323_v31 }
 0x14b   : > { %4043 = vmatpush3.bf16.msra.mxu1 %v4320_v20  ;;  %4024 = vmatprep.subr.bf16.mxu0 %v4325_v23 }
 0x14c   : > { %4044 = vmatprep.subr.bf16.mxu1 %v4322_v22 }
 0x14e   : > { %4025 = vmatpush3.bf16.msra.mxu0 %v4327_v11 }
 0x14f   : > { %4045 = vmatpush3.bf16.msra.mxu1 %v4324_v32 }
 0x150   : > { %4046 = vmatprep.subr.bf16.mxu1 %v4326_v21 }
 0x153   : > { %4047 = vmatpush3.bf16.msra.mxu1 %v4328_v25 }
 0x205   : > { %v1999_v2 = vpop.f32.mrf.mxu0 }
 0x206   : > { %v2054_v18 = vmul.f32 %v1999_v2, %v1999_v2 }
 0x207   : > { %v2001_v53 = vpop.f32.mrf.mxu0 }
 0x208   : > { %v2049_v24 = vadd.f32 %v2001_v53, %v1999_v2  ;;  %v2055_v29 = vmul.f32 %v2001_v53, %v2001_v53 }
 0x209   : > { %v2003_v14 = vpop.f32.mrf.mxu0 }
 0x20a   : > { %v2040_v13 = vpop.f32.mrf.mxu1  ;;  %v2058_v30 = vadd.f32 %v2055_v29, %v2054_v18  ;;  %v4330_v18 = vld [vmem:[%s5757_s4 + $0xe0] sm:$0xff]   ;;  %v4333_v29 = vld [vmem:[%s5757_s4 + $0x58] sm:$0xff]  }
 0x20b   : > { %v2056_v33 = vmul.f32 %v2040_v13, %v2040_v13  ;;  %v2004_v34 = vpop.f32.mrf.mxu0  ;;  %v2050_v27 = vadd.f32 %v2049_v24, %v2040_v13  ;;  %v4332_v24 = vld [vmem:[%s5757_s4 + $0xa0] sm:$0xff]   ;;  %4048 = vmatprep.subr.bf16.mxu1 %v4330_v18  ;;  %v4334_v14 = vld [vmem:[%s5757_s4 + $0xd8] sm:$0xff]  }
 0x20c   : > { %v2042_v35 = vpop.f32.mrf.mxu1  ;;  %4049 = vmatpush3.bf16.msra.mxu1 %v4332_v24  ;;  %v4338_v34 = vld [vmem:[%s5757_s4 + $0xd0] sm:$0xff]   ;;  %v3929_v24 = vld [vmem:[%s5755_s2 + $0x8] ss:$0 sm:$0xff] }
 0x20d   : > { %v2051_v26 = vadd.f32 %v2050_v27, %v2042_v35  ;;  %v2057_v3 = vmul.f32 %v2042_v35, %v2042_v35  ;;  %v2059_v37 = vadd.f32 %v2058_v30, %v2056_v33  ;;  %v4336_v30 = vld [vmem:[%s5757_s4 + $0x98] sm:$0xff]   ;;  %4050 = vmatprep.subr.bf16.mxu1 %v4334_v14  ;;  %v4337_v33 = vld [vmem:[%s5757_s4 + $0x50] sm:$0xff]  }
 0x20e   : > { %v2044_v38 = vpop.f32.mrf.mxu1  ;;  %v4339_v27 = vld [vmem:[%s5757_s4 + $0x10] sm:$0xff]  }
 0x20f   : > { %2052 = vadd.xlane.f32.xlu0 %v2051_v26  ;;  %v2060_v39 = vadd.f32 %v2059_v37, %v2057_v3  ;;  %v4341_v38 = vld [vmem:[%s5757_s4 + $0x48] sm:$0xff]  }
 0x210   : > { %v2045_v40 = vpop.f32.mrf.mxu1  ;;  %4051 = vmatpush3.bf16.msra.mxu1 %v4336_v30 }
 0x211   : > { %2061 = vadd.xlane.f32.xlu1 %v2060_v39  ;;  %4052 = vmatprep.subr.bf16.mxu1 %v4338_v34  ;;  %v4342_v39 = vld [vmem:[%s5757_s4 + $0xc8] sm:$0xff]  }
 0x212   : > { %v4343_v40 = vld [vmem:[%s5757_s4 + $0x8] sm:$0xff]  }
 0x222   : > { %2086 = vperm.xlu1 %4284, %v2048_v43   ;;  %v4344_v43 = vld [vmem:[%s5757_s4 + $0x88] sm:$0xff]  }
 0x298   : > { %v2053_v44 = vpop.xlane.xlu0 %2052 }
 0x299   : > { %v2063_v48 = vmul.f32 0.001953125, %v2053_v44 }
 0x29a   : > { %v2062_v36 = vpop.xlane.xlu1 %2061 }
 0x29b   : > { %v2064_v7 = vmul.f32 0.001953125, %v2062_v36  ;;  %v2065_v49 = vmul.f32 %v2063_v48, %v2063_v48  ;;  %v2068_v56 = vsub.f32 %v1999_v2, %v2063_v48  ;;  %v2069_v58 = vsub.f32 %v2001_v53, %v2063_v48  ;;  %v4329_v2 = vld [vmem:[%s5757_s4 + $0x60] sm:$0xff]  }
 0x29c   : > { %v2070_v54 = vsub.f32 %v2040_v13, %v2063_v48  ;;  %v2071_v59 = vsub.f32 %v2042_v35, %v2063_v48  ;;  %v4331_v53 = vld [vmem:[%s5757_s4 + $0x20] sm:$0xff]   ;;  %4026 = vmatprep.subr.bf16.mxu0 %v4329_v2  ;;  %v4335_v13 = vld [vmem:[%s5757_s4 + $0x18] sm:$0xff]   ;;  %v4340_v35 = vld [vmem:[%s5757_s4 + $0x90] sm:$0xff]  }
 0x29d   : > { %v2066_v50 = vsub.f32 %v2064_v7, %v2065_v49  ;;  %4027 = vmatpush3.bf16.msra.mxu0 %v4331_v53  ;;  %4053 = vmatpush3.bf16.msra.mxu1 %v4340_v35  ;;  %v4345_v49 = vld [vmem:[%s5757_s4 + $0x40] sm:$0xff]  }
 0x29e   : > { %v2087_v47 = vpop.permute.xlu1 %2086  ;;  %4028 = vmatprep.subr.bf16.mxu0 %v4333_v29  ;;  %4054 = vmatprep.subr.bf16.mxu1 %v4342_v39 }
 0x29f   : > { %v2067_v42 = vmax.f32 %v2066_v50, 0.0  ;;  %v4346_v50 = vld [vmem:[%s5757_s4 + $0xc0] sm:$0xff]  }
 0x2a1   : > { %v2072_v52 = vadd.f32 1e-05, %v2067_v42  ;;  %4029 = vmatpush3.bf16.msra.mxu0 %v4335_v13  ;;  %4055 = vmatpush3.bf16.msra.mxu1 %v4344_v43  ;;  %v4347_v42 = vld [vmem:[%s5757_s4] sm:$0xff]  }
 0x2a2   : > { %4030 = vmatprep.subr.bf16.mxu0 %v4337_v33  ;;  %4056 = vmatprep.subr.bf16.mxu1 %v4346_v50  ;;  %v3928_v13 = vld [vmem:[%s5755_s2 + $0x7] ss:$0 sm:$0xff]  ;;  %v3927_v33 = vld [vmem:[%s5755_s2 + $0x6] ss:$0 sm:$0xff] }
 0x2a3   : > { %4382 = vrsqrt.f32 %v2072_v52 }
 0x2a5   : > { %4031 = vmatpush3.bf16.msra.mxu0 %v4339_v27 }
 0x2a6   : > { %4032 = vmatprep.subr.bf16.mxu0 %v4341_v38  ;;  %v3926_v38 = vld [vmem:[%s5755_s2 + $0x5] ss:$0 sm:$0xff] }
 0x2a9   : > { %4033 = vmatpush3.bf16.msra.mxu0 %v4343_v40 }
 0x2aa   : > { %4034 = vmatprep.subr.bf16.mxu0 %v4345_v49 }
 0x2ad   : > { %4035 = vmatpush3.bf16.msra.mxu0 %v4347_v42 }
 0x2ae   : > { %4148 = vmatprep.subr.bf16.mxu0 %v4429_v10 }
 0x2b0   : > { %v4383_v28 = vpop.eup %4382 }
 0x2b1   : > { %v2074_v46 = vmul.f32 %v4383_v28, %v2047_v55 }
 0x2b3   : > { %2077 = vperm.xlu0 %4283, %v2074_v46   ;;  %v4348_v46 = vld [vmem:[%s5757_s4 + $0x80] sm:$0xff]  }
 0x2b4   : > { %4057 = vmatpush3.bf16.msra.mxu1 %v4348_v46  ;;  %v3922_v46 = vld [vmem:[%s5755_s2 + $0x1] ss:$0 sm:$0xff] }
 0x2b5   : > { %4114 = vmatprep.subr.bf16.mxu1 %v4429_v10 }
 0x32e   : > { %v2078_v60 = vpop.permute.xlu0 %2077 }
 0x32f   : > { %v2080_v61 = vmul.f32 %v2078_v60, %v2068_v56  ;;  %v2081_v62 = vmul.f32 %v2078_v60, %v2069_v58  ;;  %v2082_v63 = vmul.f32 %v2078_v60, %v2070_v54  ;;  %v2083_v1 = vmul.f32 %v2078_v60, %v2071_v59 }
 0x331   : > { %v5289_v57 = vadd.f32 %v2087_v47, %v2080_v61  ;;  %v5291_v4 = vadd.f32 %v2087_v47, %v2081_v62  ;;  %v5293_v0 = vadd.f32 %v2087_v47, %v2082_v63  ;;  %v5295_v45 = vadd.f32 %v2087_v47, %v2083_v1 }
 0x333   : > { %v2093_v51 = vmax.f32 %v5289_v57, 0.0  ;;  %v2094_v5 = vmax.f32 %v5291_v4, 0.0  ;;  %v2095_v8 = vmax.f32 %v5293_v0, 0.0  ;;  %v2096_v12 = vmax.f32 %v5295_v45, 0.0 }
 0x335   : > { %v4285_v16 = vpack.i.bf16 %v2094_v5, %v2093_v51  ;;  %v4290_v9 = vpack.i.bf16 %v2096_v12, %v2095_v8 }
 0x337   : > { %4286 = vrot.lane.b32.xlu1 %v4285_v16, %s5773_s30 }
 0x33b   : > { %4291 = vrot.lane.b32.xlu1 %v4290_v9, %s5779_s0 }
 0x3a9   : > { %v4287_v26 = vpop.permute.xlu1 %4286 }
 0x3aa   : > { %v4289_v3 = vunpack.i.h.bf16 %v4287_v26  ;;  %v4288_v37 = vunpack.i.l.bf16 %v4287_v26 }
 0x3ac   : > { %v2107_v48 = vsel %vm1269_vm2, %v4288_v37, %v4289_v3 }
 0x3ad   : > { %v4292_v44 = vpop.permute.xlu1 %4291  ;;  %v2109_v56 = vmax.f32 %v2093_v51, %v2107_v48 }
 0x3ae   : > { %v4294_v36 = vunpack.i.h.bf16 %v4292_v44  ;;  %v4293_v7 = vunpack.i.l.bf16 %v4292_v44 }
 0x3b0   : > { %v2105_v52 = vsel %vm1269_vm2, %v4293_v7, %v4294_v36  ;;  %v2106_v55 = vsel %vm1269_vm2, %v4289_v3, %v4293_v7  ;;  %v2108_v28 = vsel %vm1269_vm2, %v4294_v36, %v4288_v37  ;;  %vm4435_vm2 = vmmov 0   ;;  %v3925_v37 = vld [vmem:[%s5755_s2 + $0x4] ss:$0 sm:$0xff]  ;;  %v3923_v36 = vld [vmem:[%s5755_s2 + $0x2] ss:$0 sm:$0xff] }
 0x3b1   : > { %v2110_v58 = vmax.f32 %v2094_v5, %v2106_v55  ;;  %v2111_v54 = vmax.f32 %v2095_v8, %v2105_v52  ;;  %v2112_v59 = vmax.f32 %v2096_v12, %v2108_v28  ;;  %v3924_v7 = vld [vmem:[%s5755_s2 + $0x3] ss:$0 sm:$0xff]  ;;  %v3921_v55 = vld [vmem:[%s5755_s2] ss:$0 sm:$0xff] }
 0x3b3   : > { %v4295_v60 = vpack.i.bf16 %v2110_v58, %v2109_v56  ;;  %v4300_v47 = vpack.i.bf16 %v2112_v59, %v2111_v54 }
 0x3b5   : > { %4296 = vrot.lane.b32.xlu1 %v4295_v60, %s5780_s20 }
 0x3b9   : > { %4301 = vrot.lane.b32.xlu1 %v4300_v47, %s5780_s20  ;;  %v4349_v47 = vld [vmem:[%s5782_s25] sm:$0xff]   ;;  %s670_s20 = scalar_lea.vmem %s5764_s11, %s4014_s27 }
 0x427   : > { %v4297_v61 = vpop.permute.xlu1 %4296 }
 0x428   : > { %v4299_v62 = vunpack.i.h.bf16 %v4297_v61  ;;  %v4298_v63 = vunpack.i.l.bf16 %v4297_v61 }
 0x42a   : > { %v2123_v1 = vsel %vm1445_vm11, %v4298_v63, %v4299_v62 }
 0x42b   : > { %v4302_v57 = vpop.permute.xlu1 %4301  ;;  %v2125_v0 = vmax.f32 %v2109_v56, %v2123_v1 }
 0x42c   : > { %v4304_v4 = vunpack.i.h.bf16 %v4302_v57  ;;  %v4303_v51 = vunpack.i.l.bf16 %v4302_v57 }
 0x42d   : > { %v2129_v20 = vpack.c.bf16 %v2125_v0, %v2125_v0 }
 0x42e   : > { %v2121_v45 = vsel %vm1445_vm11, %v4303_v51, %v4304_v4  ;;  %v2122_v5 = vsel %vm1445_vm11, %v4299_v62, %v4303_v51  ;;  %v2124_v8 = vsel %vm1445_vm11, %v4304_v4, %v4298_v63 }
 0x42f   : > { %v2127_v12 = vmax.f32 %v2111_v54, %v2121_v45  ;;  %v2126_v16 = vmax.f32 %v2110_v58, %v2122_v5  ;;  %v2128_v9 = vmax.f32 %v2112_v59, %v2124_v8 }
 0x431   : > { %v2130_v15 = vpack.c.bf16 %v2126_v16, %v2126_v16  ;;  %v2132_v17 = vpack.c.bf16 %v2128_v9, %v2128_v9  ;;  %v2131_v19 = vpack.c.bf16 %v2127_v12, %v2127_v12 }
 0x433   : > { %2421 = vmatprep.mubr.bf16.mxu0 %v2130_v15  ;;  %2461 = vmatprep.mubr.bf16.mxu1 %v2132_v17 }
 0x434   : > { %2422 = vmatmul.mubr.bf16.vlgmr.msra.gmra.mxu0 %v2129_v20  ;;  %2462 = vmatmul.mubr.bf16.vlgmr.msra.gmra.mxu1 %v2131_v19 }
 0x435   : > { %4124 = vmatprep.mubr.msk.bf16.mxu1 %vm4435_vm2, %v4429_v10  ;;  %4152 = vmatprep.mubr.msk.bf16.mxu0 %vm4435_vm2, %v4429_v10 }
 0x4f4   : > { %v4036_v22 = vpop.f32.mrf.mxu0  ;;  %v4058_v31 = vpop.f32.mrf.mxu1 }
 0x4f6   : > { %v4037_v6 = vpop.f32.mrf.mxu0  ;;  %v4059_v32 = vpop.f32.mrf.mxu1 }
 0x4f7   : > { %v4038_v23 = vadd.f32 %v4037_v6, %v4036_v22  ;;  %v4060_v21 = vadd.f32 %v4059_v32, %v4058_v31 }
 0x4f8   : > { %v4039_v11 = vpop.f32.mrf.mxu0  ;;  %v4061_v25 = vpop.f32.mrf.mxu1 }
 0x4f9   : > { %v2464_v2 = vadd.f32 %v4060_v21, %v4038_v23  ;;  %v2616_v23 = vld [vmem:[%s670_s20] sm:$0xff]  ;;  %v2617_v25 = vld [vmem:[%s670_s20 + $0x8] sm:$0xff] }
 0x4fa   : > { %v4040_v18 = vpop.f32.mrf.mxu0  ;;  %v4062_v53 = vpop.f32.mrf.mxu1 }
 0x4fb   : > { %2530 = vrot.lane.b32.xlu0 %v2464_v2, %s4430_s24  ;;  %2539 = vrot.lane.b32.xlu1 %v2464_v2, %s4431_s28  ;;  %v2510_v44 = vmul.f32 %v3925_v37, %v2464_v2 }
 0x4ff   : > { %2487 = vrot.lane.b32.xlu0 %v2464_v2, %s4432_s18  ;;  %2521 = vrot.lane.b32.xlu1 %v2464_v2, %s4433_s26  ;;  %s675_s26 = scalar_lea.vmem %s5765_s12, %s4014_s27  ;;  %s5714_s27 = scalar_lea.vmem %s5767_s14, %s4533_s23 }
 0x500   : > { %v2618_v18 = vld [vmem:[%s675_s26] sm:$0xff] }
 0x503   : > { %2469 = vrot.lane.b32.xlu0 %v2464_v2, %s4434_s29  ;;  %2512 = vrot.lane.b32.xlu1 %v2464_v2, %s5779_s0 }
 0x507   : > { %2496 = vrot.lane.b32.xlu1 %v2464_v2, %s5781_s19  ;;  %s5690_s19 = scalar_lea.vmem %s5768_s15, %s4533_s23 }
 0x50b   : > { %2478 = vrot.lane.b32.xlu1 %v2464_v2, %s4436_s17 }
 0x56d   : > { %v2540_v29 = vpop.permute.xlu1 %2539  ;;  %v2531_v30 = vpop.permute.xlu0 %2530 }
 0x56e   : > { %v2546_v14 = vmul.f32 %v3929_v24, %v2540_v29  ;;  %v2537_v35 = vmul.f32 %v3928_v13, %v2531_v30  ;;  %v2619_v24 = vld [vmem:[%s675_s26 + $0x8] sm:$0xff] }
 0x570   : > { %v2563_v34 = vpack.c.bf16 %v2546_v14, %v2546_v14 }
 0x571   : > { %v2522_v27 = vpop.permute.xlu1 %2521  ;;  %v2488_v40 = vpop.permute.xlu0 %2487 }
 0x572   : > { %v2573_v26 = vsel %vm1952_vm1, %v2563_v34, 0  ;;  %v2528_v3 = vmul.f32 %v3927_v33, %v2522_v27  ;;  %v2494_v42 = vmul.f32 %v3923_v36, %v2488_v40  ;;  %v4354_v36 = vld [vmem:[%s5758_s5 + $0x18] sm:$0xff]  }
 0x573   : > { %4115 = vmatpush3.bf16.msra.mxu1 %v2573_v26 }
 0x574   : > { %v2562_v39 = vpack.c.bf16 %v2537_v35, %v2528_v3  ;;  %4116 = vmatprep.subr.bf16.mxu1 %v4429_v10  ;;  %v4350_v3 = vld [vmem:[%s5758_s5 + $0x38] sm:$0xff]  }
 0x575   : > { %v2513_v43 = vpop.permute.xlu1 %2512  ;;  %v2470_v28 = vpop.permute.xlu0 %2469 }
 0x576   : > { %v2519_v48 = vmul.f32 %v3926_v38, %v2513_v43  ;;  %v2476_v54 = vmul.f32 %v3921_v55, %v2470_v28  ;;  %v4351_v38 = vld [vmem:[%s5758_s5 + $0x30] sm:$0xff]  }
 0x577   : > { %4117 = vmatpush3.bf16.msra.mxu1 %v2562_v39 }
 0x578   : > { %v2561_v49 = vpack.c.bf16 %v2519_v48, %v2510_v44  ;;  %4118 = vmatprep.subr.bf16.mxu1 %v4429_v10  ;;  %v4352_v44 = vld [vmem:[%s5758_s5 + $0x28] sm:$0xff]   ;;  %v4353_v48 = vld [vmem:[%s5758_s5 + $0x20] sm:$0xff]  }
 0x579   : > { %v2497_v50 = vpop.permute.xlu1 %2496 }
 0x57a   : > { %v2503_v52 = vmul.f32 %v3924_v7, %v2497_v50  ;;  %v4355_v7 = vld [vmem:[%s5758_s5 + $0x10] sm:$0xff]   ;;  %v4357_v50 = vld [vmem:[%s5758_s5] sm:$0xff]  }
 0x57b   : > { %4119 = vmatpush3.bf16.msra.mxu1 %v2561_v49  ;;  %v4356_v49 = vld [vmem:[%s5758_s5 + $0x8] sm:$0xff]  }
 0x57c   : > { %v2560_v56 = vpack.c.bf16 %v2503_v52, %v2494_v42  ;;  %4120 = vmatprep.subr.bf16.mxu1 %v4429_v10  ;;  %v4358_v52 = vld [vmem:[%s5756_s3 + $0x8] sm:$0xff]  }
 0x57d   : > { %v2479_v58 = vpop.permute.xlu1 %2478  ;;  %4149 = vmatpush3.bf16.msra.mxu0 %v4358_v52 }
 0x57e   : > { %v2485_v59 = vmul.f32 %v3922_v46, %v2479_v58  ;;  %4150 = vmatprep.subr.bf16.mxu0 %v4429_v10 }
 0x57f   : > { %4121 = vmatpush3.bf16.msra.mxu1 %v2560_v56 }
 0x580   : > { %v2559_v60 = vpack.c.bf16 %v2485_v59, %v2476_v54  ;;  %4122 = vmatprep.subr.bf16.mxu1 %v4429_v10 }
 0x583   : > { %4123 = vmatpush3.bf16.msra.mxu1 %v2559_v60 }
 0x584   : > { %4128 = vmatprep.subr.bf16.mxu1 %v4429_v10 }
 0x586   : > { %4125 = vmatmul.mubr.msk.bf16.vlgmr.msra.gmra.mxu1 %vm1948_vm9, %v4349_v47  ;;  %vm2809_vm9 = vcmask 261120  }
 0x587   : > { %4144 = vmatprep.mubr.msk.bf16.mxu1 %vm4435_vm2, %v4429_v10  ;;  %4129 = vmatpush3.bf16.msra.mxu1 %v4350_v3 }
 0x588   : > { %4130 = vmatprep.subr.bf16.mxu1 %v4429_v10 }
 0x58b   : > { %4131 = vmatpush3.bf16.msra.mxu1 %v4351_v38 }
 0x58c   : > { %4132 = vmatprep.subr.bf16.mxu1 %v4429_v10 }
 0x58f   : > { %4133 = vmatpush3.bf16.msra.mxu1 %v4352_v44 }
 0x590   : > { %4134 = vmatprep.subr.bf16.mxu1 %v4429_v10 }
 0x593   : > { %4135 = vmatpush3.bf16.msra.mxu1 %v4353_v48 }
 0x594   : > { %4136 = vmatprep.subr.bf16.mxu1 %v4429_v10 }
 0x597   : > { %4137 = vmatpush3.bf16.msra.mxu1 %v4354_v36 }
 0x598   : > { %4138 = vmatprep.subr.bf16.mxu1 %v4429_v10 }
 0x59b   : > { %4139 = vmatpush3.bf16.msra.mxu1 %v4355_v7 }
 0x59c   : > { %4140 = vmatprep.subr.bf16.mxu1 %v4429_v10 }
 0x59f   : > { %4141 = vmatpush3.bf16.msra.mxu1 %v4356_v49 }
 0x5a0   : > { %4142 = vmatprep.subr.bf16.mxu1 %v4429_v10 }
 0x5a3   : > { %4143 = vmatpush3.bf16.msra.mxu1 %v4357_v50 }
 0x5a4   : > { %4164 = vmatprep.subr.bf16.mxu1 %v4429_v10 }
 0x646   : > { %v2609_v61 = vpop.f32.mrf.mxu1 }
 0x647   : > { %2620 = vadd.xlane.f32.xlu0 %v2609_v61  ;;  %v2624_v63 = vmul.f32 %v2609_v61, %v2609_v61 }
 0x648   : > { %v4126_v62 = vpop.f32.mrf.mxu1 }
 0x64a   : > { %v2612_v1 = vpop.f32.mrf.mxu1 }
 0x64b   : > { %2626 = vadd.xlane.f32.xlu0 %v2624_v63  ;;  %2622 = vadd.xlane.f32.xlu1 %v2612_v1  ;;  %v2625_v4 = vmul.f32 %v2612_v1, %v2612_v1  ;;  %v4359_v63 = vld [vmem:[%s5756_s3 + $0x28] sm:$0xff]  }
 0x64c   : > { %v4127_v57 = vpop.f32.mrf.mxu1 }
 0x64d   : > { %v4361_v57 = vld [vmem:[%s5756_s3 + $0x20] sm:$0xff]  }
 0x64f   : > { %2628 = vadd.xlane.f32.xlu0 %v2625_v4 }
 0x6d0   : > { %v2621_v51 = vpop.xlane.xlu0 %2620 }
 0x6d1   : > { %v2630_v0 = vmul.f32 0.0078125, %v2621_v51 }
 0x6d3   : > { %v2634_v8 = vmul.f32 %v2630_v0, %v2630_v0  ;;  %v2640_v14 = vsub.f32 %v2609_v61, %v2630_v0 }
 0x6d4   : > { %v2627_v45 = vpop.xlane.xlu0 %2626  ;;  %v2623_v5 = vpop.xlane.xlu1 %2622 }
 0x6d5   : > { %v2632_v12 = vmul.f32 0.0078125, %v2627_v45  ;;  %v2631_v16 = vmul.f32 0.0078125, %v2623_v5  ;;  %v4362_v45 = vld [vmem:[%s5756_s3 + $0x18] sm:$0xff]   ;;  %v4363_v5 = vld [vmem:[%s5756_s3 + $0x48] sm:$0xff]  }
 0x6d7   : > { %v2636_v9 = vsub.f32 %v2632_v12, %v2634_v8  ;;  %v2635_v19 = vmul.f32 %v2631_v16, %v2631_v16  ;;  %v2641_v34 = vsub.f32 %v2612_v1, %v2631_v16  ;;  %v4360_v1 = vld [vmem:[%s5756_s3] sm:$0xff]   ;;  %v4364_v16 = vld [vmem:[%s5756_s3 + $0x10] sm:$0xff]  }
 0x6d8   : > { %v2629_v15 = vpop.xlane.xlu0 %2628  ;;  %4151 = vmatpush3.bf16.msra.mxu0 %v4360_v1 }
 0x6d9   : > { %v2638_v17 = vmax.f32 %v2636_v9, 0.0  ;;  %v2633_v20 = vmul.f32 0.0078125, %v2629_v15  ;;  %4156 = vmatprep.subr.bf16.mxu0 %v4429_v10  ;;  %v4365_v9 = vld [vmem:[%s5756_s3 + $0x40] sm:$0xff]   ;;  %v4366_v15 = vld [vmem:[%s5756_s3 + $0x38] sm:$0xff]  }
 0x6db   : > { %v2642_v22 = vadd.f32 1e-05, %v2638_v17  ;;  %v2637_v31 = vsub.f32 %v2633_v20, %v2635_v19  ;;  %v4367_v17 = vld [vmem:[%s5756_s3 + $0x68] sm:$0xff]   ;;  %v4368_v19 = vld [vmem:[%s5756_s3 + $0x30] sm:$0xff]   ;;  %v4369_v20 = vld [vmem:[%s5756_s3 + $0x60] sm:$0xff]  }
 0x6dd   : > { %4384 = vrsqrt.f32 %v2642_v22  ;;  %v2639_v6 = vmax.f32 %v2637_v31, 0.0  ;;  %v4370_v22 = vld [vmem:[%s5756_s3 + $0x58] sm:$0xff]   ;;  %v4371_v31 = vld [vmem:[%s5756_s3 + $0x88] sm:$0xff]  }
 0x6df   : > { %v2643_v32 = vadd.f32 1e-05, %v2639_v6  ;;  %v4372_v6 = vld [vmem:[%s5756_s3 + $0x50] sm:$0xff]  }
 0x6e1   : > { %4386 = vrsqrt.f32 %v2643_v32  ;;  %v4373_v32 = vld [vmem:[%s5756_s3 + $0x80] sm:$0xff]  }
 0x6ea   : > { %v4385_v21 = vpop.eup %4384 }
 0x6eb   : > { %v2646_v11 = vmul.f32 %v4385_v21, %v2616_v23  ;;  %v4374_v23 = vld [vmem:[%s5756_s3 + $0x78] sm:$0xff]   ;;  %v4375_v21 = vld [vmem:[%s5756_s3 + $0x70] sm:$0xff]  }
 0x6ed   : > { %2650 = vperm.xlu1 %4284, %v2646_v11  }
 0x6ee   : > { %v4387_v2 = vpop.eup %4386 }
 0x6ef   : > { %v2647_v53 = vmul.f32 %v4387_v2, %v2617_v25 }
 0x6f1   : > { %2662 = vperm.xlu1 %4284, %v2618_v18   ;;  %2655 = vperm.xlu0 %4283, %v2647_v53  }
 0x6f5   : > { %2667 = vperm.xlu1 %4284, %v2619_v24  }
 0x768   : > { %v2651_v29 = vpop.permute.xlu1 %2650 }
 0x769   : > { %v2658_v33 = vmul.f32 %v2651_v29, %v2640_v14 }
 0x76c   : > { %v2663_v13 = vpop.permute.xlu1 %2662  ;;  %v2656_v30 = vpop.permute.xlu0 %2655 }
 0x76d   : > { %v2670_v27 = vadd.f32 %v2663_v13, %v2658_v33  ;;  %v2659_v35 = vmul.f32 %v2656_v30, %v2641_v34 }
 0x76f   : > { %v2672_v39 = vmax.f32 %v2670_v27, 0.0 }
 0x770   : > { %v2668_v26 = vpop.permute.xlu1 %2667 }
 0x771   : > { %v2671_v37 = vadd.f32 %v2668_v26, %v2659_v35 }
 0x773   : > { %v2673_v40 = vmax.f32 %v2671_v37, 0.0 }
 0x775   : > { %v4305_v43 = vpack.i.bf16 %v2673_v40, %v2672_v39 }
 0x777   : > { %4306 = vrot.lane.b32.xlu0 %v4305_v43, %s5779_s0  ;;  %s5624_s0 = scalar_lea.vmem %s5766_s13, %s4533_s23 }
 0x778   : > { %v4376_v11 = vld [vmem:[%s5624_s0 + $0x4] ss:$8 sps:$4 sm:$0xff]  }
 0x7e9   : > { %v4307_v42 = vpop.permute.xlu0 %4306 }
 0x7ea   : > { %v4309_v55 = vunpack.i.h.bf16 %v4307_v42  ;;  %v4308_v28 = vunpack.i.l.bf16 %v4307_v42 }
 0x7ec   : > { %v2679_v46 = vmax.f32 %v2673_v40, %v4309_v55  ;;  %v2678_v56 = vmax.f32 %v2672_v39, %v4308_v28 }
 0x7ee   : > { %v4310_v58 = vpack.i.bf16 %v2679_v46, %v2678_v56 }
 0x7f0   : > { %4311 = vrot.lane.b32.xlu1 %v4310_v58, %s4430_s24 }
 0x862   : > { %v4312_v54 = vpop.permute.xlu1 %4311 }
 0x863   : > { %v4314_v59 = vunpack.i.h.bf16 %v4312_v54  ;;  %v4313_v60 = vunpack.i.l.bf16 %v4312_v54 }
 0x865   : > { %v2685_v47 = vmax.f32 %v2679_v46, %v4314_v59  ;;  %v2684_v61 = vmax.f32 %v2678_v56, %v4313_v60 }
 0x867   : > { %v2686_v62 = vpack.c.bf16 %v2685_v47, %v2684_v61 }
 0x869   : > { %4145 = vmatmul.mubr.bf16.vlgmr.msra.gmra.mxu1 %v2686_v62 }
 0x86a   : > { %4168 = vmatprep.mubr.msk.bf16.mxu1 %vm4435_vm2, %v4429_v10  ;;  %4165 = vmatpush3.bf16.msra.mxu1 %v4359_v63 }
 0x86b   : > { %4166 = vmatprep.subr.bf16.mxu1 %v4429_v10 }
 0x86e   : > { %4167 = vmatpush3.bf16.msra.mxu1 %v4361_v57 }
 0x86f   : > { %4180 = vmatprep.subr.bf16.mxu1 %v4429_v10 }
 0x929   : > { %v2785_v4 = vpop.f32.mrf.mxu1 }
 0x92b   : > { %v4146_v51 = vpop.f32.mrf.mxu1 }
 0x92d   : > { %v2788_v0 = vpop.f32.mrf.mxu1 }
 0x92e   : > { %v2792_v8 = vpack.c.bf16 %v2788_v0, %v2785_v4 }
 0x92f   : > { %v4147_v12 = vpop.f32.mrf.mxu1 }
 0x930   : > { %4153 = vmatmul.mubr.msk.bf16.vlgmr.msra.gmra.mxu0 %vm2809_vm9, %v2792_v8  ;;  %4169 = vmatmul.mubr.msk.bf16.vlgmr.msra.gmra.mxu1 %vm2809_vm9, %v2792_v8 }
 0x931   : > { %4157 = vmatpush3.bf16.msra.mxu0 %v4362_v45  ;;  %4181 = vmatpush3.bf16.msra.mxu1 %v4363_v5 }
 0x932   : > { %4158 = vmatprep.subr.bf16.mxu0 %v4429_v10  ;;  %4182 = vmatprep.subr.bf16.mxu1 %v4429_v10 }
 0x933   : > { %4160 = vmatprep.mubr.msk.bf16.mxu0 %vm4435_vm2, %v4429_v10  ;;  %4184 = vmatprep.mubr.msk.bf16.mxu1 %vm4435_vm2, %v4429_v10 }
 0x935   : > { %4159 = vmatpush3.bf16.msra.mxu0 %v4364_v16  ;;  %4183 = vmatpush3.bf16.msra.mxu1 %v4365_v9 }
 0x936   : > { %4172 = vmatprep.subr.bf16.mxu0 %v4429_v10  ;;  %4196 = vmatprep.subr.bf16.mxu1 %v4429_v10 }
 0x938   : > { %4161 = vmatmul.mubr.msk.bf16.vlgmr.msra.gmra.mxu0 %vm2809_vm9, %v2792_v8  ;;  %4185 = vmatmul.mubr.msk.bf16.vlgmr.msra.gmra.mxu1 %vm2809_vm9, %v2792_v8 }
 0x939   : > { %4173 = vmatpush3.bf16.msra.mxu0 %v4366_v15  ;;  %4197 = vmatpush3.bf16.msra.mxu1 %v4367_v17 }
 0x93a   : > { %4174 = vmatprep.subr.bf16.mxu0 %v4429_v10  ;;  %4198 = vmatprep.subr.bf16.mxu1 %v4429_v10 }
 0x93b   : > { %4176 = vmatprep.mubr.msk.bf16.mxu0 %vm4435_vm2, %v4429_v10  ;;  %4200 = vmatprep.mubr.msk.bf16.mxu1 %vm4435_vm2, %v4429_v10 }
 0x93d   : > { %4175 = vmatpush3.bf16.msra.mxu0 %v4368_v19  ;;  %4199 = vmatpush3.bf16.msra.mxu1 %v4369_v20 }
 0x93e   : > { %4188 = vmatprep.subr.bf16.mxu0 %v4429_v10  ;;  %4212 = vmatprep.subr.bf16.mxu1 %v4429_v10 }
 0x940   : > { %4177 = vmatmul.mubr.msk.bf16.vlgmr.msra.gmra.mxu0 %vm2809_vm9, %v2792_v8  ;;  %4201 = vmatmul.mubr.msk.bf16.vlgmr.msra.gmra.mxu1 %vm2809_vm9, %v2792_v8 }
 0x941   : > { %4189 = vmatpush3.bf16.msra.mxu0 %v4370_v22  ;;  %4213 = vmatpush3.bf16.msra.mxu1 %v4371_v31 }
 0x942   : > { %4190 = vmatprep.subr.bf16.mxu0 %v4429_v10  ;;  %4214 = vmatprep.subr.bf16.mxu1 %v4429_v10 }
 0x943   : > { %4192 = vmatprep.mubr.msk.bf16.mxu0 %vm4435_vm2, %v4429_v10  ;;  %4216 = vmatprep.mubr.msk.bf16.mxu1 %vm4435_vm2, %v4429_v10 }
 0x945   : > { %4191 = vmatpush3.bf16.msra.mxu0 %v4372_v6  ;;  %4215 = vmatpush3.bf16.msra.mxu1 %v4373_v32 }
 0x946   : > { %4204 = vmatprep.subr.bf16.mxu0 %v4429_v10 }
 0x948   : > { %4193 = vmatmul.mubr.msk.bf16.vlgmr.msra.gmra.mxu0 %vm2809_vm9, %v2792_v8  ;;  %4217 = vmatmul.mubr.msk.bf16.vlgmr.msra.gmra.mxu1 %vm2809_vm9, %v2792_v8 }
 0x949   : > { %4205 = vmatpush3.bf16.msra.mxu0 %v4374_v23  ;;  %4208 = vmatprep.mubr.msk.bf16.mxu0 %vm4435_vm2, %v4429_v10 }
 0x94a   : > { %4206 = vmatprep.subr.bf16.mxu0 %v4429_v10 }
 0x94d   : > { %4207 = vmatpush3.bf16.msra.mxu0 %v4375_v21 }
 0x94e   : > { %3392 = vmatprep.subr.bf16.mxu0 %v4428_v41 }
 0x950   : > { %4209 = vmatmul.mubr.msk.bf16.vlgmr.msra.gmra.mxu0 %vm2809_vm9, %v2792_v8 }
 0x951   : > { %4003 = vmatprep.mubr.msk.bf16.mxu0 %vm3385_vm12, %v4376_v11 }
 0x9f0   : > { %v2847_v25 = vpop.f32.mrf.mxu0  ;;  %v2967_v2 = vpop.f32.mrf.mxu1 }
 0x9f1   : > { %2854 = vst.msk [vmem:[#allocation4] sm:$0xff] %vm2809_vm9, %v2847_v25  ;;  %2974 = vst.msk [vmem:[#allocation4 + $0x20] sm:$0xff] %vm2809_vm9, %v2967_v2  ;;  %v4378_v25 = vld [vmem:[%s5624_s0] ss:$8 sps:$4 sm:$0xff]   ;;  %v4379_v2 = vld [vmem:[%s5624_s0 + $0x14] ss:$8 sps:$4 sm:$0xff]  }
 0x9f2   : > { %v4154_v10 = vpop.f32.mrf.mxu0  ;;  %v4170_v18 = vpop.f32.mrf.mxu1 }
 0x9f3   : > { %v4381_v10 = vld [vmem:[%s5624_s0 + $0x10] ss:$8 sps:$4 sm:$0xff]  }
 0x9f4   : > { %v2850_v53 = vpop.f32.mrf.mxu0  ;;  %v2970_v24 = vpop.f32.mrf.mxu1 }
 0x9f5   : > { %2855 = vst.msk [vmem:[#allocation4 + $0x8] sm:$0xff] %vm2809_vm9, %v2850_v53  ;;  %2975 = vst.msk [vmem:[#allocation4 + $0x28] sm:$0xff] %vm2809_vm9, %v2970_v24 }
 0x9f6   : > { %v4155_v29 = vpop.f32.mrf.mxu0  ;;  %v4171_v14 = vpop.f32.mrf.mxu1 }
 0x9f8   : > { %v2907_v13 = vpop.f32.mrf.mxu0  ;;  %v3087_v30 = vpop.f32.mrf.mxu1  ;;  %v3344_v15 = vld [vmem:[#allocation4 + $0x20] sm:$0xff] }
 0x9f9   : > { %2914 = vst.msk [vmem:[#allocation4 + $0x10] sm:$0xff] %vm2809_vm9, %v2907_v13  ;;  %3094 = vst.msk [vmem:[#allocation4 + $0x40] sm:$0xff] %vm2809_vm9, %v3087_v30  ;;  %v3340_v6 = vld [vmem:[#allocation4] sm:$0xff] }
 0x9fa   : > { %v4162_v33 = vpop.f32.mrf.mxu0  ;;  %v4186_v34 = vpop.f32.mrf.mxu1 }
 0x9fc   : > { %v2910_v27 = vpop.f32.mrf.mxu0  ;;  %v3090_v35 = vpop.f32.mrf.mxu1  ;;  %v3345_v9 = vld [vmem:[#allocation4 + $0x28] sm:$0xff] }
 0x9fd   : > { %2915 = vst.msk [vmem:[#allocation4 + $0x18] sm:$0xff] %vm2809_vm9, %v2910_v27  ;;  %3095 = vst.msk [vmem:[#allocation4 + $0x48] sm:$0xff] %vm2809_vm9, %v3090_v35  ;;  %v3360_v17 = vpack.c.bf16 %v3345_v9, %v3344_v15  ;;  %v3341_v31 = vld [vmem:[#allocation4 + $0x8] sm:$0xff] }
 0x9fe   : > { %v4163_v26 = vpop.f32.mrf.mxu0  ;;  %v4187_v3 = vpop.f32.mrf.mxu1  ;;  %v3358_v32 = vpack.c.bf16 %v3341_v31, %v3340_v6 }
 0xa00   : > { %v3027_v37 = vpop.f32.mrf.mxu0  ;;  %v3207_v38 = vpop.f32.mrf.mxu1  ;;  %v3348_v45 = vld [vmem:[#allocation4 + $0x40] sm:$0xff]  ;;  %v3342_v20 = vld [vmem:[#allocation4 + $0x10] sm:$0xff] }
 0xa01   : > { %3034 = vst.msk [vmem:[#allocation4 + $0x30] sm:$0xff] %vm2809_vm9, %v3027_v37  ;;  %3214 = vst.msk [vmem:[#allocation4 + $0x60] sm:$0xff] %vm2809_vm9, %v3207_v38 }
 0xa02   : > { %v4178_v39 = vpop.f32.mrf.mxu0  ;;  %v4202_v40 = vpop.f32.mrf.mxu1 }
 0xa04   : > { %v3030_v43 = vpop.f32.mrf.mxu0  ;;  %v3210_v44 = vpop.f32.mrf.mxu1  ;;  %v3349_v0 = vld [vmem:[#allocation4 + $0x48] sm:$0xff]  ;;  %v3343_v19 = vld [vmem:[#allocation4 + $0x18] sm:$0xff] }
 0xa05   : > { %3035 = vst.msk [vmem:[#allocation4 + $0x38] sm:$0xff] %vm2809_vm9, %v3030_v43  ;;  %3215 = vst.msk [vmem:[#allocation4 + $0x68] sm:$0xff] %vm2809_vm9, %v3210_v44  ;;  %v3362_v5 = vpack.c.bf16 %v3349_v0, %v3348_v45  ;;  %v3359_v22 = vpack.c.bf16 %v3343_v19, %v3342_v20  ;;  %v3441_v19 = vld [vmem:[%s5714_s27] sm:$0xff] }
 0xa06   : > { %v4179_v48 = vpop.f32.mrf.mxu0  ;;  %v4203_v36 = vpop.f32.mrf.mxu1 }
 0xa07   : > { %v3447_v48 = vld [vmem:[%s5690_s19 + $0x10] sm:$0xff]  ;;  %v3445_v36 = vld [vmem:[%s5690_s19] sm:$0xff] }
 0xa08   : > { %v3147_v7 = vpop.f32.mrf.mxu0  ;;  %v3327_v49 = vpop.f32.mrf.mxu1  ;;  %v3352_v63 = vld [vmem:[#allocation4 + $0x60] sm:$0xff]  ;;  %v3346_v12 = vld [vmem:[#allocation4 + $0x30] sm:$0xff] }
 0xa09   : > { %3154 = vst.msk [vmem:[#allocation4 + $0x50] sm:$0xff] %vm2809_vm9, %v3147_v7  ;;  %3334 = vst.msk [vmem:[#allocation4 + $0x80] sm:$0xff] %vm2809_vm9, %v3327_v49 }
 0xa0a   : > { %v4194_v50 = vpop.f32.mrf.mxu0  ;;  %v4218_v42 = vpop.f32.mrf.mxu1 }
 0xa0c   : > { %v3150_v52 = vpop.f32.mrf.mxu0  ;;  %v3330_v55 = vpop.f32.mrf.mxu1  ;;  %v3353_v62 = vld [vmem:[#allocation4 + $0x68] sm:$0xff]  ;;  %v3347_v8 = vld [vmem:[#allocation4 + $0x38] sm:$0xff] }
 0xa0d   : > { %3155 = vst.msk [vmem:[#allocation4 + $0x58] sm:$0xff] %vm2809_vm9, %v3150_v52  ;;  %3335 = vst.msk [vmem:[#allocation4 + $0x88] sm:$0xff] %vm2809_vm9, %v3330_v55  ;;  %v3364_v1 = vpack.c.bf16 %v3353_v62, %v3352_v63  ;;  %v3361_v16 = vpack.c.bf16 %v3347_v8, %v3346_v12 }
 0xa0e   : > { %v4195_v28 = vpop.f32.mrf.mxu0  ;;  %v4219_v46 = vpop.f32.mrf.mxu1 }
 0xa10   : > { %v3267_v56 = vpop.f32.mrf.mxu0  ;;  %v3350_v4 = vld [vmem:[#allocation4 + $0x50] sm:$0xff]  ;;  %v3356_v21 = vld [vmem:[#allocation4 + $0x80] sm:$0xff] }
 0xa11   : > { %3274 = vst.msk [vmem:[#allocation4 + $0x70] sm:$0xff] %vm2809_vm9, %v3267_v56 }
 0xa12   : > { %v4210_v58 = vpop.f32.mrf.mxu0 }
 0xa14   : > { %v3270_v54 = vpop.f32.mrf.mxu0  ;;  %v3351_v57 = vld [vmem:[#allocation4 + $0x58] sm:$0xff]  ;;  %v3357_v23 = vld [vmem:[#allocation4 + $0x88] sm:$0xff] }
 0xa15   : > { %3275 = vst.msk [vmem:[#allocation4 + $0x78] sm:$0xff] %vm2809_vm9, %v3270_v54  ;;  %v3363_v51 = vpack.c.bf16 %v3351_v57, %v3350_v4  ;;  %v3366_v11 = vpack.c.bf16 %v3357_v23, %v3356_v21  ;;  %v3443_v23 = vld [vmem:[%s5714_s27 + $0x10] sm:$0xff] }
 0xa16   : > { %v4211_v59 = vpop.f32.mrf.mxu0 }
 0xa18   : > { %v3354_v60 = vld [vmem:[#allocation4 + $0x70] sm:$0xff] }
 0xa1c   : > { %v3355_v47 = vld [vmem:[#allocation4 + $0x78] sm:$0xff] }
 0xa1d   : > { %v3365_v61 = vpack.c.bf16 %v3355_v47, %v3354_v60 }
 0xa1f   : > { %3393 = vmatpush1.bf16.msra.mxu0 %v3365_v61 }
 0xa20   : > { %3394 = vmatprep.subr.bf16.mxu0 %v4428_v41 }
 0xa23   : > { %3395 = vmatpush1.bf16.msra.mxu0 %v3364_v1 }
 0xa24   : > { %3396 = vmatprep.subr.bf16.mxu0 %v4428_v41 }
 0xa27   : > { %3397 = vmatpush1.bf16.msra.mxu0 %v3363_v51 }
 0xa28   : > { %3398 = vmatprep.subr.bf16.mxu0 %v4428_v41 }
 0xa2b   : > { %3399 = vmatpush1.bf16.msra.mxu0 %v3362_v5 }
 0xa2c   : > { %3400 = vmatprep.subr.bf16.mxu0 %v4428_v41 }
 0xa2f   : > { %3401 = vmatpush1.bf16.msra.mxu0 %v3361_v16 }
 0xa30   : > { %3402 = vmatprep.subr.bf16.mxu0 %v4428_v41 }
 0xa33   : > { %3403 = vmatpush1.bf16.msra.mxu0 %v3360_v17 }
 0xa34   : > { %3404 = vmatprep.subr.bf16.mxu0 %v4428_v41 }
 0xa37   : > { %3405 = vmatpush1.bf16.msra.mxu0 %v3359_v22 }
 0xa38   : > { %3406 = vmatprep.subr.bf16.mxu0 %v4428_v41 }
 0xa3b   : > { %3407 = vmatpush1.bf16.msra.mxu0 %v3358_v32  ;;  %v3568_v32 = vld [vmem:[%s5759_s6 + $0x18] sm:$0xff] }
 0xa3c   : > { %3422 = vmatprep.subr.bf16.mxu0 %v4428_v41  ;;  %4234 = vmatprep.subr.mxu1 %v3568_v32 }
 0xa3d   : > { %4238 = vmatpush3.msra.mxu1 %v3568_v32 }
 0xa3f   : > { %3423 = vmatpush2.bf16.msra.mxu0 %v3366_v11  ;;  %v3442_v11 = vld [vmem:[%s5714_s27 + $0x8] sm:$0xff] }
 0xa40   : > { %4220 = vmatprep.subr.mxu0 %v3568_v32 }
 0xa42   : > { %3425 = vmatmul.mubr.bf16.vlgmr.msra.gmra.mxu0 %v4378_v25 }
 0xa43   : > { %4004 = vmatprep.mubr.msk.bf16.mxu0 %vm3385_vm12, %v4379_v2  ;;  %4221 = vmatpush3.msra.mxu0 %v3568_v32  ;;  %v3567_v2 = vld [vmem:[%s5759_s6 + $0x10] sm:$0xff] }
 0xa44   : > { %4222 = vmatprep.subr.mxu0 %v3567_v2  ;;  %4235 = vmatprep.subr.mxu1 %v3567_v2 }
 0xa45   : > { %4223 = vmatpush3.msra.mxu0 %v3567_v2  ;;  %4239 = vmatpush3.msra.mxu1 %v3567_v2 }
 0xa4a   : > { %3433 = vmatmul.mubr.bf16.gmra.mxu0 %v4381_v10 }
 0xb02   : > { %v5658_v18 = vpop.f32.mrf.mxu0 }
 0xb03   : > { %v3461_v53 = vmul.f32 %v5658_v18, %v5658_v18  ;;  %v3449_v24 = vsel %vm2809_vm9, %v5658_v18, 0.0 }
 0xb04   : > { %3450 = vadd.xlane.f32.xlu0 %v3449_v24  ;;  %v3428_v41 = vpop.f32.mrf.mxu0  ;;  %v3566_v24 = vld [vmem:[%s5759_s6 + $0x8] sm:$0xff] }
 0xb05   : > { %v3465_v29 = vsel %vm2809_vm9, %v3461_v53, 0.0  ;;  %v3446_v41 = vld [vmem:[%s5690_s19 + $0x8] sm:$0xff]  ;;  %4224 = vmatprep.subr.mxu0 %v3566_v24  ;;  %4236 = vmatprep.subr.mxu1 %v3566_v24 }
 0xb06   : > { %3466 = vadd.xlane.f32.xlu1 %v3465_v29  ;;  %v5665_v14 = vpop.f32.mrf.mxu0  ;;  %4225 = vmatpush3.msra.mxu0 %v3566_v24  ;;  %v3565_v29 = vld [vmem:[%s5759_s6] sm:$0xff] }
 0xb07   : > { %v3452_v13 = vsel %vm2809_vm9, %v5665_v14, 0.0  ;;  %v3462_v34 = vmul.f32 %v5665_v14, %v5665_v14  ;;  %4226 = vmatprep.subr.mxu0 %v3565_v29  ;;  %4240 = vmatpush3.msra.mxu1 %v3566_v24 }
 0xb08   : > { %3453 = vadd.xlane.f32.xlu0 %v3452_v13  ;;  %v3431_v30 = vpop.f32.mrf.mxu0  ;;  %v3444_v13 = vld [vmem:[%s5714_s27 + $0x18] sm:$0xff]  ;;  %4227 = vmatpush3.msra.mxu0 %v3565_v29 }
 0xb09   : > { %v3468_v38 = vsel %vm2809_vm9, %v3462_v34, 0.0  ;;  %4237 = vmatprep.subr.mxu1 %v3565_v29 }
 0xb0a   : > { %v5669_v33 = vpop.f32.mrf.mxu0  ;;  %4241 = vmatpush3.msra.mxu1 %v3565_v29 }
 0xb0b   : > { %v3463_v27 = vmul.f32 %v5669_v33, %v5669_v33  ;;  %v3455_v35 = vsel %vm2809_vm9, %v5669_v33, 0.0 }
 0xb0c   : > { %3456 = vadd.xlane.f32.xlu1 %v3455_v35  ;;  %v3436_v26 = vpop.f32.mrf.mxu0 }
 0xb0d   : > { %v3471_v3 = vsel %vm2809_vm9, %v3463_v27, 0.0  ;;  %v3448_v27 = vld [vmem:[%s5690_s19 + $0x18] sm:$0xff]  ;;  %s695_s19 = scalar_lea.vmem %s5769_s16, %s4533_s23 }
 0xb0e   : > { %3472 = vadd.xlane.f32.xlu0 %v3471_v3  ;;  %v5678_v37 = vpop.f32.mrf.mxu0 }
 0xb0f   : > { %v3464_v40 = vmul.f32 %v5678_v37, %v5678_v37  ;;  %v3458_v43 = vsel %vm2809_vm9, %v5678_v37, 0.0 }
 0xb10   : > { %3469 = vadd.xlane.f32.xlu1 %v3468_v38  ;;  %v3439_v39 = vpop.f32.mrf.mxu0 }
 0xb11   : > { %v3474_v44 = vsel %vm2809_vm9, %v3464_v40, 0.0 }
 0xb12   : > { %3459 = vadd.xlane.f32.xlu0 %v3458_v43 }
 0xb16   : > { %3475 = vadd.xlane.f32.xlu0 %v3474_v44 }
 0xb21   : > { %3549 = vperm.xlu1 %4284, %v3447_v48  }
 0xb2c   : > { %3539 = vperm.xlu0 %4283, %v3445_v36  }
 0xb8d   : > { %v3451_v7 = vpop.xlane.xlu0 %3450 }
 0xb8e   : > { %v5694_v49 = vmul.f32 0.03125, %v3451_v7 }
 0xb8f   : > { %v3467_v50 = vpop.xlane.xlu1 %3466 }
 0xb90   : > { %v3485_v42 = vmul.f32 %v5694_v49, %v5694_v49  ;;  %v3481_v52 = vmul.f32 0.03125, %v3467_v50  ;;  %v3497_v26 = vsub.f32 %v5658_v18, %v5694_v49 }
 0xb91   : > { %v3454_v28 = vpop.xlane.xlu0 %3453 }
 0xb92   : > { %v3489_v55 = vsub.f32 %v3481_v52, %v3485_v42  ;;  %v5698_v54 = vmul.f32 0.03125, %v3454_v28 }
 0xb94   : > { %v3493_v46 = vmax.f32 %v3489_v55, 0.0  ;;  %v3486_v63 = vmul.f32 %v5698_v54, %v5698_v54  ;;  %v3498_v7 = vsub.f32 %v5665_v14, %v5698_v54 }
 0xb95   : > { %v3457_v56 = vpop.xlane.xlu1 %3456 }
 0xb96   : > { %v3501_v58 = vadd.f32 1e-05, %v3493_v46  ;;  %v5700_v59 = vmul.f32 0.03125, %v3457_v56 }
 0xb97   : > { %v3473_v60 = vpop.xlane.xlu0 %3472 }
 0xb98   : > { %4388 = vrsqrt.f32 %v3501_v58  ;;  %v3487_v47 = vmul.f32 %v5700_v59, %v5700_v59  ;;  %v3483_v61 = vmul.f32 0.03125, %v3473_v60  ;;  %v3499_v44 = vsub.f32 %v5669_v33, %v5700_v59 }
 0xb99   : > { %v3470_v62 = vpop.xlane.xlu1 %3469 }
 0xb9a   : > { %v3491_v1 = vsub.f32 %v3483_v61, %v3487_v47  ;;  %v3482_v57 = vmul.f32 0.03125, %v3470_v62 }
 0xb9b   : > { %v3460_v4 = vpop.xlane.xlu0 %3459 }
 0xb9c   : > { %v3495_v51 = vmax.f32 %v3491_v1, 0.0  ;;  %v3490_v0 = vsub.f32 %v3482_v57, %v3486_v63  ;;  %v5706_v45 = vmul.f32 0.03125, %v3460_v4 }
 0xb9d   : > { %v3550_v35 = vpop.permute.xlu1 %3549 }
 0xb9e   : > { %v3503_v5 = vadd.f32 1e-05, %v3495_v51  ;;  %v3494_v8 = vmax.f32 %v3490_v0, 0.0  ;;  %v3488_v9 = vmul.f32 %v5706_v45, %v5706_v45  ;;  %v3500_v56 = vsub.f32 %v5678_v37, %v5706_v45 }
 0xb9f   : > { %v3476_v12 = vpop.xlane.xlu0 %3475 }
 0xba0   : > { %4390 = vrsqrt.f32 %v3503_v5  ;;  %v3502_v16 = vadd.f32 1e-05, %v3494_v8  ;;  %v3484_v15 = vmul.f32 0.03125, %v3476_v12 }
 0xba2   : > { %4392 = vrsqrt.f32 %v3502_v16  ;;  %v3492_v17 = vsub.f32 %v3484_v15, %v3488_v9 }
 0xba4   : > { %v3496_v20 = vmax.f32 %v3492_v17, 0.0 }
 0xba5   : > { %v4389_v22 = vpop.eup %4388 }
 0xba6   : > { %v3504_v31 = vadd.f32 1e-05, %v3496_v20  ;;  %v3509_v6 = vmul.f32 %v4389_v22, %v3441_v19 }
 0xba7   : > { %v3540_v39 = vpop.permute.xlu0 %3539 }
 0xba8   : > { %4394 = vrsqrt.f32 %v3504_v31  ;;  %3515 = vperm.xlu1 %4284, %v3509_v6  }
 0xbad   : > { %v4391_v21 = vpop.eup %4390 }
 0xbae   : > { %v3511_v25 = vmul.f32 %v4391_v21, %v3443_v23 }
 0xbaf   : > { %v4393_v10 = vpop.eup %4392 }
 0xbb0   : > { %3525 = vperm.xlu0 %4283, %v3511_v25   ;;  %v3510_v53 = vmul.f32 %v4393_v10, %v3442_v11 }
 0xbb2   : > { %3520 = vperm.xlu1 %4284, %v3510_v53  }
 0xbb4   : > { %3544 = vperm.xlu0 %4283, %v3446_v41  }
 0xbb5   : > { %v4395_v30 = vpop.eup %4394 }
 0xbb6   : > { %v3512_v34 = vmul.f32 %v4395_v30, %v3444_v13 }
 0xbb8   : > { %3530 = vperm.xlu1 %4284, %v3512_v34  }
 0xbbc   : > { %3554 = vperm.xlu1 %4284, %v3448_v27  }
 0xc23   : > { %v3516_v3 = vpop.permute.xlu1 %3515 }
 0xc24   : > { %v3533_v38 = vmul.f32 %v3516_v3, %v3497_v26 }
 0xc26   : > { %v3557_v40 = vadd.f32 %v3540_v39, %v3533_v38 }
 0xc28   : > { %v3561_v43 = vmax.f32 %v3557_v40, 0.0 }
 0xc2a   : > { %4228 = vmatprep.mubr.msk.f32.mxu0 %vm2809_vm9, %v3561_v43 }
 0xc2b   : > { %v3526_v48 = vpop.permute.xlu0 %3525 }
 0xc2c   : > { %v3535_v36 = vmul.f32 %v3526_v48, %v3499_v44 }
 0xc2d   : > { %v3521_v50 = vpop.permute.xlu1 %3520 }
 0xc2e   : > { %v3559_v42 = vadd.f32 %v3550_v35, %v3535_v36  ;;  %v3534_v52 = vmul.f32 %v3521_v50, %v3498_v7 }
 0xc2f   : > { %v3545_v18 = vpop.permute.xlu0 %3544 }
 0xc30   : > { %v3563_v49 = vmax.f32 %v3559_v42, 0.0  ;;  %v3558_v55 = vadd.f32 %v3545_v18, %v3534_v52 }
 0xc32   : > { %v3562_v28 = vmax.f32 %v3558_v55, 0.0  ;;  %4231 = vmatprep.mubr.msk.f32.mxu1 %vm2809_vm9, %v3563_v49 }
 0xc33   : > { %v3531_v46 = vpop.permute.xlu1 %3530 }
 0xc34   : > { %4229 = vmatmul.mubr.msk.f32.vlgmr.msra.gmra.mxu0 %vm2809_vm9, %v3562_v28  ;;  %v3536_v33 = vmul.f32 %v3531_v46, %v3500_v56 }
 0xc37   : > { %v3555_v58 = vpop.permute.xlu1 %3554 }
 0xc38   : > { %v3560_v59 = vadd.f32 %v3555_v58, %v3536_v33 }
 0xc3a   : > { %v3564_v14 = vmax.f32 %v3560_v59, 0.0 }
 0xc3c   : > { %4232 = vmatmul.mubr.msk.f32.vlgmr.msra.gmra.mxu1 %vm2809_vm9, %v3564_v14 }
 0xcf4   : > { %v4230_v54 = vpop.f32.mrf.mxu0 }
 0xcf5   : > { %3668 = vst.msk [vmem:[%s695_s19 + $0x8] sm:$0xff] %vm3666_vm13, %v4230_v54 }
 0xcf6   : > { %v3647_v60 = vpop.f32.mrf.mxu0 }
 0xcf7   : > { %3667 = vst.msk [vmem:[%s695_s19] sm:$0xff] %vm3666_vm13, %v3647_v60 }
 0xcfc   : > { %v4233_v47 = vpop.f32.mrf.mxu1 }
 0xcfd   : > { %3670 = vst.msk [vmem:[%s695_s19 + $0x18] sm:$0xff] %vm3666_vm13, %v4233_v47 }
 0xcfe   : > { %v3657_v37 = vpop.f32.mrf.mxu1 }
 0xcff   : > { %3669 = vst.msk [vmem:[%s695_s19 + $0x10] sm:$0xff] %vm3666_vm13, %v3657_v37 }
 0xd00 PF: > { %s26_s21 = sadd.s32 1, %s4402_s21  }
 0xd01   : > { %p23_p4 = scmp.ge.s32.totalorder %s26_s21, 4  }
 0xd03   :  { %25 = sbr.rel (!%p23_p4) target bundleno = 3 (0x3), region = 173 }

</bundles_post_ra>
